<compile_context>
chip_gen: v5e
topology: v5e:2x2
jax: 0.10.0
libtpu: 0.0.40
codegen_flags: <defaults>
</compile_context>

<pallas_src>
import functools

import jax
import jax.numpy as jnp
from jax import lax
from jax.experimental import pallas as pl
from jax.experimental.pallas import tpu as pltpu


# ----------------------------------------------------------------------------
# Kernel 1: fused Conv3d (sum of shifted matmuls) + per-channel partial stats
# ----------------------------------------------------------------------------
def _conv_stats_kernel(x_ref, w_ref, mask_ref, y_ref, sum_ref, ssq_ref,
                       *, tap_offsets, n_out_cols):
    """One batch element per grid step.

    x_ref    : (Cin, Lpad)      bf16  zero-padded, flattened input volume
    w_ref    : (T, Cout, Cin)   bf16  one (Cout, Cin) weight slice per tap
    mask_ref : (1, P)           f32   1.0 at valid output columns else 0.0
    y_ref    : (Cout, P)        f32   conv output at padded-flat resolution
    sum_ref  : (Cout, 1)        f32   masked sum   (partial, this n)
    ssq_ref  : (Cout, 1)        f32   masked sum of squares (partial, this n)
    """
    P = n_out_cols
    cout = w_ref.shape[1]
    acc = jnp.zeros((cout, P), jnp.float32)
    # kd*kh*kw small matmuls over lane-shifted views of the flat input.
    for t, off in enumerate(tap_offsets):
        patch = x_ref[:, off:off + P]                     # (Cin, P) bf16
        acc = acc + jnp.dot(w_ref[t], patch,
                            preferred_element_type=jnp.float32)
    y_ref[...] = acc
    masked = acc * mask_ref[...]                          # zero out pad columns
    sum_ref[...] = jnp.sum(masked, axis=1, keepdims=True)
    ssq_ref[...] = jnp.sum(masked * acc, axis=1, keepdims=True)


# ----------------------------------------------------------------------------
# Kernel 2: normalize + leaky_relu (lane-dense, tiled, megacore-parallel)
# ----------------------------------------------------------------------------
def _bn_act_kernel(y_ref, scale_ref, shift_ref, o_ref, *, slope):
    # y_ref: (Cout, tile) f32 ; scale/shift: (Cout, 1) f32 broadcast over lanes
    z = y_ref[...] * scale_ref[...] + shift_ref[...]
    o_ref[...] = jnp.where(z >= 0, z, slope * z)


# ----------------------------------------------------------------------------
# Wrapper
# ----------------------------------------------------------------------------
def basic_conv_bns3d(x, weight, bias, gamma, beta, *, stride=1, padding=0,
                     dilation=1, eps=1e-5, slope=0.01, col_tile=2048,
                     compute_dtype=jnp.bfloat16):
    # Conv bias is a mathematical no-op under batch-stat BN (mean subtraction
    # absorbs any per-channel constant), so it is dropped entirely.
    del bias

    N, Cin, D, H, W = x.shape
    Cout, _, kd, kh, kw = weight.shape

    def out_dim(s, k):
        return (s + 2 * padding - dilation * (k - 1) - 1) // stride + 1

    Do, Ho, Wo = out_dim(D, kd), out_dim(H, kh), out_dim(W, kw)
    Dp, Hp, Wp = D + 2 * padding, H + 2 * padding, W + 2 * padding
    HW = Hp * Wp
    L = Dp * HW

    # "Virtual" output columns: every flat position p in [0, P).  Valid conv
    # outputs live at p = (z*stride)*HW + (y*stride)*Wp + (x*stride); the rest
    # are garbage columns that get masked out of the stats and cropped at the
    # end.  Overcompute factor ~ Hp*Wp / (Ho*Wo) (small for realistic shapes).
    Dv = (Do - 1) * stride + 1
    P = Dv * HW
    tap_offsets = tuple(dilation * (zi * HW + yi * Wp + xi)
                        for zi in range(kd)
                        for yi in range(kh)
                        for xi in range(kw))
    T = kd * kh * kw
    extra = max(0, max(tap_offsets) + P - L)
    Lpad = L + extra

    # ---- cheap XLA-side packing (no im2col blow-up, no transposes of x) ----
    xp = jnp.pad(x, ((0, 0), (0, 0), (padding,) * 2, (padding,) * 2,
                     (padding,) * 2))
    xf = xp.reshape(N, Cin, L)
    if extra:
        xf = jnp.pad(xf, ((0, 0), (0, 0), (0, extra)))
    xf = xf.astype(compute_dtype)

    # One (Cout, Cin) weight slice per tap, same tap order as tap_offsets.
    wt = (weight.transpose(2, 3, 4, 0, 1)
                .reshape(T, Cout, Cin).astype(compute_dtype))

    # Validity mask over the P virtual output columns.
    pidx = jnp.arange(P, dtype=jnp.int32)
    zf = pidx // HW
    rem = pidx % HW
    yf = rem // Wp
    xc = rem % Wp
    valid = ((zf % stride == 0)
             & (yf % stride == 0) & (yf // stride < Ho)
             & (xc % stride == 0) & (xc // stride < Wo))
    mask = valid.astype(jnp.float32).reshape(1, P)

    # ---- Pallas kernel 1: fused conv + partial BN stats (grid over N) ----
    # TODO(synk): for very large volumes, additionally tile the depth axis
    # (with halo) so the per-step x / y blocks stay well under VMEM limits.
    kern1 = functools.partial(_conv_stats_kernel, tap_offsets=tap_offsets,
                              n_out_cols=P)
    y, psum, pssq = pl.pallas_call(
        kern1,
        out_shape=(jax.ShapeDtypeStruct((N, Cout, P), jnp.float32),
                   jax.ShapeDtypeStruct((N, Cout, 1), jnp.float32),
                   jax.ShapeDtypeStruct((N, Cout, 1), jnp.float32)),
        grid_spec=pltpu.PrefetchScalarGridSpec(
            num_scalar_prefetch=0,
            grid=(N,),
            in_specs=[
                pl.BlockSpec((None, Cin, Lpad), lambda n: (n, 0, 0)),
                pl.BlockSpec((T, Cout, Cin), lambda n: (0, 0, 0)),
                pl.BlockSpec((1, P), lambda n: (0, 0)),
            ],
            out_specs=(
                pl.BlockSpec((None, Cout, P), lambda n: (n, 0, 0)),
                pl.BlockSpec((None, Cout, 1), lambda n: (n, 0, 0)),
                pl.BlockSpec((None, Cout, 1), lambda n: (n, 0, 0)),
            ),
        ),
        compiler_params=pltpu.CompilerParams(
            dimension_semantics=("parallel",)),
    )(xf, wt, mask)

    # ---- tiny XLA epilogue: fold batch stats + affine into scale / shift ----
    m_valid = float(N * Do * Ho * Wo)
    tot = jnp.sum(psum[:, :, 0], axis=0)                   # (Cout,)
    tot2 = jnp.sum(pssq[:, :, 0], axis=0)
    mean = tot / m_valid
    # TODO(synk): E[x^2]-E[x]^2 in f32 loses precision for |mean| >> std;
    # switch to a shifted / Welford accumulation if that regime matters.
    var = jnp.maximum(tot2 / m_valid - mean * mean, 0.0)
    gamma_eff = jnp.abs(gamma.astype(jnp.float32)) + eps
    scale = gamma_eff * lax.rsqrt(var + eps)
    shift = beta.astype(jnp.float32) - mean * scale
    scale2 = scale.reshape(Cout, 1)
    shift2 = shift.reshape(Cout, 1)

    # ---- Pallas kernel 2: tiled normalize + leaky_relu ----
    if P <= col_tile:
        tp = P                                   # full lane extent (allowed)
    else:
        tp = (col_tile // 128) * 128             # lane tile, multiple of 128
    n_col_tiles = pl.cdiv(P, tp)
    z = pl.pallas_call(
        functools.partial(_bn_act_kernel, slope=slope),
        out_shape=jax.ShapeDtypeStruct((N, Cout, P), jnp.float32),
        grid_spec=pltpu.PrefetchScalarGridSpec(
            num_scalar_prefetch=0,
            grid=(N, n_col_tiles),
            in_specs=[
                pl.BlockSpec((None, Cout, tp), lambda n, j: (n, 0, j)),
                pl.BlockSpec((Cout, 1), lambda n, j: (0, 0)),
                pl.BlockSpec((Cout, 1), lambda n, j: (0, 0)),
            ],
            out_specs=pl.BlockSpec((None, Cout, tp), lambda n, j: (n, 0, j)),
        ),
        compiler_params=pltpu.CompilerParams(
            dimension_semantics=("parallel", "parallel")),
    )(y, scale2, shift2)

    # ---- crop the padded/garbage columns back to NCDHW ----
    # TODO(synk): this is one output-sized XLA strided slice; it cannot be
    # folded into the normalize kernel's out_spec because the valid columns are
    # not a contiguous block of the lane-dense layout.
    z5 = z.reshape(N, Cout, Dv, Hp, Wp)
    out = z5[:, :,
             0:(Do - 1) * stride + 1:stride,
             0:(Ho - 1) * stride + 1:stride,
             0:(Wo - 1) * stride + 1:stride]
    return out


# ----------------------------------------------------------------------------
# Pure-JAX reference (same numerics: bf16 conv operands, f32 accum / BN math)
# ----------------------------------------------------------------------------
def reference(x, weight, bias, gamma, beta, *, stride, padding, dilation,
              eps=1e-5, slope=0.01, compute_dtype=jnp.bfloat16):
    Cout = weight.shape[0]
    y = lax.conv_general_dilated(
        x.astype(compute_dtype), weight.astype(compute_dtype),
        window_strides=(stride,) * 3,
        padding=[(padding, padding)] * 3,
        rhs_dilation=(dilation,) * 3,
        dimension_numbers=("NCDHW", "OIDHW", "NCDHW"),
        preferred_element_type=jnp.float32,
    ) + bias.reshape(1, Cout, 1, 1, 1)
    mean = y.mean(axis=(0, 2, 3, 4), keepdims=True)
    var = y.var(axis=(0, 2, 3, 4), keepdims=True)          # biased
    xn = (y - mean) * lax.rsqrt(var + eps)
    z = xn * (jnp.abs(gamma).reshape(1, Cout, 1, 1, 1) + eps) \
        + beta.reshape(1, Cout, 1, 1, 1)
    return jnp.where(z >= 0, z, slope * z)


if __name__ == "__main__":
    key = jax.random.PRNGKey(0)
    k1, k2, k3, k4, k5 = jax.random.split(key, 5)

    # BasicConvBNS3d(in_planes=4, out_planes=8, kernel_size=3, stride=1, padding=1)
    N, Cin, Cout, ksz = 2, 4, 8, 3
    D = H = W = 8
    stride, padding, dilation = 1, 1, 1

    x = jax.random.normal(k1, (N, Cin, D, H, W), dtype=jnp.float32)
    fan_in = Cin * ksz * ksz * ksz
    weight = jax.random.normal(k2, (Cout, Cin, ksz, ksz, ksz),
                               dtype=jnp.float32) / jnp.sqrt(fan_in)
    bias = 0.1 * jax.random.normal(k3, (Cout,), dtype=jnp.float32)
    gamma = 1.0 + 0.1 * jax.random.normal(k4, (Cout,), dtype=jnp.float32)
    beta = 0.1 * jax.random.normal(k5, (Cout,), dtype=jnp.float32)

    fn = jax.jit(lambda a, w, b, g, bt: basic_conv_bns3d(
        a, w, b, g, bt, stride=stride, padding=padding, dilation=dilation))
    out = jax.block_until_ready(fn(x, weight, bias, gamma, beta))

    ref = reference(x, weight, bias, gamma, beta,
                    stride=stride, padding=padding, dilation=dilation)
    assert out.shape == ref.shape == (N, Cout, D, H, W), out.shape
    max_err = float(jnp.max(jnp.abs(out - ref)))
    assert jnp.allclose(out, ref, atol=2e-3, rtol=2e-3), max_err

    print("KERNEL_OK")
</pallas_src>

<mosaic_0001>
module attributes {stable_mosaic.version = 11 : i64} {
  func.func @_bn_act_kernel(%arg0: i32, %arg1: i32, %arg2: memref<1x8x800xf32, #tpu.memory_space<vmem>>, %arg3: memref<8x1xf32, #tpu.memory_space<vmem>>, %arg4: memref<8x1xf32, #tpu.memory_space<vmem>>, %arg5: memref<1x8x800xf32, #tpu.memory_space<vmem>>) attributes {dimension_semantics = [#tpu.dimension_semantics<parallel>, #tpu.dimension_semantics<parallel>], iteration_bounds = array<i64: 2, 1>, scalar_prefetch = 0 : i64, scratch_operands = 0 : i64, tpu.core_type = #tpu.core_type<tc>, window_params = [{transform_indices = @transform_0, window_bounds = array<i64: 1, 8, 800>}, {pipeline_mode = #tpu.pipeline_mode<synchronous>, transform_indices = @transform_1, window_bounds = array<i64: 8, 1>}, {pipeline_mode = #tpu.pipeline_mode<synchronous>, transform_indices = @transform_2, window_bounds = array<i64: 8, 1>}, {transform_indices = @transform_3, window_bounds = array<i64: 1, 8, 800>}]} {
    %c0 = arith.constant 0 : index
    %c0_0 = arith.constant 0 : index
    %c0_1 = arith.constant 0 : index
    %0 = vector.load %arg2[%c0, %c0_0, %c0_1] : memref<1x8x800xf32, #tpu.memory_space<vmem>>, vector<1x8x800xf32>
    %1 = vector.shape_cast %0 : vector<1x8x800xf32> to vector<8x800xf32>
    %c0_2 = arith.constant 0 : index
    %c0_3 = arith.constant 0 : index
    %2 = vector.load %arg3[%c0_2, %c0_3] : memref<8x1xf32, #tpu.memory_space<vmem>>, vector<8x1xf32>
    %3 = vector.broadcast %2 : vector<8x1xf32> to vector<8x800xf32>
    %4 = arith.mulf %1, %3 : vector<8x800xf32>
    %c0_4 = arith.constant 0 : index
    %c0_5 = arith.constant 0 : index
    %5 = vector.load %arg4[%c0_4, %c0_5] : memref<8x1xf32, #tpu.memory_space<vmem>>, vector<8x1xf32>
    %6 = vector.broadcast %5 : vector<8x1xf32> to vector<8x800xf32>
    %7 = arith.addf %4, %6 : vector<8x800xf32>
    %cst = arith.constant 0.000000e+00 : f32
    %8 = vector.broadcast %cst : f32 to vector<8x800xf32>
    %9 = arith.cmpf oge, %7, %8 : vector<8x800xf32>
    %cst_6 = arith.constant 0.00999999977 : f32
    %10 = vector.broadcast %cst_6 : f32 to vector<8x800xf32>
    %11 = arith.mulf %10, %7 : vector<8x800xf32>
    %12 = arith.select %9, %7, %11 : vector<8x800xi1>, vector<8x800xf32>
    %c0_7 = arith.constant 0 : index
    %c0_8 = arith.constant 0 : index
    %c0_9 = arith.constant 0 : index
    %13 = vector.load %arg5[%c0_7, %c0_8, %c0_9] : memref<1x8x800xf32, #tpu.memory_space<vmem>>, vector<1x8x800xf32>
    %14 = vector.shape_cast %13 : vector<1x8x800xf32> to vector<8x800xf32>
    %15 = vector.shape_cast %12 : vector<8x800xf32> to vector<1x8x800xf32>
    tpu.vector_store %arg5[%c0_7, %c0_8, %c0_9], %15 {strides = array<i32>} : memref<1x8x800xf32, #tpu.memory_space<vmem>>, vector<1x8x800xf32>,
    return
  }
  func.func @transform_0(%arg0: i32, %arg1: i32) -> (i32, i32, i32) {
    %c0_i32 = arith.constant 0 : i32
    %c0_i32_0 = arith.constant 0 : i32
    return %arg0, %c0_i32, %arg1 : i32, i32, i32
  }
  func.func @transform_1(%arg0: i32, %arg1: i32) -> (i32, i32) {
    %c0_i32 = arith.constant 0 : i32
    %c0_i32_0 = arith.constant 0 : i32
    %c0_i32_1 = arith.constant 0 : i32
    return %c0_i32, %c0_i32_0 : i32, i32
  }
  func.func @transform_2(%arg0: i32, %arg1: i32) -> (i32, i32) {
    %c0_i32 = arith.constant 0 : i32
    %c0_i32_0 = arith.constant 0 : i32
    %c0_i32_1 = arith.constant 0 : i32
    return %c0_i32, %c0_i32_0 : i32, i32
  }
  func.func @transform_3(%arg0: i32, %arg1: i32) -> (i32, i32, i32) {
    %c0_i32 = arith.constant 0 : i32
    %c0_i32_0 = arith.constant 0 : i32
    return %arg0, %c0_i32, %arg1 : i32, i32, i32
  }
}

module attributes {stable_mosaic.version = 11 : i64} {
  func.func @_conv_stats_kernel(%arg0: i32, %arg1: memref<1x4x1022xbf16, #tpu.memory_space<vmem>>, %arg2: memref<27x8x4xbf16, #tpu.memory_space<vmem>>, %arg3: memref<1x800xf32, #tpu.memory_space<vmem>>, %arg4: memref<1x8x800xf32, #tpu.memory_space<vmem>>, %arg5: memref<1x8x1xf32, #tpu.memory_space<vmem>>, %arg6: memref<1x8x1xf32, #tpu.memory_space<vmem>>) attributes {dimension_semantics = [#tpu.dimension_semantics<parallel>], iteration_bounds = array<i64: 2>, scalar_prefetch = 0 : i64, scratch_operands = 0 : i64, tpu.core_type = #tpu.core_type<tc>, window_params = [{transform_indices = @transform_0, window_bounds = array<i64: 1, 4, 1022>}, {pipeline_mode = #tpu.pipeline_mode<synchronous>, transform_indices = @transform_1, window_bounds = array<i64: 27, 8, 4>}, {pipeline_mode = #tpu.pipeline_mode<synchronous>, transform_indices = @transform_2, window_bounds = array<i64: 1, 800>}, {transform_indices = @transform_3, window_bounds = array<i64: 1, 8, 800>}, {transform_indices = @transform_4, window_bounds = array<i64: 1, 8, 1>}, {transform_indices = @transform_5, window_bounds = array<i64: 1, 8, 1>}]} {
    %cst = arith.constant 0.000000e+00 : f32
    %0 = vector.broadcast %cst : f32 to vector<8x800xf32>
    %c0 = arith.constant 0 : index
    %c0_0 = arith.constant 0 : index
    %c0_1 = arith.constant 0 : index
    %1 = vector.load %arg1[%c0, %c0_0, %c0_1] : memref<1x4x1022xbf16, #tpu.memory_space<vmem>>, vector<1x4x800xbf16>
    %2 = vector.shape_cast %1 : vector<1x4x800xbf16> to vector<4x800xbf16>
    %c0_2 = arith.constant 0 : index
    %c0_3 = arith.constant 0 : index
    %c0_4 = arith.constant 0 : index
    %3 = vector.load %arg2[%c0_2, %c0_3, %c0_4] : memref<27x8x4xbf16, #tpu.memory_space<vmem>>, vector<1x8x4xbf16>
    %4 = vector.shape_cast %3 : vector<1x8x4xbf16> to vector<8x4xbf16>
    %cst_5 = arith.constant dense<0.000000e+00> : vector<8x800xf32>
    %5 = tpu.matmul %4, %2, %cst_5 {dimension_numbers = #tpu.dot_dimension_numbers<[1], [0], [0], [1], [0, 0, 1, 1], [], []>} : vector<8x4xbf16>, vector<4x800xbf16>, vector<8x800xf32> -> vector<8x800xf32>
    %6 = arith.addf %0, %5 : vector<8x800xf32>
    %c0_6 = arith.constant 0 : index
    %c0_7 = arith.constant 0 : index
    %c1 = arith.constant 1 : index
    %7 = vector.load %arg1[%c0_6, %c0_7, %c1] : memref<1x4x1022xbf16, #tpu.memory_space<vmem>>, vector<1x4x800xbf16>
    %8 = vector.shape_cast %7 : vector<1x4x800xbf16> to vector<4x800xbf16>
    %c1_8 = arith.constant 1 : index
    %c0_9 = arith.constant 0 : index
    %c0_10 = arith.constant 0 : index
    %9 = vector.load %arg2[%c1_8, %c0_9, %c0_10] : memref<27x8x4xbf16, #tpu.memory_space<vmem>>, vector<1x8x4xbf16>
    %10 = vector.shape_cast %9 : vector<1x8x4xbf16> to vector<8x4xbf16>
    %cst_11 = arith.constant dense<0.000000e+00> : vector<8x800xf32>
    %11 = tpu.matmul %10, %8, %cst_11 {dimension_numbers = #tpu.dot_dimension_numbers<[1], [0], [0], [1], [0, 0, 1, 1], [], []>} : vector<8x4xbf16>, vector<4x800xbf16>, vector<8x800xf32> -> vector<8x800xf32>
    %12 = arith.addf %6, %11 : vector<8x800xf32>
    %c0_12 = arith.constant 0 : index
    %c0_13 = arith.constant 0 : index
    %c2 = arith.constant 2 : index
    %13 = vector.load %arg1[%c0_12, %c0_13, %c2] : memref<1x4x1022xbf16, #tpu.memory_space<vmem>>, vector<1x4x800xbf16>
    %14 = vector.shape_cast %13 : vector<1x4x800xbf16> to vector<4x800xbf16>
    %c2_14 = arith.constant 2 : index
    %c0_15 = arith.constant 0 : index
    %c0_16 = arith.constant 0 : index
    %15 = vector.load %arg2[%c2_14, %c0_15, %c0_16] : memref<27x8x4xbf16, #tpu.memory_space<vmem>>, vector<1x8x4xbf16>
    %16 = vector.shape_cast %15 : vector<1x8x4xbf16> to vector<8x4xbf16>
    %cst_17 = arith.constant dense<0.000000e+00> : vector<8x800xf32>
    %17 = tpu.matmul %16, %14, %cst_17 {dimension_numbers = #tpu.dot_dimension_numbers<[1], [0], [0], [1], [0, 0, 1, 1], [], []>} : vector<8x4xbf16>, vector<4x800xbf16>, vector<8x800xf32> -> vector<8x800xf32>
    %18 = arith.addf %12, %17 : vector<8x800xf32>
    %c0_18 = arith.constant 0 : index
    %c0_19 = arith.constant 0 : index
    %c10 = arith.constant 10 : index
    %19 = vector.load %arg1[%c0_18, %c0_19, %c10] : memref<1x4x1022xbf16, #tpu.memory_space<vmem>>, vector<1x4x800xbf16>
    %20 = vector.shape_cast %19 : vector<1x4x800xbf16> to vector<4x800xbf16>
    %c3 = arith.constant 3 : index
    %c0_20 = arith.constant 0 : index
    %c0_21 = arith.constant 0 : index
    %21 = vector.load %arg2[%c3, %c0_20, %c0_21] : memref<27x8x4xbf16, #tpu.memory_space<vmem>>, vector<1x8x4xbf16>
    %22 = vector.shape_cast %21 : vector<1x8x4xbf16> to vector<8x4xbf16>
    %cst_22 = arith.constant dense<0.000000e+00> : vector<8x800xf32>
    %23 = tpu.matmul %22, %20, %cst_22 {dimension_numbers = #tpu.dot_dimension_numbers<[1], [0], [0], [1], [0, 0, 1, 1], [], []>} : vector<8x4xbf16>, vector<4x800xbf16>, vector<8x800xf32> -> vector<8x800xf32>
    %24 = arith.addf %18, %23 : vector<8x800xf32>
    %c0_23 = arith.constant 0 : index
    %c0_24 = arith.constant 0 : index
    %c11 = arith.constant 11 : index
    %25 = vector.load %arg1[%c0_23, %c0_24, %c11] : memref<1x4x1022xbf16, #tpu.memory_space<vmem>>, vector<1x4x800xbf16>
    %26 = vector.shape_cast %25 : vector<1x4x800xbf16> to vector<4x800xbf16>
    %c4 = arith.constant 4 : index
    %c0_25 = arith.constant 0 : index
    %c0_26 = arith.constant 0 : index
    %27 = vector.load %arg2[%c4, %c0_25, %c0_26] : memref<27x8x4xbf16, #tpu.memory_space<vmem>>, vector<1x8x4xbf16>
    %28 = vector.shape_cast %27 : vector<1x8x4xbf16> to vector<8x4xbf16>
    %cst_27 = arith.constant dense<0.000000e+00> : vector<8x800xf32>
    %29 = tpu.matmul %28, %26, %cst_27 {dimension_numbers = #tpu.dot_dimension_numbers<[1], [0], [0], [1], [0, 0, 1, 1], [], []>} : vector<8x4xbf16>, vector<4x800xbf16>, vector<8x800xf32> -> vector<8x800xf32>
    %30 = arith.addf %24, %29 : vector<8x800xf32>
    %c0_28 = arith.constant 0 : index
    %c0_29 = arith.constant 0 : index
    %c12 = arith.constant 12 : index
    %31 = vector.load %arg1[%c0_28, %c0_29, %c12] : memref<1x4x1022xbf16, #tpu.memory_space<vmem>>, vector<1x4x800xbf16>
    %32 = vector.shape_cast %31 : vector<1x4x800xbf16> to vector<4x800xbf16>
    %c5 = arith.constant 5 : index
    %c0_30 = arith.constant 0 : index
    %c0_31 = arith.constant 0 : index
    %33 = vector.load %arg2[%c5, %c0_30, %c0_31] : memref<27x8x4xbf16, #tpu.memory_space<vmem>>, vector<1x8x4xbf16>
    %34 = vector.shape_cast %33 : vector<1x8x4xbf16> to vector<8x4xbf16>
    %cst_32 = arith.constant dense<0.000000e+00> : vector<8x800xf32>
    %35 = tpu.matmul %34, %32, %cst_32 {dimension_numbers = #tpu.dot_dimension_numbers<[1], [0], [0], [1], [0, 0, 1, 1], [], []>} : vector<8x4xbf16>, vector<4x800xbf16>, vector<8x800xf32> -> vector<8x800xf32>
    %36 = arith.addf %30, %35 : vector<8x800xf32>
    %c0_33 = arith.constant 0 : index
    %c0_34 = arith.constant 0 : index
    %c20 = arith.constant 20 : index
    %37 = vector.load %arg1[%c0_33, %c0_34, %c20] : memref<1x4x1022xbf16, #tpu.memory_space<vmem>>, vector<1x4x800xbf16>
    %38 = vector.shape_cast %37 : vector<1x4x800xbf16> to vector<4x800xbf16>
    %c6 = arith.constant 6 : index
    %c0_35 = arith.constant 0 : index
    %c0_36 = arith.constant 0 : index
    %39 = vector.load %arg2[%c6, %c0_35, %c0_36] : memref<27x8x4xbf16, #tpu.memory_space<vmem>>, vector<1x8x4xbf16>
    %40 = vector.shape_cast %39 : vector<1x8x4xbf16> to vector<8x4xbf16>
    %cst_37 = arith.constant dense<0.000000e+00> : vector<8x800xf32>
    %41 = tpu.matmul %40, %38, %cst_37 {dimension_numbers = #tpu.dot_dimension_numbers<[1], [0], [0], [1], [0, 0, 1, 1], [], []>} : vector<8x4xbf16>, vector<4x800xbf16>, vector<8x800xf32> -> vector<8x800xf32>
    %42 = arith.addf %36, %41 : vector<8x800xf32>
    %c0_38 = arith.constant 0 : index
    %c0_39 = arith.constant 0 : index
    %c21 = arith.constant 21 : index
    %43 = vector.load %arg1[%c0_38, %c0_39, %c21] : memref<1x4x1022xbf16, #tpu.memory_space<vmem>>, vector<1x4x800xbf16>
    %44 = vector.shape_cast %43 : vector<1x4x800xbf16> to vector<4x800xbf16>
    %c7 = arith.constant 7 : index
    %c0_40 = arith.constant 0 : index
    %c0_41 = arith.constant 0 : index
    %45 = vector.load %arg2[%c7, %c0_40, %c0_41] : memref<27x8x4xbf16, #tpu.memory_space<vmem>>, vector<1x8x4xbf16>
    %46 = vector.shape_cast %45 : vector<1x8x4xbf16> to vector<8x4xbf16>
    %cst_42 = arith.constant dense<0.000000e+00> : vector<8x800xf32>
    %47 = tpu.matmul %46, %44, %cst_42 {dimension_numbers = #tpu.dot_dimension_numbers<[1], [0], [0], [1], [0, 0, 1, 1], [], []>} : vector<8x4xbf16>, vector<4x800xbf16>, vector<8x800xf32> -> vector<8x800xf32>
    %48 = arith.addf %42, %47 : vector<8x800xf32>
    %c0_43 = arith.constant 0 : index
    %c0_44 = arith.constant 0 : index
    %c22 = arith.constant 22 : index
    %49 = vector.load %arg1[%c0_43, %c0_44, %c22] : memref<1x4x1022xbf16, #tpu.memory_space<vmem>>, vector<1x4x800xbf16>
    %50 = vector.shape_cast %49 : vector<1x4x800xbf16> to vector<4x800xbf16>
    %c8 = arith.constant 8 : index
    %c0_45 = arith.constant 0 : index
    %c0_46 = arith.constant 0 : index
    %51 = vector.load %arg2[%c8, %c0_45, %c0_46] : memref<27x8x4xbf16, #tpu.memory_space<vmem>>, vector<1x8x4xbf16>
    %52 = vector.shape_cast %51 : vector<1x8x4xbf16> to vector<8x4xbf16>
    %cst_47 = arith.constant dense<0.000000e+00> : vector<8x800xf32>
    %53 = tpu.matmul %52, %50, %cst_47 {dimension_numbers = #tpu.dot_dimension_numbers<[1], [0], [0], [1], [0, 0, 1, 1], [], []>} : vector<8x4xbf16>, vector<4x800xbf16>, vector<8x800xf32> -> vector<8x800xf32>
    %54 = arith.addf %48, %53 : vector<8x800xf32>
    %c0_48 = arith.constant 0 : index
    %c0_49 = arith.constant 0 : index
    %c100 = arith.constant 100 : index
    %55 = vector.load %arg1[%c0_48, %c0_49, %c100] : memref<1x4x1022xbf16, #tpu.memory_space<vmem>>, vector<1x4x800xbf16>
    %56 = vector.shape_cast %55 : vector<1x4x800xbf16> to vector<4x800xbf16>
    %c9 = arith.constant 9 : index
    %c0_50 = arith.constant 0 : index
    %c0_51 = arith.constant 0 : index
    %57 = vector.load %arg2[%c9, %c0_50, %c0_51] : memref<27x8x4xbf16, #tpu.memory_space<vmem>>, vector<1x8x4xbf16>
    %58 = vector.shape_cast %57 : vector<1x8x4xbf16> to vector<8x4xbf16>
    %cst_52 = arith.constant dense<0.000000e+00> : vector<8x800xf32>
    %59 = tpu.matmul %58, %56, %cst_52 {dimension_numbers = #tpu.dot_dimension_numbers<[1], [0], [0], [1], [0, 0, 1, 1], [], []>} : vector<8x4xbf16>, vector<4x800xbf16>, vector<8x800xf32> -> vector<8x800xf32>
    %60 = arith.addf %54, %59 : vector<8x800xf32>
    %c0_53 = arith.constant 0 : index
    %c0_54 = arith.constant 0 : index
    %c101 = arith.constant 101 : index
    %61 = vector.load %arg1[%c0_53, %c0_54, %c101] : memref<1x4x1022xbf16, #tpu.memory_space<vmem>>, vector<1x4x800xbf16>
    %62 = vector.shape_cast %61 : vector<1x4x800xbf16> to vector<4x800xbf16>
    %c10_55 = arith.constant 10 : index
    %c0_56 = arith.constant 0 : index
    %c0_57 = arith.constant 0 : index
    %63 = vector.load %arg2[%c10_55, %c0_56, %c0_57] : memref<27x8x4xbf16, #tpu.memory_space<vmem>>, vector<1x8x4xbf16>
    %64 = vector.shape_cast %63 : vector<1x8x4xbf16> to vector<8x4xbf16>
    %cst_58 = arith.constant dense<0.000000e+00> : vector<8x800xf32>
    %65 = tpu.matmul %64, %62, %cst_58 {dimension_numbers = #tpu.dot_dimension_numbers<[1], [0], [0], [1], [0, 0, 1, 1], [], []>} : vector<8x4xbf16>, vector<4x800xbf16>, vector<8x800xf32> -> vector<8x800xf32>
    %66 = arith.addf %60, %65 : vector<8x800xf32>
    %c0_59 = arith.constant 0 : index
    %c0_60 = arith.constant 0 : index
    %c102 = arith.constant 102 : index
    %67 = vector.load %arg1[%c0_59, %c0_60, %c102] : memref<1x4x1022xbf16, #tpu.memory_space<vmem>>, vector<1x4x800xbf16>
    %68 = vector.shape_cast %67 : vector<1x4x800xbf16> to vector<4x800xbf16>
    %c11_61 = arith.constant 11 : index
    %c0_62 = arith.constant 0 : index
    %c0_63 = arith.constant 0 : index
    %69 = vector.load %arg2[%c11_61, %c0_62, %c0_63] : memref<27x8x4xbf16, #tpu.memory_space<vmem>>, vector<1x8x4xbf16>
    %70 = vector.shape_cast %69 : vector<1x8x4xbf16> to vector<8x4xbf16>
    %cst_64 = arith.constant dense<0.000000e+00> : vector<8x800xf32>
    %71 = tpu.matmul %70, %68, %cst_64 {dimension_numbers = #tpu.dot_dimension_numbers<[1], [0], [0], [1], [0, 0, 1, 1], [], []>} : vector<8x4xbf16>, vector<4x800xbf16>, vector<8x800xf32> -> vector<8x800xf32>
    %72 = arith.addf %66, %71 : vector<8x800xf32>
    %c0_65 = arith.constant 0 : index
    %c0_66 = arith.constant 0 : index
    %c110 = arith.constant 110 : index
    %73 = vector.load %arg1[%c0_65, %c0_66, %c110] : memref<1x4x1022xbf16, #tpu.memory_space<vmem>>, vector<1x4x800xbf16>
    %74 = vector.shape_cast %73 : vector<1x4x800xbf16> to vector<4x800xbf16>
    %c12_67 = arith.constant 12 : index
    %c0_68 = arith.constant 0 : index
    %c0_69 = arith.constant 0 : index
    %75 = vector.load %arg2[%c12_67, %c0_68, %c0_69] : memref<27x8x4xbf16, #tpu.memory_space<vmem>>, vector<1x8x4xbf16>
    %76 = vector.shape_cast %75 : vector<1x8x4xbf16> to vector<8x4xbf16>
    %cst_70 = arith.constant dense<0.000000e+00> : vector<8x800xf32>
    %77 = tpu.matmul %76, %74, %cst_70 {dimension_numbers = #tpu.dot_dimension_numbers<[1], [0], [0], [1], [0, 0, 1, 1], [], []>} : vector<8x4xbf16>, vector<4x800xbf16>, vector<8x800xf32> -> vector<8x800xf32>
    %78 = arith.addf %72, %77 : vector<8x800xf32>
    %c0_71 = arith.constant 0 : index
    %c0_72 = arith.constant 0 : index
    %c111 = arith.constant 111 : index
    %79 = vector.load %arg1[%c0_71, %c0_72, %c111] : memref<1x4x1022xbf16, #tpu.memory_space<vmem>>, vector<1x4x800xbf16>
    %80 = vector.shape_cast %79 : vector<1x4x800xbf16> to vector<4x800xbf16>
    %c13 = arith.constant 13 : index
    %c0_73 = arith.constant 0 : index
    %c0_74 = arith.constant 0 : index
    %81 = vector.load %arg2[%c13, %c0_73, %c0_74] : memref<27x8x4xbf16, #tpu.memory_space<vmem>>, vector<1x8x4xbf16>
    %82 = vector.shape_cast %81 : vector<1x8x4xbf16> to vector<8x4xbf16>
    %cst_75 = arith.constant dense<0.000000e+00> : vector<8x800xf32>
    %83 = tpu.matmul %82, %80, %cst_75 {dimension_numbers = #tpu.dot_dimension_numbers<[1], [0], [0], [1], [0, 0, 1, 1], [], []>} : vector<8x4xbf16>, vector<4x800xbf16>, vector<8x800xf32> -> vector<8x800xf32>
    %84 = arith.addf %78, %83 : vector<8x800xf32>
    %c0_76 = arith.constant 0 : index
    %c0_77 = arith.constant 0 : index
    %c112 = arith.constant 112 : index
    %85 = vector.load %arg1[%c0_76, %c0_77, %c112] : memref<1x4x1022xbf16, #tpu.memory_space<vmem>>, vector<1x4x800xbf16>
    %86 = vector.shape_cast %85 : vector<1x4x800xbf16> to vector<4x800xbf16>
    %c14 = arith.constant 14 : index
    %c0_78 = arith.constant 0 : index
    %c0_79 = arith.constant 0 : index
    %87 = vector.load %arg2[%c14, %c0_78, %c0_79] : memref<27x8x4xbf16, #tpu.memory_space<vmem>>, vector<1x8x4xbf16>
    %88 = vector.shape_cast %87 : vector<1x8x4xbf16> to vector<8x4xbf16>
    %cst_80 = arith.constant dense<0.000000e+00> : vector<8x800xf32>
    %89 = tpu.matmul %88, %86, %cst_80 {dimension_numbers = #tpu.dot_dimension_numbers<[1], [0], [0], [1], [0, 0, 1, 1], [], []>} : vector<8x4xbf16>, vector<4x800xbf16>, vector<8x800xf32> -> vector<8x800xf32>
    %90 = arith.addf %84, %89 : vector<8x800xf32>
    %c0_81 = arith.constant 0 : index
    %c0_82 = arith.constant 0 : index
    %c120 = arith.constant 120 : index
    %91 = vector.load %arg1[%c0_81, %c0_82, %c120] : memref<1x4x1022xbf16, #tpu.memory_space<vmem>>, vector<1x4x800xbf16>
    %92 = vector.shape_cast %91 : vector<1x4x800xbf16> to vector<4x800xbf16>
    %c15 = arith.constant 15 : index
    %c0_83 = arith.constant 0 : index
    %c0_84 = arith.constant 0 : index
    %93 = vector.load %arg2[%c15, %c0_83, %c0_84] : memref<27x8x4xbf16, #tpu.memory_space<vmem>>, vector<1x8x4xbf16>
    %94 = vector.shape_cast %93 : vector<1x8x4xbf16> to vector<8x4xbf16>
    %cst_85 = arith.constant dense<0.000000e+00> : vector<8x800xf32>
    %95 = tpu.matmul %94, %92, %cst_85 {dimension_numbers = #tpu.dot_dimension_numbers<[1], [0], [0], [1], [0, 0, 1, 1], [], []>} : vector<8x4xbf16>, vector<4x800xbf16>, vector<8x800xf32> -> vector<8x800xf32>
    %96 = arith.addf %90, %95 : vector<8x800xf32>
    %c0_86 = arith.constant 0 : index
    %c0_87 = arith.constant 0 : index
    %c121 = arith.constant 121 : index
    %97 = vector.load %arg1[%c0_86, %c0_87, %c121] : memref<1x4x1022xbf16, #tpu.memory_space<vmem>>, vector<1x4x800xbf16>
    %98 = vector.shape_cast %97 : vector<1x4x800xbf16> to vector<4x800xbf16>
    %c16 = arith.constant 16 : index
    %c0_88 = arith.constant 0 : index
    %c0_89 = arith.constant 0 : index
    %99 = vector.load %arg2[%c16, %c0_88, %c0_89] : memref<27x8x4xbf16, #tpu.memory_space<vmem>>, vector<1x8x4xbf16>
    %100 = vector.shape_cast %99 : vector<1x8x4xbf16> to vector<8x4xbf16>
    %cst_90 = arith.constant dense<0.000000e+00> : vector<8x800xf32>
    %101 = tpu.matmul %100, %98, %cst_90 {dimension_numbers = #tpu.dot_dimension_numbers<[1], [0], [0], [1], [0, 0, 1, 1], [], []>} : vector<8x4xbf16>, vector<4x800xbf16>, vector<8x800xf32> -> vector<8x800xf32>
    %102 = arith.addf %96, %101 : vector<8x800xf32>
    %c0_91 = arith.constant 0 : index
    %c0_92 = arith.constant 0 : index
    %c122 = arith.constant 122 : index
    %103 = vector.load %arg1[%c0_91, %c0_92, %c122] : memref<1x4x1022xbf16, #tpu.memory_space<vmem>>, vector<1x4x800xbf16>
    %104 = vector.shape_cast %103 : vector<1x4x800xbf16> to vector<4x800xbf16>
    %c17 = arith.constant 17 : index
    %c0_93 = arith.constant 0 : index
    %c0_94 = arith.constant 0 : index
    %105 = vector.load %arg2[%c17, %c0_93, %c0_94] : memref<27x8x4xbf16, #tpu.memory_space<vmem>>, vector<1x8x4xbf16>
    %106 = vector.shape_cast %105 : vector<1x8x4xbf16> to vector<8x4xbf16>
    %cst_95 = arith.constant dense<0.000000e+00> : vector<8x800xf32>
    %107 = tpu.matmul %106, %104, %cst_95 {dimension_numbers = #tpu.dot_dimension_numbers<[1], [0], [0], [1], [0, 0, 1, 1], [], []>} : vector<8x4xbf16>, vector<4x800xbf16>, vector<8x800xf32> -> vector<8x800xf32>
    %108 = arith.addf %102, %107 : vector<8x800xf32>
    %c0_96 = arith.constant 0 : index
    %c0_97 = arith.constant 0 : index
    %c200 = arith.constant 200 : index
    %109 = vector.load %arg1[%c0_96, %c0_97, %c200] : memref<1x4x1022xbf16, #tpu.memory_space<vmem>>, vector<1x4x800xbf16>
    %110 = vector.shape_cast %109 : vector<1x4x800xbf16> to vector<4x800xbf16>
    %c18 = arith.constant 18 : index
    %c0_98 = arith.constant 0 : index
    %c0_99 = arith.constant 0 : index
    %111 = vector.load %arg2[%c18, %c0_98, %c0_99] : memref<27x8x4xbf16, #tpu.memory_space<vmem>>, vector<1x8x4xbf16>
    %112 = vector.shape_cast %111 : vector<1x8x4xbf16> to vector<8x4xbf16>
    %cst_100 = arith.constant dense<0.000000e+00> : vector<8x800xf32>
    %113 = tpu.matmul %112, %110, %cst_100 {dimension_numbers = #tpu.dot_dimension_numbers<[1], [0], [0], [1], [0, 0, 1, 1], [], []>} : vector<8x4xbf16>, vector<4x800xbf16>, vector<8x800xf32> -> vector<8x800xf32>
    %114 = arith.addf %108, %113 : vector<8x800xf32>
    %c0_101 = arith.constant 0 : index
    %c0_102 = arith.constant 0 : index
    %c201 = arith.constant 201 : index
    %115 = vector.load %arg1[%c0_101, %c0_102, %c201] : memref<1x4x1022xbf16, #tpu.memory_space<vmem>>, vector<1x4x800xbf16>
    %116 = vector.shape_cast %115 : vector<1x4x800xbf16> to vector<4x800xbf16>
    %c19 = arith.constant 19 : index
    %c0_103 = arith.constant 0 : index
    %c0_104 = arith.constant 0 : index
    %117 = vector.load %arg2[%c19, %c0_103, %c0_104] : memref<27x8x4xbf16, #tpu.memory_space<vmem>>, vector<1x8x4xbf16>
    %118 = vector.shape_cast %117 : vector<1x8x4xbf16> to vector<8x4xbf16>
    %cst_105 = arith.constant dense<0.000000e+00> : vector<8x800xf32>
    %119 = tpu.matmul %118, %116, %cst_105 {dimension_numbers = #tpu.dot_dimension_numbers<[1], [0], [0], [1], [0, 0, 1, 1], [], []>} : vector<8x4xbf16>, vector<4x800xbf16>, vector<8x800xf32> -> vector<8x800xf32>
    %120 = arith.addf %114, %119 : vector<8x800xf32>
    %c0_106 = arith.constant 0 : index
    %c0_107 = arith.constant 0 : index
    %c202 = arith.constant 202 : index
    %121 = vector.load %arg1[%c0_106, %c0_107, %c202] : memref<1x4x1022xbf16, #tpu.memory_space<vmem>>, vector<1x4x800xbf16>
    %122 = vector.shape_cast %121 : vector<1x4x800xbf16> to vector<4x800xbf16>
    %c20_108 = arith.constant 20 : index
    %c0_109 = arith.constant 0 : index
    %c0_110 = arith.constant 0 : index
    %123 = vector.load %arg2[%c20_108, %c0_109, %c0_110] : memref<27x8x4xbf16, #tpu.memory_space<vmem>>, vector<1x8x4xbf16>
    %124 = vector.shape_cast %123 : vector<1x8x4xbf16> to vector<8x4xbf16>
    %cst_111 = arith.constant dense<0.000000e+00> : vector<8x800xf32>
    %125 = tpu.matmul %124, %122, %cst_111 {dimension_numbers = #tpu.dot_dimension_numbers<[1], [0], [0], [1], [0, 0, 1, 1], [], []>} : vector<8x4xbf16>, vector<4x800xbf16>, vector<8x800xf32> -> vector<8x800xf32>
    %126 = arith.addf %120, %125 : vector<8x800xf32>
    %c0_112 = arith.constant 0 : index
    %c0_113 = arith.constant 0 : index
    %c210 = arith.constant 210 : index
    %127 = vector.load %arg1[%c0_112, %c0_113, %c210] : memref<1x4x1022xbf16, #tpu.memory_space<vmem>>, vector<1x4x800xbf16>
    %128 = vector.shape_cast %127 : vector<1x4x800xbf16> to vector<4x800xbf16>
    %c21_114 = arith.constant 21 : index
    %c0_115 = arith.constant 0 : index
    %c0_116 = arith.constant 0 : index
    %129 = vector.load %arg2[%c21_114, %c0_115, %c0_116] : memref<27x8x4xbf16, #tpu.memory_space<vmem>>, vector<1x8x4xbf16>
    %130 = vector.shape_cast %129 : vector<1x8x4xbf16> to vector<8x4xbf16>
    %cst_117 = arith.constant dense<0.000000e+00> : vector<8x800xf32>
    %131 = tpu.matmul %130, %128, %cst_117 {dimension_numbers = #tpu.dot_dimension_numbers<[1], [0], [0], [1], [0, 0, 1, 1], [], []>} : vector<8x4xbf16>, vector<4x800xbf16>, vector<8x800xf32> -> vector<8x800xf32>
    %132 = arith.addf %126, %131 : vector<8x800xf32>
    %c0_118 = arith.constant 0 : index
    %c0_119 = arith.constant 0 : index
    %c211 = arith.constant 211 : index
    %133 = vector.load %arg1[%c0_118, %c0_119, %c211] : memref<1x4x1022xbf16, #tpu.memory_space<vmem>>, vector<1x4x800xbf16>
    %134 = vector.shape_cast %133 : vector<1x4x800xbf16> to vector<4x800xbf16>
    %c22_120 = arith.constant 22 : index
    %c0_121 = arith.constant 0 : index
    %c0_122 = arith.constant 0 : index
    %135 = vector.load %arg2[%c22_120, %c0_121, %c0_122] : memref<27x8x4xbf16, #tpu.memory_space<vmem>>, vector<1x8x4xbf16>
    %136 = vector.shape_cast %135 : vector<1x8x4xbf16> to vector<8x4xbf16>
    %cst_123 = arith.constant dense<0.000000e+00> : vector<8x800xf32>
    %137 = tpu.matmul %136, %134, %cst_123 {dimension_numbers = #tpu.dot_dimension_numbers<[1], [0], [0], [1], [0, 0, 1, 1], [], []>} : vector<8x4xbf16>, vector<4x800xbf16>, vector<8x800xf32> -> vector<8x800xf32>
    %138 = arith.addf %132, %137 : vector<8x800xf32>
    %c0_124 = arith.constant 0 : index
    %c0_125 = arith.constant 0 : index
    %c212 = arith.constant 212 : index
    %139 = vector.load %arg1[%c0_124, %c0_125, %c212] : memref<1x4x1022xbf16, #tpu.memory_space<vmem>>, vector<1x4x800xbf16>
    %140 = vector.shape_cast %139 : vector<1x4x800xbf16> to vector<4x800xbf16>
    %c23 = arith.constant 23 : index
    %c0_126 = arith.constant 0 : index
    %c0_127 = arith.constant 0 : index
    %141 = vector.load %arg2[%c23, %c0_126, %c0_127] : memref<27x8x4xbf16, #tpu.memory_space<vmem>>, vector<1x8x4xbf16>
    %142 = vector.shape_cast %141 : vector<1x8x4xbf16> to vector<8x4xbf16>
    %cst_128 = arith.constant dense<0.000000e+00> : vector<8x800xf32>
    %143 = tpu.matmul %142, %140, %cst_128 {dimension_numbers = #tpu.dot_dimension_numbers<[1], [0], [0], [1], [0, 0, 1, 1], [], []>} : vector<8x4xbf16>, vector<4x800xbf16>, vector<8x800xf32> -> vector<8x800xf32>
    %144 = arith.addf %138, %143 : vector<8x800xf32>
    %c0_129 = arith.constant 0 : index
    %c0_130 = arith.constant 0 : index
    %c220 = arith.constant 220 : index
    %145 = vector.load %arg1[%c0_129, %c0_130, %c220] : memref<1x4x1022xbf16, #tpu.memory_space<vmem>>, vector<1x4x800xbf16>
    %146 = vector.shape_cast %145 : vector<1x4x800xbf16> to vector<4x800xbf16>
    %c24 = arith.constant 24 : index
    %c0_131 = arith.constant 0 : index
    %c0_132 = arith.constant 0 : index
    %147 = vector.load %arg2[%c24, %c0_131, %c0_132] : memref<27x8x4xbf16, #tpu.memory_space<vmem>>, vector<1x8x4xbf16>
    %148 = vector.shape_cast %147 : vector<1x8x4xbf16> to vector<8x4xbf16>
    %cst_133 = arith.constant dense<0.000000e+00> : vector<8x800xf32>
    %149 = tpu.matmul %148, %146, %cst_133 {dimension_numbers = #tpu.dot_dimension_numbers<[1], [0], [0], [1], [0, 0, 1, 1], [], []>} : vector<8x4xbf16>, vector<4x800xbf16>, vector<8x800xf32> -> vector<8x800xf32>
    %150 = arith.addf %144, %149 : vector<8x800xf32>
    %c0_134 = arith.constant 0 : index
    %c0_135 = arith.constant 0 : index
    %c221 = arith.constant 221 : index
    %151 = vector.load %arg1[%c0_134, %c0_135, %c221] : memref<1x4x1022xbf16, #tpu.memory_space<vmem>>, vector<1x4x800xbf16>
    %152 = vector.shape_cast %151 : vector<1x4x800xbf16> to vector<4x800xbf16>
    %c25 = arith.constant 25 : index
    %c0_136 = arith.constant 0 : index
    %c0_137 = arith.constant 0 : index
    %153 = vector.load %arg2[%c25, %c0_136, %c0_137] : memref<27x8x4xbf16, #tpu.memory_space<vmem>>, vector<1x8x4xbf16>
    %154 = vector.shape_cast %153 : vector<1x8x4xbf16> to vector<8x4xbf16>
    %cst_138 = arith.constant dense<0.000000e+00> : vector<8x800xf32>
    %155 = tpu.matmul %154, %152, %cst_138 {dimension_numbers = #tpu.dot_dimension_numbers<[1], [0], [0], [1], [0, 0, 1, 1], [], []>} : vector<8x4xbf16>, vector<4x800xbf16>, vector<8x800xf32> -> vector<8x800xf32>
    %156 = arith.addf %150, %155 : vector<8x800xf32>
    %c0_139 = arith.constant 0 : index
    %c0_140 = arith.constant 0 : index
    %c222 = arith.constant 222 : index
    %157 = vector.load %arg1[%c0_139, %c0_140, %c222] : memref<1x4x1022xbf16, #tpu.memory_space<vmem>>, vector<1x4x800xbf16>
    %158 = vector.shape_cast %157 : vector<1x4x800xbf16> to vector<4x800xbf16>
    %c26 = arith.constant 26 : index
    %c0_141 = arith.constant 0 : index
    %c0_142 = arith.constant 0 : index
    %159 = vector.load %arg2[%c26, %c0_141, %c0_142] : memref<27x8x4xbf16, #tpu.memory_space<vmem>>, vector<1x8x4xbf16>
    %160 = vector.shape_cast %159 : vector<1x8x4xbf16> to vector<8x4xbf16>
    %cst_143 = arith.constant dense<0.000000e+00> : vector<8x800xf32>
    %161 = tpu.matmul %160, %158, %cst_143 {dimension_numbers = #tpu.dot_dimension_numbers<[1], [0], [0], [1], [0, 0, 1, 1], [], []>} : vector<8x4xbf16>, vector<4x800xbf16>, vector<8x800xf32> -> vector<8x800xf32>
    %162 = arith.addf %156, %161 : vector<8x800xf32>
    %c0_144 = arith.constant 0 : index
    %c0_145 = arith.constant 0 : index
    %c0_146 = arith.constant 0 : index
    %163 = vector.load %arg4[%c0_144, %c0_145, %c0_146] : memref<1x8x800xf32, #tpu.memory_space<vmem>>, vector<1x8x800xf32>
    %164 = vector.shape_cast %163 : vector<1x8x800xf32> to vector<8x800xf32>
    %165 = vector.shape_cast %162 : vector<8x800xf32> to vector<1x8x800xf32>
    tpu.vector_store %arg4[%c0_144, %c0_145, %c0_146], %165 {strides = array<i32>} : memref<1x8x800xf32, #tpu.memory_space<vmem>>, vector<1x8x800xf32>,
    %c0_147 = arith.constant 0 : index
    %c0_148 = arith.constant 0 : index
    %166 = vector.load %arg3[%c0_147, %c0_148] : memref<1x800xf32, #tpu.memory_space<vmem>>, vector<1x800xf32>
    %167 = vector.broadcast %166 : vector<1x800xf32> to vector<8x800xf32>
    %168 = arith.mulf %162, %167 : vector<8x800xf32>
    %cst_149 = arith.constant dense<0.000000e+00> : vector<8xf32>
    %169 = vector.multi_reduction <add>, %168, %cst_149 [1] : vector<8x800xf32> to vector<8xf32>
    %170 = vector.shape_cast %169 : vector<8xf32> to vector<8x1xf32>
    %c0_150 = arith.constant 0 : index
    %c0_151 = arith.constant 0 : index
    %c0_152 = arith.constant 0 : index
    %171 = vector.load %arg5[%c0_150, %c0_151, %c0_152] : memref<1x8x1xf32, #tpu.memory_space<vmem>>, vector<1x8x1xf32>
    %172 = vector.shape_cast %171 : vector<1x8x1xf32> to vector<8x1xf32>
    %173 = vector.shape_cast %170 : vector<8x1xf32> to vector<1x8x1xf32>
    tpu.vector_store %arg5[%c0_150, %c0_151, %c0_152], %173 {strides = array<i32>} : memref<1x8x1xf32, #tpu.memory_space<vmem>>, vector<1x8x1xf32>,
    %174 = arith.mulf %168, %162 : vector<8x800xf32>
    %cst_153 = arith.constant dense<0.000000e+00> : vector<8xf32>
    %175 = vector.multi_reduction <add>, %174, %cst_153 [1] : vector<8x800xf32> to vector<8xf32>
    %176 = vector.shape_cast %175 : vector<8xf32> to vector<8x1xf32>
    %c0_154 = arith.constant 0 : index
    %c0_155 = arith.constant 0 : index
    %c0_156 = arith.constant 0 : index
    %177 = vector.load %arg6[%c0_154, %c0_155, %c0_156] : memref<1x8x1xf32, #tpu.memory_space<vmem>>, vector<1x8x1xf32>
    %178 = vector.shape_cast %177 : vector<1x8x1xf32> to vector<8x1xf32>
    %179 = vector.shape_cast %176 : vector<8x1xf32> to vector<1x8x1xf32>
    tpu.vector_store %arg6[%c0_154, %c0_155, %c0_156], %179 {strides = array<i32>} : memref<1x8x1xf32, #tpu.memory_space<vmem>>, vector<1x8x1xf32>,
    return
  }
  func.func @transform_0(%arg0: i32) -> (i32, i32, i32) {
    %c0_i32 = arith.constant 0 : i32
    %c0_i32_0 = arith.constant 0 : i32
    %c0_i32_1 = arith.constant 0 : i32
    return %arg0, %c0_i32, %c0_i32_0 : i32, i32, i32
  }
  func.func @transform_1(%arg0: i32) -> (i32, i32, i32) {
    %c0_i32 = arith.constant 0 : i32
    %c0_i32_0 = arith.constant 0 : i32
    %c0_i32_1 = arith.constant 0 : i32
    %c0_i32_2 = arith.constant 0 : i32
    return %c0_i32, %c0_i32_0, %c0_i32_1 : i32, i32, i32
  }
  func.func @transform_2(%arg0: i32) -> (i32, i32) {
    %c0_i32 = arith.constant 0 : i32
    %c0_i32_0 = arith.constant 0 : i32
    %c0_i32_1 = arith.constant 0 : i32
    return %c0_i32, %c0_i32_0 : i32, i32
  }
  func.func @transform_3(%arg0: i32) -> (i32, i32, i32) {
    %c0_i32 = arith.constant 0 : i32
    %c0_i32_0 = arith.constant 0 : i32
    %c0_i32_1 = arith.constant 0 : i32
    return %arg0, %c0_i32, %c0_i32_0 : i32, i32, i32
  }
  func.func @transform_4(%arg0: i32) -> (i32, i32, i32) {
    %c0_i32 = arith.constant 0 : i32
    %c0_i32_0 = arith.constant 0 : i32
    %c0_i32_1 = arith.constant 0 : i32
    return %arg0, %c0_i32, %c0_i32_0 : i32, i32, i32
  }
  func.func @transform_5(%arg0: i32) -> (i32, i32, i32) {
    %c0_i32 = arith.constant 0 : i32
    %c0_i32_0 = arith.constant 0 : i32
    %c0_i32_1 = arith.constant 0 : i32
    return %arg0, %c0_i32, %c0_i32_0 : i32, i32, i32
  }
}

</mosaic_0001>

<bundles_post_ra>
// kernel: _lambda_.3
= control target key start
LH: loop header
LB: loop body
LE: loop exit
PB: predicated region body
PF: predicated region fallthrough
CT: control target
= control target key end

     0   :  { %s440_s12 = smov 0   ;;  %s442_s13 = smov 0   ;;  %s483_s0 = inlined_call_operand.vmem [shape: f32[2,8,800], index: 0, kind: input, shape index: {}]   ;;  %s484_s1 = inlined_call_operand.vmem [shape: f32[8,1], index: 1, kind: input, shape index: {}]   ;;  %s485_s2 = inlined_call_operand.vmem [shape: f32[8,1], index: 2, kind: input, shape index: {}]   ;;  %s486_s3 = inlined_call_operand.vmem [shape: f32[2,8,800], index: 3, kind: output, shape index: {}]  }
   0x1   :  { %s444_s14 = smov 0  }
   0x2 LB: > { %s25_s15 = sadd.s32 1, %s413_s13  ;;  %p363_p0 = scmp.ge.s32.totalorder %s417_s14, 1  ;;  %s417_s14 = sphi %s444_s14, %s13_s14   ;;  %s413_s13 = sphi %s442_s13, %s488_s13   ;;  %s409_s12 = sphi %s440_s12, %s487_s12  }
   0x3   : > { %p27_p1 = scmp.ge.s32.totalorder %s25_s15, 2  ;;  %p158_p2 = scmp.lt.s32.totalorder %s417_s14, 3 }
   0x5   : > { %s490_s15 = smov (%p27_p1, %s25_s15), 0  ;;  %p159_p3 = pnand %p363_p0, %p158_p2 }
   0x6   : > { %p191_p4 = scmp.lt.s32.totalorder (!%p159_p3), %s409_s12, 1 }
   0x7   : > { %162 = sbr.rel (%p159_p3) target bundleno = 150 (0x96), region = 32 }
   0xc   : > { %v217_v0 = vld [vmem:[%s484_s1] sm:$0xff]  ;;  %v419_v1 = vmov 0   ;;  %s492_s12 = smov (!%p191_p4, %s409_s12), 1  ;;  %vm270_vm7 = vcmask 261120  }
   0xd   : > { %394 = vset.pattern.permute.xlu0 %v419_v1  ;;  %v230_v2 = vld [vmem:[%s485_s2] sm:$0xff]  ;;  %s368_s20 = smul.u32 56, %s492_s12 }
   0xe   : > { %220 = vperm.xlu0 %394, %v217_v0  }
   0xf   : > { %s198_s23 = scalar_lea.vmem %s483_s0, %s368_s20  ;;  %s208_s26 = scalar_lea.vmem %s486_s3, %s368_s20 }
  0x10   : > { %v210_v4 = vld [vmem:[%s198_s23] sm:$0xff]  ;;  %v211_v5 = vld [vmem:[%s198_s23 + $0x8] sm:$0xff]  ;;  %v212_v6 = vld [vmem:[%s198_s23 + $0x10] sm:$0xff] }
  0x11   : > { %v213_v7 = vld [vmem:[%s198_s23 + $0x18] sm:$0xff]  ;;  %v214_v8 = vld [vmem:[%s198_s23 + $0x20] sm:$0xff]  ;;  %v215_v9 = vld [vmem:[%s198_s23 + $0x28] sm:$0xff] }
  0x12   : > { %v216_v10 = vld [vmem:[%s198_s23 + $0x30] sm:$0xff] }
  0x16   : > { %233 = vperm.xlu0 %394, %v230_v2  }
  0x80   : > { %v221_v3 = vpop.permute.xlu0 %220 }
  0x81   : > { %v223_v11 = vmul.f32 %v221_v3, %v210_v4  ;;  %v224_v12 = vmul.f32 %v221_v3, %v211_v5  ;;  %v225_v13 = vmul.f32 %v221_v3, %v212_v6  ;;  %v226_v14 = vmul.f32 %v221_v3, %v213_v7 }
  0x82   : > { %v227_v16 = vmul.f32 %v221_v3, %v214_v8  ;;  %v228_v17 = vmul.f32 %v221_v3, %v215_v9  ;;  %v229_v18 = vmul.f32 %v221_v3, %v216_v10 }
  0x88   : > { %v234_v15 = vpop.permute.xlu0 %233 }
  0x89   : > { %v236_v19 = vadd.f32 %v234_v15, %v223_v11  ;;  %v237_v20 = vadd.f32 %v234_v15, %v224_v12  ;;  %v238_v21 = vadd.f32 %v234_v15, %v225_v13  ;;  %v239_v22 = vadd.f32 %v234_v15, %v226_v14 }
  0x8a   : > { %v240_v23 = vadd.f32 %v234_v15, %v227_v16  ;;  %v241_v24 = vadd.f32 %v234_v15, %v228_v17  ;;  %v242_v25 = vadd.f32 %v234_v15, %v229_v18 }
  0x8b   : > { %vm243_vm0 = vcmp.ge.f32.partialorder %v236_v19, 0.0  ;;  %vm244_vm1 = vcmp.ge.f32.partialorder %v237_v20, 0.0  ;;  %vm245_vm2 = vcmp.ge.f32.partialorder %v238_v21, 0.0  ;;  %vm246_vm3 = vcmp.ge.f32.partialorder %v239_v22, 0.0 }
  0x8c   : > { %vm247_vm4 = vcmp.ge.f32.partialorder %v240_v23, 0.0  ;;  %vm248_vm5 = vcmp.ge.f32.partialorder %v241_v24, 0.0  ;;  %v250_v26 = vmul.f32 0.01, %v236_v19  ;;  %v251_v27 = vmul.f32 0.01, %v237_v20 }
  0x8d   : > { %v252_v28 = vmul.f32 0.01, %v238_v21  ;;  %v253_v29 = vmul.f32 0.01, %v239_v22  ;;  %v254_v30 = vmul.f32 0.01, %v240_v23 }
  0x8e   : > { %v255_v31 = vmul.f32 0.01, %v241_v24  ;;  %v256_v32 = vmul.f32 0.01, %v242_v25  ;;  %v257_v33 = vsel %vm243_vm0, %v236_v19, %v250_v26  ;;  %vm249_vm6 = vcmp.ge.f32.partialorder %v242_v25, 0.0 }
  0x8f   : > { %v258_v34 = vsel %vm244_vm1, %v237_v20, %v251_v27  ;;  %v259_v35 = vsel %vm245_vm2, %v238_v21, %v252_v28  ;;  %v260_v36 = vsel %vm246_vm3, %v239_v22, %v253_v29  ;;  %264 = vst [vmem:[%s208_s26] sm:$0xff] %v257_v33  ;;  %v261_v37 = vsel %vm247_vm4, %v240_v23, %v254_v30 }
  0x90   : > { %265 = vst [vmem:[%s208_s26 + $0x8] sm:$0xff] %v258_v34  ;;  %v262_v38 = vsel %vm248_vm5, %v241_v24, %v255_v31  ;;  %v263_v39 = vsel %vm249_vm6, %v242_v25, %v256_v32 }
  0x91   : > { %266 = vst [vmem:[%s208_s26 + $0x10] sm:$0xff] %v259_v35 }
  0x92   : > { %267 = vst [vmem:[%s208_s26 + $0x18] sm:$0xff] %v260_v36 }
  0x93   : > { %268 = vst [vmem:[%s208_s26 + $0x20] sm:$0xff] %v261_v37 }
  0x94   : > { %269 = vst [vmem:[%s208_s26 + $0x28] sm:$0xff] %v262_v38 }
  0x95   : > { %271 = vst.msk [vmem:[%s208_s26 + $0x30] sm:$0xff] %vm270_vm7, %v263_v39 }
  0x96 PF: > { %s13_s14 = sadd.s32 1, %s417_s14   ;;  %s487_s12 = smov %s413_s13 }
  0x97   : > { %p10_p5 = scmp.ge.s32.totalorder %s13_s14, 4   ;;  %s488_s13 = smov %s490_s15 }
  0x99   :  { %12 = sbr.rel (!%p10_p5) target bundleno = 2 (0x2), region = 62 }

// kernel: _lambda_.2
= control target key start
LH: loop header
LB: loop body
LE: loop exit
PB: predicated region body
PF: predicated region fallthrough
CT: control target
= control target key end

     0   :  { %s5225_s18 = smov 0   ;;  %s6676_s0 = inlined_call_operand.vmem [shape: bf16[2,4,1022], index: 0, kind: input, shape index: {}]   ;;  %s6677_s1 = inlined_call_operand.vmem [shape: bf16[27,8,4], index: 1, kind: input, shape index: {}]   ;;  %s6678_s2 = inlined_call_operand.vmem [shape: f32[1,800], index: 2, kind: input, shape index: {}]   ;;  %s6679_s3 = inlined_call_operand.vmem [shape: f32[2,8,800], index: 3, kind: output, shape index: {0}]   ;;  %s6680_s4 = inlined_call_operand.vmem [shape: f32[2,8,1], index: 4, kind: output, shape index: {1}]   ;;  %s6681_s5 = inlined_call_operand.vmem [shape: f32[2,8,1], index: 5, kind: output, shape index: {2}]  }
   0x1 LB: > { %s4898_s19 = sadd.s32 4294967295, %s5167_s18   ;;  %p4902_p0 = scmp.ge.s32.totalorder %s5167_s18, 1  ;;  %s5167_s18 = sphi %s5225_s18, %s16_s18  }
   0x2   : > { %p192_p1 = scmp.lt.s32.totalorder %s5167_s18, 3 }
   0x4   : > { %p193_p2 = pnand %p4902_p0, %p192_p1 }
   0x5   : > { %p228_p3 = scmp.lt.s32.totalorder (!%p193_p2), %s4898_s19, 1  ;;  %s5169_s24 = smov (!%p193_p2), 127  }
   0x6   : > { %196 = sbr.rel (%p193_p2) target bundleno = 1155 (0x483), region = 32  ;;  %s5170_s25 = smov (!%p193_p2), 126  }
   0x7   : > { %s5171_s26 = smov (!%p193_p2), 118   ;;  %s5172_s27 = smov (!%p193_p2), 117  }
   0x8   : > { %s5173_s28 = smov (!%p193_p2), 116   ;;  %s5174_s6 = smov (!%p193_p2), 108  }
   0x9   : > { %s5175_s9 = smov (!%p193_p2), 107   ;;  %s5176_s12 = smov (!%p193_p2), 106  }
   0xa   : > { %s5177_s15 = smov (!%p193_p2), 28   ;;  %s5178_s16 = smov (!%p193_p2), 27  }
   0xb   : > { %s6683_s19 = smov (!%p228_p3, %s4898_s19), 1  ;;  %vm285_vm0 = vcmask 1039360   ;;  %vm296_vm1 = vcmask 1041408   ;;  %vm292_vm2 = vcmask 31744   ;;  %vm564_vm3 = vcmask 1031168   ;;  %s5181_s30 = smov 17  }
   0xc   : > { %s5125_s20 = sshll.u32 %s6683_s19, 4  ;;  %vm730_vm4 = vcmask 965632   ;;  %vm896_vm5 = vcmask 957440   ;;  %vm1062_vm6 = vcmask 949248   ;;  %vm1228_vm7 = vcmask 883712   ;;  %s5182_s8 = smov 16  }
   0xd   : > { %s5239_s23 = scalar_lea.vmem %s6676_s0, %s5125_s20  ;;  %vm1394_vm8 = vcmask 875520   ;;  %vm1560_vm9 = vcmask 867328   ;;  %vm1730_vm10 = vcmask 228352   ;;  %vm1901_vm11 = vcmask 220160   ;;  %s5183_s11 = smov 8  }
   0xe   : > { %v5242_v0 = vld [vmem:[%s5239_s23] sm:$0xff]  ;;  %v248_v1 = vld [vmem:[%s5239_s23 + $0x8] sm:$0x3f]  ;;  %vm2072_vm12 = vcmask 211968   ;;  %s5184_s14 = smov 7   ;;  %vm2243_vm13 = vcmask 146432  }
   0xf   : > { %253 = vst [vmem:[#allocation1] ss:$4 sm:$0xff] %v5242_v0  ;;  %v528_v9 = vld [vmem:[%s5239_s23 + $0x8] sm:$0x3f]  ;;  %s5185_s17 = smov 6   ;;  %vm2414_vm14 = vcmask 138240  }
  0x10   : > { %256 = vst [vmem:[#allocation1 + $0x20] ss:$4 sm:$0xff] %v248_v1  ;;  %v694_v17 = vld [vmem:[%s5239_s23 + $0x8] sm:$0x3f]  ;;  %s5186_s22 = smov 56   ;;  %vm2585_vm15 = vcmask 130048  }
  0x11   : > { %v860_v34 = vld [vmem:[%s5239_s23 + $0x8] sm:$0x3f]  ;;  %s5188_s29 = smov 54   ;;  %s5189_s7 = smov 46  }
  0x12   : > { %v1026_v44 = vld [vmem:[%s5239_s23 + $0x8] sm:$0x3f]  ;;  %s5190_s10 = smov 45   ;;  %s5191_s13 = smov 44  }
  0x13   : > { %s5193_s21 = smov 35   ;;  %s4906_s20 = sshll.u32 %s6683_s19, 3 }
  0x16   : > { %v261_v2 = vld.sshfl [vmem:[#allocation1 + $0x10] sm:$0xff pattern:$0x73625140]  ;;  %v257_v3 = vld.sshfl [vmem:[#allocation1] sm:$0xff pattern:$0x73625140] }
  0x17   : > { %275 = vrot.lane.b32.xlu1 %v261_v2, %s5169_s24  ;;  %271 = vrot.lane.b32.xlu0 %v257_v3, %s5169_s24  ;;  %v263_v4 = vld.sshfl [vmem:[#allocation1 + $0x18] sm:$0xff pattern:$0x73625140]  ;;  %v259_v5 = vld.sshfl [vmem:[#allocation1 + $0x8] sm:$0xff pattern:$0x73625140] }
  0x18   : > { %409 = vst [vmem:[#allocation1] ss:$4 sm:$0xff] %v5242_v0  ;;  %v269_v6 = vld.sshfl [vmem:[#allocation1 + $0x30] sm:$0xff pattern:$0x73625140] }
  0x19   : > { %v265_v7 = vld.sshfl [vmem:[#allocation1 + $0x20] sm:$0xff pattern:$0x73625140]  ;;  %v267_v8 = vld.sshfl [vmem:[#allocation1 + $0x28] sm:$0xff pattern:$0x73625140] }
  0x1a   : > { %279 = vrot.lane.b32.xlu2 %v265_v7, %s5169_s24  ;;  %411 = vst [vmem:[#allocation1 + $0x20] ss:$4 sm:$0xff] %v248_v1  ;;  %v4908_v1 = vld [vmem:[%s6677_s1 + $0x4] sm:$0xf] }
  0x1f   : > { %277 = vrot.lane.b32.xlu1 %v263_v4, %s5169_s24  ;;  %273 = vrot.lane.b32.xlu0 %v259_v5, %s5169_s24  ;;  %v5248_v10 = vld.sshfl [vmem:[#allocation1] sm:$0xff pattern:$0x73625140]  ;;  %v5250_v11 = vld.sshfl [vmem:[#allocation1 + $0x8] sm:$0xff pattern:$0x73625140] }
  0x20   : > { %v5252_v12 = vld.sshfl [vmem:[#allocation1 + $0x10] sm:$0xff pattern:$0x73625140]  ;;  %v5254_v13 = vld.sshfl [vmem:[#allocation1 + $0x18] sm:$0xff pattern:$0x73625140] }
  0x21   : > { %532 = vst [vmem:[#allocation1] ss:$4 sm:$0xff] %v5242_v0  ;;  %v5257_v14 = vld.sshfl [vmem:[#allocation1 + $0x20] sm:$0xff pattern:$0x73625140]  ;;  %v422_v55 = vsel %vm296_vm1, %v5248_v10, 0 }
  0x22   : > { %281 = vrot.lane.b32.xlu2 %v267_v8, %s5169_s24  ;;  %v5259_v15 = vld.sshfl [vmem:[#allocation1 + $0x28] sm:$0xff pattern:$0x73625140]  ;;  %v5261_v16 = vld.sshfl [vmem:[#allocation1 + $0x30] sm:$0xff pattern:$0x73625140] }
  0x23   : > { %535 = vst [vmem:[#allocation1 + $0x20] ss:$4 sm:$0xff] %v528_v9  ;;  %v424_v2 = vsel %vm296_vm1, %v5250_v11, 0  ;;  %v430_v3 = vsel %vm296_vm1, %v5257_v14, 0  ;;  %v426_v10 = vsel %vm296_vm1, %v5252_v12, 0 }
  0x27   : > { %283 = vrot.lane.b32.xlu0 %v269_v6, %s5169_s24  ;;  %v428_v6 = vsel %vm296_vm1, %v5254_v13, 0  ;;  %v1192_v13 = vld [vmem:[%s5239_s23 + $0x8] sm:$0x3f]  ;;  %s5179_s24 = smov 26  }
  0x28   : > { %v536_v18 = vld.sshfl [vmem:[#allocation1] sm:$0xff pattern:$0x73625140]  ;;  %v540_v19 = vld.sshfl [vmem:[#allocation1 + $0x10] sm:$0xff pattern:$0x73625140] }
  0x29   : > { %550 = vrot.lane.b32.xlu1 %v536_v18, %s5170_s25  ;;  %v542_v20 = vld.sshfl [vmem:[#allocation1 + $0x18] sm:$0xff pattern:$0x73625140]  ;;  %v538_v21 = vld.sshfl [vmem:[#allocation1 + $0x8] sm:$0xff pattern:$0x73625140] }
  0x2a   : > { %v546_v22 = vld.sshfl [vmem:[#allocation1 + $0x28] sm:$0xff pattern:$0x73625140]  ;;  %v548_v23 = vld.sshfl [vmem:[#allocation1 + $0x30] sm:$0xff pattern:$0x73625140]  ;;  %552 = vrot.lane.b32.xlu2 %v538_v21, %s5170_s25 }
  0x2b   : > { %698 = vst [vmem:[#allocation1] ss:$4 sm:$0xff] %v5242_v0  ;;  %v544_v24 = vld.sshfl [vmem:[#allocation1 + $0x20] sm:$0xff pattern:$0x73625140] }
  0x2c   : > { %701 = vst [vmem:[#allocation1 + $0x20] ss:$4 sm:$0xff] %v694_v17 }
  0x2f   : > { %554 = vrot.lane.b32.xlu0 %v540_v19, %s5170_s25 }
  0x31   : > { %556 = vrot.lane.b32.xlu1 %v542_v20, %s5170_s25 }
  0x32   : > { %558 = vrot.lane.b32.xlu2 %v544_v24, %s5170_s25  ;;  %v706_v25 = vld.sshfl [vmem:[#allocation1 + $0x10] sm:$0xff pattern:$0x73625140]  ;;  %v704_v26 = vld.sshfl [vmem:[#allocation1 + $0x8] sm:$0xff pattern:$0x73625140] }
  0x33   : > { %v708_v27 = vld.sshfl [vmem:[#allocation1 + $0x18] sm:$0xff pattern:$0x73625140]  ;;  %v702_v28 = vld.sshfl [vmem:[#allocation1] sm:$0xff pattern:$0x73625140] }
  0x34   : > { %864 = vst [vmem:[#allocation1] ss:$4 sm:$0xff] %v5242_v0  ;;  %v710_v29 = vld.sshfl [vmem:[#allocation1 + $0x20] sm:$0xff pattern:$0x73625140] }
  0x35   : > { %v712_v30 = vld.sshfl [vmem:[#allocation1 + $0x28] sm:$0xff pattern:$0x73625140]  ;;  %v714_v31 = vld.sshfl [vmem:[#allocation1 + $0x30] sm:$0xff pattern:$0x73625140] }
  0x36   : > { %867 = vst [vmem:[#allocation1 + $0x20] ss:$4 sm:$0xff] %v860_v34 }
  0x37   : > { %560 = vrot.lane.b32.xlu0 %v546_v22, %s5170_s25  ;;  %v5316_v22 = vld [vmem:[%s6677_s1] sm:$0xf] }
  0x39   : > { %562 = vrot.lane.b32.xlu1 %v548_v23, %s5170_s25  ;;  %v432_v23 = vsel %vm296_vm1, %v5259_v15, 0  ;;  %s5194_s25 = smov 34  }
  0x3a   : > { %718 = vrot.lane.b32.xlu2 %v704_v26, %s5171_s26 }
  0x3b   : > { %v868_v32 = vld.sshfl [vmem:[#allocation1] sm:$0xff pattern:$0x73625140]  ;;  %v870_v33 = vld.sshfl [vmem:[#allocation1 + $0x8] sm:$0xff pattern:$0x73625140] }
  0x3c   : > { %v874_v35 = vld.sshfl [vmem:[#allocation1 + $0x18] sm:$0xff pattern:$0x73625140]  ;;  %v872_v38 = vld.sshfl [vmem:[#allocation1 + $0x10] sm:$0xff pattern:$0x73625140] }
  0x3d   : > { %v876_v36 = vld.sshfl [vmem:[#allocation1 + $0x20] sm:$0xff pattern:$0x73625140]  ;;  %v880_v37 = vld.sshfl [vmem:[#allocation1 + $0x30] sm:$0xff pattern:$0x73625140] }
  0x3e   : > { %1030 = vst [vmem:[#allocation1] ss:$4 sm:$0xff] %v5242_v0  ;;  %v878_v41 = vld.sshfl [vmem:[#allocation1 + $0x28] sm:$0xff pattern:$0x73625140] }
  0x3f   : > { %720 = vrot.lane.b32.xlu0 %v706_v25, %s5171_s26  ;;  %1033 = vst [vmem:[#allocation1 + $0x20] ss:$4 sm:$0xff] %v1026_v44 }
  0x41   : > { %722 = vrot.lane.b32.xlu1 %v708_v27, %s5171_s26 }
  0x42   : > { %716 = vrot.lane.b32.xlu2 %v702_v28, %s5171_s26  ;;  %v434_v28 = vsel %vm296_vm1, %v5261_v16, 0 }
  0x45   : > { %v1034_v39 = vld.sshfl [vmem:[#allocation1] sm:$0xff pattern:$0x73625140]  ;;  %v1038_v40 = vld.sshfl [vmem:[#allocation1 + $0x10] sm:$0xff pattern:$0x73625140] }
  0x46   : > { %v1040_v43 = vld.sshfl [vmem:[#allocation1 + $0x18] sm:$0xff pattern:$0x73625140]  ;;  %v1036_v47 = vld.sshfl [vmem:[#allocation1 + $0x8] sm:$0xff pattern:$0x73625140] }
  0x47   : > { %724 = vrot.lane.b32.xlu0 %v710_v29, %s5171_s26  ;;  %1196 = vst [vmem:[#allocation1] ss:$4 sm:$0xff] %v5242_v0  ;;  %v1044_v50 = vld.sshfl [vmem:[#allocation1 + $0x28] sm:$0xff pattern:$0x73625140] }
  0x48   : > { %v1046_v51 = vld.sshfl [vmem:[#allocation1 + $0x30] sm:$0xff pattern:$0x73625140]  ;;  %v1042_v11 = vld.sshfl [vmem:[#allocation1 + $0x20] sm:$0xff pattern:$0x73625140] }
  0x49   : > { %726 = vrot.lane.b32.xlu1 %v712_v30, %s5171_s26  ;;  %1199 = vst [vmem:[#allocation1 + $0x20] ss:$4 sm:$0xff] %v1192_v13 }
  0x4a   : > { %728 = vrot.lane.b32.xlu2 %v714_v31, %s5171_s26  ;;  %s5187_s26 = smov 55  }
  0x4e   : > { %v1204_v4 = vld.sshfl [vmem:[#allocation1 + $0x10] sm:$0xff pattern:$0x73625140]  ;;  %v1202_v7 = vld.sshfl [vmem:[#allocation1 + $0x8] sm:$0xff pattern:$0x73625140] }
  0x4f   : > { %882 = vrot.lane.b32.xlu0 %v868_v32, %s5172_s27  ;;  %v1206_v25 = vld.sshfl [vmem:[#allocation1 + $0x18] sm:$0xff pattern:$0x73625140]  ;;  %v1200_v15 = vld.sshfl [vmem:[#allocation1] sm:$0xff pattern:$0x73625140] }
  0x50   : > { %v1208_v20 = vld.sshfl [vmem:[#allocation1 + $0x20] sm:$0xff pattern:$0x73625140]  ;;  %v1210_v29 = vld.sshfl [vmem:[#allocation1 + $0x28] sm:$0xff pattern:$0x73625140] }
  0x51   : > { %884 = vrot.lane.b32.xlu1 %v870_v33, %s5172_s27  ;;  %1362 = vst [vmem:[#allocation1] ss:$4 sm:$0xff] %v5242_v0 }
  0x52   : > { %886 = vrot.lane.b32.xlu2 %v872_v38, %s5172_s27 }
  0x57   : > { %888 = vrot.lane.b32.xlu0 %v874_v35, %s5172_s27 }
  0x58   : > { %v1368_v32 = vld.sshfl [vmem:[#allocation1 + $0x8] sm:$0xff pattern:$0x73625140]  ;;  %v1370_v33 = vld.sshfl [vmem:[#allocation1 + $0x10] sm:$0xff pattern:$0x73625140] }
  0x59   : > { %890 = vrot.lane.b32.xlu1 %v876_v36, %s5172_s27  ;;  %v1366_v44 = vld.sshfl [vmem:[#allocation1] sm:$0xff pattern:$0x73625140] }
  0x5a   : > { %892 = vrot.lane.b32.xlu2 %v878_v41, %s5172_s27 }
  0x5f   : > { %894 = vrot.lane.b32.xlu0 %v880_v37, %s5172_s27  ;;  %s5180_s27 = smov 18  }
  0x61   : > { %1048 = vrot.lane.b32.xlu1 %v1034_v39, %s5173_s28  ;;  %v1212_v39 = vld.sshfl [vmem:[#allocation1 + $0x30] sm:$0xff pattern:$0x73625140] }
  0x62   : > { %1050 = vrot.lane.b32.xlu2 %v1036_v47, %s5173_s28 }
  0x67   : > { %1052 = vrot.lane.b32.xlu0 %v1038_v40, %s5173_s28 }
  0x69   : > { %1054 = vrot.lane.b32.xlu1 %v1040_v43, %s5173_s28 }
  0x6a   : > { %1056 = vrot.lane.b32.xlu2 %v1042_v11, %s5173_s28 }
  0x6f   : > { %1058 = vrot.lane.b32.xlu0 %v1044_v50, %s5173_s28 }
  0x71   : > { %1060 = vrot.lane.b32.xlu1 %v1046_v51, %s5173_s28 }
  0x72   : > { %1214 = vrot.lane.b32.xlu2 %v1200_v15, %s5174_s6 }
  0x74   : > { %v280_v42 = vpop.permute.xlu2 %279 }
  0x77   : > { %1216 = vrot.lane.b32.xlu0 %v1202_v7, %s5174_s6 }
  0x79   : > { %1218 = vrot.lane.b32.xlu1 %v1204_v4, %s5174_s6 }
  0x7a   : > { %1220 = vrot.lane.b32.xlu2 %v1206_v25, %s5174_s6 }
  0x7c   : > { %v282_v48 = vpop.permute.xlu2 %281 }
  0x7d   : > { %v290_v49 = vsel %vm285_vm0, %v280_v42, %v282_v48 }
  0x7e   : > { %v310_v54 = vsel %vm296_vm1, %v290_v49, 0 }
  0x7f   : > { %1222 = vrot.lane.b32.xlu0 %v1208_v20, %s5174_s6 }
  0x81   : > { %1224 = vrot.lane.b32.xlu1 %v1210_v29, %s5174_s6 }
  0x82   : > { %1226 = vrot.lane.b32.xlu2 %v1212_v39, %s5174_s6 }
  0x84   : > { %v553_v18 = vpop.permute.xlu2 %552 }
  0x87   : > { %1382 = vrot.lane.b32.xlu0 %v1368_v32, %s5175_s9 }
  0x89   : > { %v276_v45 = vpop.permute.xlu1 %275  ;;  %v272_v46 = vpop.permute.xlu0 %271  ;;  %1384 = vrot.lane.b32.xlu1 %v1370_v33, %s5175_s9 }
  0x8c   : > { %v559_v30 = vpop.permute.xlu2 %558 }
  0x8f   : > { %1380 = vrot.lane.b32.xlu0 %v1366_v44, %s5175_s9 }
  0x91   : > { %v278_v52 = vpop.permute.xlu1 %277  ;;  %v274_v53 = vpop.permute.xlu0 %273 }
  0x92   : > { %v286_v56 = vsel %vm285_vm0, %v272_v46, %v274_v53  ;;  %v287_v57 = vsel %vm285_vm0, %v274_v53, %v276_v45  ;;  %v288_v58 = vsel %vm285_vm0, %v276_v45, %v278_v52  ;;  %v289_v59 = vsel %vm285_vm0, %v278_v52, %v280_v42  ;;  %v1358_v45 = vld [vmem:[%s5239_s23 + $0x8] sm:$0x3f] }
  0x93   : > { %v298_v60 = vsel %vm296_vm1, %v286_v56, 0  ;;  %v301_v61 = vsel %vm296_vm1, %v287_v57, 0  ;;  %v304_v62 = vsel %vm296_vm1, %v288_v58, 0  ;;  %v307_v63 = vsel %vm296_vm1, %v289_v59, 0  ;;  %1365 = vst [vmem:[#allocation1 + $0x20] ss:$4 sm:$0xff] %v1358_v45 }
  0x94   : > { %325 = vmatpush.bf16.msra.mxu0 %v298_v60  ;;  %338 = vmatpush.bf16.msra.mxu1 %v301_v61  ;;  %v719_v41 = vpop.permute.xlu2 %718  ;;  %v5361_v53 = vld [vmem:[%s6677_s1 + $0x8] sm:$0xf]  ;;  %v1372_v59 = vld.sshfl [vmem:[#allocation1 + $0x18] sm:$0xff pattern:$0x73625140] }
  0x95   : > { %351 = vmatpush.bf16.msra.mxu2 %v304_v62  ;;  %364 = vmatpush.bf16.msra.mxu3 %v307_v63  ;;  %1528 = vst [vmem:[#allocation1] ss:$4 sm:$0xff] %v5242_v0 }
  0x96   : > { %1386 = vrot.lane.b32.xlu2 %v1372_v59, %s5175_s9 }
  0x97   : > { %4909 = vmatmul.msk.bf16.vlgmr.msra.gmra.mxu0 %vm292_vm2, %v4908_v1  ;;  %4910 = vmatmul.msk.bf16.vlgmr.msra.gmra.mxu1 %vm292_vm2, %v4908_v1 }
  0x98   : > { %377 = vmatpush.bf16.msrb.mxu0 %v310_v54  ;;  %4911 = vmatmul.msk.bf16.vlgmr.msra.gmra.mxu2 %vm292_vm2, %v4908_v1 }
  0x99   : > { %443 = vmatpush.bf16.msrb.mxu3 %v422_v55  ;;  %v284_v5 = vpop.permute.xlu0 %283 }
  0x9a   : > { %4912 = vmatmul.msk.bf16.vlgmr.msra.gmra.mxu3 %vm292_vm2, %v4908_v1  ;;  %v291_v8 = vsel %vm285_vm0, %v282_v48, %v284_v5  ;;  %v316_v9 = vsel %vm296_vm1, %v284_v5, 0  ;;  %v1374_v47 = vld.sshfl [vmem:[#allocation1 + $0x20] sm:$0xff pattern:$0x73625140]  ;;  %vm2756_vm0 = vcmask 64512  }
  0x9b   : > { %v313_v14 = vsel %vm296_vm1, %v291_v8, 0  ;;  %403 = vmatpush.bf16.msrb.mxu2 %v316_v9  ;;  %v551_v17 = vpop.permute.xlu1 %550  ;;  %1388 = vrot.lane.b32.xlu1 %v1374_v47, %s5175_s9  ;;  %v1378_v58 = vld.sshfl [vmem:[#allocation1 + $0x30] sm:$0xff pattern:$0x73625140] }
  0x9c   : > { %456 = vmatpush.bf16.msra.mxu0 %v424_v2  ;;  %390 = vmatpush.bf16.msrb.mxu1 %v313_v14  ;;  %v565_v19 = vsel %vm564_vm3, %v551_v17, %v553_v18  ;;  %v717_v46 = vpop.permute.xlu2 %716  ;;  %v1532_v63 = vld.sshfl [vmem:[#allocation1] sm:$0xff pattern:$0x73625140]  ;;  %v1538_v11 = vld.sshfl [vmem:[#allocation1 + $0x18] sm:$0xff pattern:$0x73625140] }
  0x9d   : > { %495 = vmatpush.bf16.msra.mxu3 %v430_v3  ;;  %v575_v24 = vsel %vm296_vm1, %v565_v19, 0  ;;  %v731_v50 = vsel %vm730_vm4, %v717_v46, %v719_v41  ;;  %1392 = vrot.lane.b32.xlu0 %v1378_v58, %s5175_s9  ;;  %v1524_v14 = vld [vmem:[%s5239_s23 + $0x8] sm:$0x3f] }
  0x9e   : > { %v741_v55 = vsel %vm296_vm1, %v731_v50, 0  ;;  %v1376_v13 = vld.sshfl [vmem:[#allocation1 + $0x28] sm:$0xff pattern:$0x73625140] }
  0x9f   : > { %482 = vmatpush.bf16.msra.mxu2 %v428_v6  ;;  %1531 = vst [vmem:[#allocation1 + $0x20] ss:$4 sm:$0xff] %v1524_v14  ;;  %1390 = vrot.lane.b32.xlu2 %v1376_v13, %s5175_s9 }
  0xa0   : > { %469 = vmatpush.bf16.msra.mxu1 %v426_v10 }
  0xa1   : > { %v555_v12 = vpop.permute.xlu0 %554 }
  0xa2   : > { %v566_v21 = vsel %vm564_vm3, %v553_v18, %v555_v12 }
  0xa3   : > { %v557_v26 = vpop.permute.xlu1 %556  ;;  %v578_v27 = vsel %vm296_vm1, %v566_v21, 0  ;;  %1546 = vrot.lane.b32.xlu1 %v1532_v63, %s5176_s12 }
  0xa4   : > { %v567_v34 = vsel %vm564_vm3, %v555_v12, %v557_v26  ;;  %v568_v35 = vsel %vm564_vm3, %v557_v26, %v559_v30  ;;  %v729_v62 = vpop.permute.xlu2 %728 }
  0xa5   : > { %v581_v38 = vsel %vm296_vm1, %v567_v34, 0  ;;  %v584_v40 = vsel %vm296_vm1, %v568_v35, 0  ;;  %v759_v7 = vsel %vm296_vm1, %v729_v62, 0 }
  0xa6   : > { %v1542_v19 = vld.sshfl [vmem:[#allocation1 + $0x28] sm:$0xff pattern:$0x73625140]  ;;  %v1544_v20 = vld.sshfl [vmem:[#allocation1 + $0x30] sm:$0xff pattern:$0x73625140] }
  0xa7   : > { %4913 = vmatmul.msk.bf16.vlgmr.msrb.gmra.mxu0 %vm292_vm2, %v4908_v1  ;;  %4914 = vmatmul.msk.bf16.vlgmr.msrb.gmra.mxu1 %vm292_vm2, %v4908_v1 }
  0xa8   : > { %4915 = vmatmul.msk.bf16.vlgmr.msrb.gmra.mxu2 %vm292_vm2, %v4908_v1  ;;  %508 = vmatpush.bf16.msrb.mxu0 %v432_v23  ;;  %v1536_v1 = vld.sshfl [vmem:[#allocation1 + $0x10] sm:$0xff pattern:$0x73625140]  ;;  %v4931_v23 = vld [vmem:[%s6677_s1 + $0xc] sm:$0xf] }
  0xa9   : > { %602 = vmatpush.bf16.msrb.mxu2 %v575_v24  ;;  %521 = vmatpush.bf16.msrb.mxu1 %v434_v28  ;;  %v561_v31 = vpop.permute.xlu0 %560 }
  0xaa   : > { %4916 = vmatmul.msk.bf16.vlgmr.msrb.gmra.mxu3 %vm292_vm2, %v5316_v22  ;;  %v569_v36 = vsel %vm564_vm3, %v559_v30, %v561_v31  ;;  %1550 = vrot.lane.b32.xlu0 %v1536_v1, %s5176_s12  ;;  %v1534_v30 = vld.sshfl [vmem:[#allocation1 + $0x8] sm:$0xff pattern:$0x73625140] }
  0xab   : > { %615 = vmatpush.bf16.msrb.mxu3 %v578_v27  ;;  %v563_v16 = vpop.permute.xlu1 %562  ;;  %v587_v42 = vsel %vm296_vm1, %v569_v36, 0  ;;  %1552 = vrot.lane.b32.xlu1 %v1538_v11, %s5176_s12  ;;  %1694 = vst [vmem:[#allocation1] ss:$4 sm:$0xff] %v5242_v0 }
  0xac   : > { %v570_v37 = vsel %vm564_vm3, %v561_v31, %v563_v16  ;;  %v593_v54 = vsel %vm296_vm1, %v563_v16, 0  ;;  %v887_v17 = vpop.permute.xlu2 %886  ;;  %v1540_v31 = vld.sshfl [vmem:[#allocation1 + $0x20] sm:$0xff pattern:$0x73625140]  ;;  %v5418_v16 = vld [vmem:[%s5239_s23 + $0x8] sm:$0xff]  ;;  %1548 = vrot.lane.b32.xlu2 %v1534_v30, %s5176_s12  ;;  %vm2927_vm3 = vcmask 56320  }
  0xad   : > { %v590_v43 = vsel %vm296_vm1, %v570_v37, 0  ;;  %1697 = vst [vmem:[#allocation1 + $0x20] ss:$4 sm:$0xff] %v5418_v16 }
  0xb1   : > { %v721_v48 = vpop.permute.xlu0 %720 }
  0xb2   : > { %v732_v51 = vsel %vm730_vm4, %v719_v41, %v721_v48  ;;  %1556 = vrot.lane.b32.xlu0 %v1542_v19, %s5176_s12  ;;  %v1700_v33 = vld.sshfl [vmem:[#allocation1 + $0x8] sm:$0xff pattern:$0x73625140]  ;;  %v1704_v34 = vld.sshfl [vmem:[#allocation1 + $0x18] sm:$0xff pattern:$0x73625140] }
  0xb3   : > { %v723_v49 = vpop.permute.xlu1 %722  ;;  %v744_v56 = vsel %vm296_vm1, %v732_v51, 0  ;;  %1558 = vrot.lane.b32.xlu1 %v1544_v20, %s5176_s12  ;;  %v1698_v35 = vld.sshfl [vmem:[#allocation1] sm:$0xff pattern:$0x73625140] }
  0xb4   : > { %v733_v52 = vsel %vm730_vm4, %v721_v48, %v723_v49  ;;  %v893_v28 = vpop.permute.xlu2 %892  ;;  %v1702_v36 = vld.sshfl [vmem:[#allocation1 + $0x10] sm:$0xff pattern:$0x73625140]  ;;  %1554 = vrot.lane.b32.xlu2 %v1540_v31, %s5176_s12  ;;  %v1706_v47 = vld.sshfl [vmem:[#allocation1 + $0x20] sm:$0xff pattern:$0x73625140] }
  0xb5   : > { %v747_v57 = vsel %vm296_vm1, %v733_v52, 0  ;;  %1865 = vst [vmem:[#allocation1] ss:$4 sm:$0xff] %v5242_v0  ;;  %v1708_v48 = vld.sshfl [vmem:[#allocation1 + $0x28] sm:$0xff pattern:$0x73625140] }
  0xb6   : > { %v1712_v1 = vld.sshfl [vmem:[#allocation1 + $0x38] sm:$0xff pattern:$0x73625140]  ;;  %s5126_s12 = smul.u32 56, %s6683_s19 }
  0xb7   : > { %4917 = vmatmul.msk.bf16.vlgmr.msra.gmra.mxu0 %vm292_vm2, %v5316_v22  ;;  %4918 = vmatmul.msk.bf16.vlgmr.msra.gmra.mxu1 %vm292_vm2, %v5316_v22 }
  0xb8   : > { %4919 = vmatmul.msk.bf16.vlgmr.msra.gmra.mxu2 %vm292_vm2, %v5316_v22  ;;  %628 = vmatpush.bf16.msra.mxu0 %v581_v38 }
  0xb9   : > { %641 = vmatpush.bf16.msra.mxu1 %v584_v40  ;;  %654 = vmatpush.bf16.msra.mxu2 %v587_v42  ;;  %v725_v61 = vpop.permute.xlu0 %724 }
  0xba   : > { %4920 = vmatmul.msk.bf16.vlgmr.msra.gmra.mxu3 %vm292_vm2, %v5316_v22  ;;  %v734_v2 = vsel %vm730_vm4, %v723_v49, %v725_v61  ;;  %1716 = vrot.lane.b32.xlu0 %v1700_v33, %s5177_s15 }
  0xbb   : > { %667 = vmatpush.bf16.msra.mxu3 %v590_v43  ;;  %v727_v60 = vpop.permute.xlu1 %726  ;;  %v750_v5 = vsel %vm296_vm1, %v734_v2, 0  ;;  %1718 = vrot.lane.b32.xlu1 %v1702_v36, %s5177_s15 }
  0xbc   : > { %v735_v3 = vsel %vm730_vm4, %v725_v61, %v727_v60  ;;  %v736_v4 = vsel %vm730_vm4, %v727_v60, %v729_v62  ;;  %v1051_v37 = vpop.permute.xlu2 %1050  ;;  %1714 = vrot.lane.b32.xlu2 %v1698_v35, %s5177_s15  ;;  %v1869_v50 = vld.sshfl [vmem:[#allocation1] sm:$0xff pattern:$0x73625140]  ;;  %v1873_v2 = vld.sshfl [vmem:[#allocation1 + $0x10] sm:$0xff pattern:$0x73625140] }
  0xbd   : > { %v753_v6 = vsel %vm296_vm1, %v735_v3, 0  ;;  %v756_v8 = vsel %vm296_vm1, %v736_v4, 0  ;;  %v1875_v3 = vld.sshfl [vmem:[#allocation1 + $0x18] sm:$0xff pattern:$0x73625140]  ;;  %vm3098_vm4 = vcmask 48128  }
  0xc1   : > { %v883_v10 = vpop.permute.xlu0 %882 }
  0xc2   : > { %1722 = vrot.lane.b32.xlu0 %v1706_v47, %s5177_s15 }
  0xc3   : > { %v885_v9 = vpop.permute.xlu1 %884  ;;  %1724 = vrot.lane.b32.xlu1 %v1708_v48, %s5177_s15 }
  0xc4   : > { %v897_v21 = vsel %vm896_vm5, %v883_v10, %v885_v9  ;;  %v1057_v51 = vpop.permute.xlu2 %1056  ;;  %1720 = vrot.lane.b32.xlu2 %v1704_v34, %s5177_s15 }
  0xc5   : > { %v907_v26 = vsel %vm296_vm1, %v897_v21, 0 }
  0xc7   : > { %4921 = vmatmul.msk.bf16.vlgmr.msrb.gmra.mxu0 %vm292_vm2, %v5316_v22  ;;  %4922 = vmatmul.msk.bf16.vlgmr.msrb.gmra.mxu1 %vm292_vm2, %v5316_v22  ;;  %v898_v22 = vsel %vm896_vm5, %v885_v9, %v887_v17 }
  0xc8   : > { %4924 = vmatmul.msk.bf16.vlgmr.msrb.gmra.mxu2 %vm292_vm2, %v5361_v53  ;;  %680 = vmatpush.bf16.msrb.mxu0 %v593_v54  ;;  %v910_v27 = vsel %vm296_vm1, %v898_v22, 0 }
  0xc9   : > { %768 = vmatpush.bf16.msrb.mxu1 %v741_v55  ;;  %781 = vmatpush.bf16.msrb.mxu2 %v744_v56  ;;  %v889_v12 = vpop.permute.xlu0 %888  ;;  %v1871_v55 = vld.sshfl [vmem:[#allocation1 + $0x8] sm:$0xff pattern:$0x73625140]  ;;  %v4939_v56 = vld [vmem:[%s6677_s1 + $0x10] sm:$0xf] }
  0xca   : > { %4925 = vmatmul.msk.bf16.vlgmr.msrb.gmra.mxu3 %vm292_vm2, %v5361_v53  ;;  %v899_v24 = vsel %vm896_vm5, %v887_v17, %v889_v12  ;;  %1885 = vrot.lane.b32.xlu0 %v1869_v50, %s5178_s16  ;;  %2036 = vst [vmem:[#allocation1] ss:$4 sm:$0xff] %v5242_v0  ;;  %v5471_v0 = vld [vmem:[%s6677_s1 + $0x14] sm:$0xf] }
  0xcb   : > { %794 = vmatpush.bf16.msrb.mxu3 %v747_v57  ;;  %v891_v18 = vpop.permute.xlu1 %890  ;;  %v913_v29 = vsel %vm296_vm1, %v899_v24, 0  ;;  %1887 = vrot.lane.b32.xlu1 %v1871_v55, %s5178_s16 }
  0xcc   : > { %v900_v25 = vsel %vm896_vm5, %v889_v12, %v891_v18  ;;  %v901_v39 = vsel %vm896_vm5, %v891_v18, %v893_v28  ;;  %v1215_v4 = vpop.permute.xlu2 %1214 }
  0xcd   : > { %v916_v15 = vsel %vm296_vm1, %v900_v25, 0  ;;  %v919_v42 = vsel %vm296_vm1, %v901_v39, 0 }
  0xd1   : > { %v895_v32 = vpop.permute.xlu0 %894  ;;  %v2044_v33 = vld.sshfl [vmem:[#allocation1 + $0x10] sm:$0xff pattern:$0x73625140] }
  0xd2   : > { %v902_v40 = vsel %vm896_vm5, %v893_v28, %v895_v32  ;;  %v925_v44 = vsel %vm296_vm1, %v895_v32, 0  ;;  %1728 = vrot.lane.b32.xlu0 %v1712_v1, %s5177_s15  ;;  %v5527_v1 = vld [vmem:[%s6677_s1 + $0x18] sm:$0xf]  ;;  %vm3265_vm5 = vcmask 457728  }
  0xd3   : > { %v1049_v38 = vpop.permute.xlu1 %1048  ;;  %v922_v43 = vsel %vm296_vm1, %v902_v40, 0  ;;  %1891 = vrot.lane.b32.xlu1 %v1875_v3, %s5178_s16 }
  0xd4   : > { %v1063_v41 = vsel %vm1062_vm6, %v1049_v38, %v1051_v37  ;;  %v1221_v18 = vpop.permute.xlu2 %1220 }
  0xd5   : > { %v1073_v45 = vsel %vm296_vm1, %v1063_v41, 0 }
  0xd7   : > { %4926 = vmatmul.msk.bf16.vlgmr.msra.gmra.mxu0 %vm292_vm2, %v5361_v53  ;;  %4927 = vmatmul.msk.bf16.vlgmr.msra.gmra.mxu1 %vm292_vm2, %v5361_v53 }
  0xd8   : > { %4928 = vmatmul.msk.bf16.vlgmr.msra.gmra.mxu2 %vm292_vm2, %v5361_v53  ;;  %807 = vmatpush.bf16.msra.mxu0 %v750_v5 }
  0xd9   : > { %820 = vmatpush.bf16.msra.mxu1 %v753_v6  ;;  %833 = vmatpush.bf16.msra.mxu2 %v756_v8  ;;  %v1053_v46 = vpop.permute.xlu0 %1052  ;;  %v1710_v8 = vld.sshfl [vmem:[#allocation1 + $0x30] sm:$0xff pattern:$0x73625140] }
  0xda   : > { %4929 = vmatmul.msk.bf16.vlgmr.msra.gmra.mxu3 %vm292_vm2, %v5361_v53  ;;  %1726 = vrot.lane.b32.xlu2 %v1710_v8, %s5177_s15  ;;  %1868 = vst [vmem:[#allocation1 + $0x20] ss:$4 sm:$0xff] %v5418_v16 }
  0xdb   : > { %846 = vmatpush.bf16.msra.mxu3 %v759_v7  ;;  %v1055_v49 = vpop.permute.xlu1 %1054 }
  0xdc   : > { %v1065_v54 = vsel %vm1062_vm6, %v1053_v46, %v1055_v49  ;;  %v1066_v57 = vsel %vm1062_vm6, %v1055_v49, %v1057_v51  ;;  %v1227_v28 = vpop.permute.xlu2 %1226 }
  0xdd   : > { %v1079_v60 = vsel %vm296_vm1, %v1065_v54, 0  ;;  %v1082_v62 = vsel %vm296_vm1, %v1066_v57, 0 }
  0xe1   : > { %v1059_v52 = vpop.permute.xlu0 %1058  ;;  %v1877_v50 = vld.sshfl [vmem:[#allocation1 + $0x20] sm:$0xff pattern:$0x73625140] }
  0xe2   : > { %v1067_v58 = vsel %vm1062_vm6, %v1057_v51, %v1059_v52  ;;  %1889 = vrot.lane.b32.xlu2 %v1873_v2, %s5178_s16  ;;  %v1257_v2 = vsel %vm296_vm1, %v1227_v28, 0 }
  0xe3   : > { %v1061_v61 = vpop.permute.xlu1 %1060  ;;  %v1085_v63 = vsel %vm296_vm1, %v1067_v58, 0 }
  0xe4   : > { %v1068_v7 = vsel %vm1062_vm6, %v1059_v52, %v1061_v61  ;;  %v1091_v17 = vsel %vm296_vm1, %v1061_v61, 0 }
  0xe5   : > { %v1088_v13 = vsel %vm296_vm1, %v1068_v7, 0 }
  0xe7   : > { %4930 = vmatmul.msk.bf16.vlgmr.msrb.gmra.mxu0 %vm292_vm2, %v5361_v53  ;;  %4932 = vmatmul.msk.bf16.vlgmr.msrb.gmra.mxu1 %vm292_vm2, %v4931_v23  ;;  %v1064_v53 = vsel %vm1062_vm6, %v1051_v37, %v1053_v46  ;;  %vm3431_vm6 = vcmask 449536  }
  0xe8   : > { %4933 = vmatmul.msk.bf16.vlgmr.msrb.gmra.mxu2 %vm292_vm2, %v4931_v23  ;;  %934 = vmatpush.bf16.msrb.mxu0 %v907_v26  ;;  %v1076_v59 = vsel %vm296_vm1, %v1064_v53, 0  ;;  %v1881_v26 = vld.sshfl [vmem:[#allocation1 + $0x30] sm:$0xff pattern:$0x73625140] }
  0xe9   : > { %947 = vmatpush.bf16.msrb.mxu1 %v910_v27  ;;  %960 = vmatpush.bf16.msrb.mxu2 %v913_v29  ;;  %v1217_v6 = vpop.permute.xlu0 %1216  ;;  %v2042_v29 = vld.sshfl [vmem:[#allocation1 + $0x8] sm:$0xff pattern:$0x73625140] }
  0xea   : > { %4934 = vmatmul.msk.bf16.vlgmr.msrb.gmra.mxu3 %vm292_vm2, %v4931_v23  ;;  %v1229_v11 = vsel %vm1228_vm7, %v1215_v4, %v1217_v6  ;;  %1897 = vrot.lane.b32.xlu1 %v1881_v26, %s5178_s16 }
  0xeb   : > { %973 = vmatpush.bf16.msrb.mxu3 %v916_v15  ;;  %v1219_v5 = vpop.permute.xlu1 %1218  ;;  %v1239_v12 = vsel %vm296_vm1, %v1229_v11, 0  ;;  %1893 = vrot.lane.b32.xlu2 %v1877_v50, %s5178_s16 }
  0xec   : > { %v1230_v14 = vsel %vm1228_vm7, %v1217_v6, %v1219_v5  ;;  %v1231_v31 = vsel %vm1228_vm7, %v1219_v5, %v1221_v18 }
  0xed   : > { %v1242_v19 = vsel %vm296_vm1, %v1230_v14, 0  ;;  %v1245_v38 = vsel %vm296_vm1, %v1231_v31, 0 }
  0xf0   : > { %v1387_v53 = vpop.permute.xlu2 %1386 }
  0xf1   : > { %v1223_v20 = vpop.permute.xlu0 %1222 }
  0xf2   : > { %v1232_v32 = vsel %vm1228_vm7, %v1221_v18, %v1223_v20  ;;  %2060 = vrot.lane.b32.xlu1 %v2044_v33, %s5179_s24  ;;  %v5552_v18 = vld [vmem:[%s5239_s23] sm:$0xff] }
  0xf3   : > { %v1225_v27 = vpop.permute.xlu1 %1224  ;;  %v1248_v39 = vsel %vm296_vm1, %v1232_v32, 0 }
  0xf4   : > { %v1233_v36 = vsel %vm1228_vm7, %v1223_v20, %v1225_v27  ;;  %v1234_v37 = vsel %vm1228_vm7, %v1225_v27, %v1227_v28  ;;  %vm3597_vm7 = vcmask 441344  }
  0xf5   : > { %v1251_v41 = vsel %vm296_vm1, %v1233_v36, 0 }
  0xf7   : > { %4935 = vmatmul.msk.bf16.vlgmr.msra.gmra.mxu0 %vm292_vm2, %v4931_v23  ;;  %4936 = vmatmul.msk.bf16.vlgmr.msra.gmra.mxu1 %vm292_vm2, %v4931_v23 }
  0xf8   : > { %4937 = vmatmul.msk.bf16.vlgmr.msra.gmra.mxu2 %vm292_vm2, %v4931_v23  ;;  %986 = vmatpush.bf16.msra.mxu0 %v919_v42  ;;  %v1254_v42 = vsel %vm296_vm1, %v1234_v37, 0 }
  0xf9   : > { %999 = vmatpush.bf16.msra.mxu1 %v922_v43  ;;  %1012 = vmatpush.bf16.msra.mxu2 %v925_v44  ;;  %v1383_v40 = vpop.permute.xlu0 %1382  ;;  %v2040_v43 = vld.sshfl [vmem:[#allocation1] sm:$0xff pattern:$0x73625140]  ;;  %v1883_v44 = vld.sshfl [vmem:[#allocation1 + $0x38] sm:$0xff pattern:$0x73625140] }
  0xfa   : > { %4938 = vmatmul.msk.bf16.vlgmr.msra.gmra.mxu3 %vm292_vm2, %v4931_v23  ;;  %v1879_v23 = vld.sshfl [vmem:[#allocation1 + $0x28] sm:$0xff pattern:$0x73625140]  ;;  %1899 = vrot.lane.b32.xlu2 %v1883_v44, %s5178_s16 }
  0xfb   : > { %1100 = vmatpush.bf16.msra.mxu3 %v1073_v45  ;;  %1895 = vrot.lane.b32.xlu0 %v1879_v23, %s5178_s16  ;;  %2039 = vst [vmem:[#allocation1 + $0x20] ss:$4 sm:$0xff] %v5418_v16  ;;  %v1385_v52 = vpop.permute.xlu1 %1384  ;;  %s5192_s16 = smov 36  }
 0x101   : > { %v1381_v51 = vpop.permute.xlu0 %1380 }
 0x102   : > { %v2048_v61 = vld.sshfl [vmem:[#allocation1 + $0x20] sm:$0xff pattern:$0x73625140]  ;;  %v2050_v4 = vld.sshfl [vmem:[#allocation1 + $0x28] sm:$0xff pattern:$0x73625140] }
 0x103   : > { %2058 = vrot.lane.b32.xlu0 %v2042_v29, %s5179_s24  ;;  %2064 = vrot.lane.b32.xlu1 %v2048_v61, %s5179_s24  ;;  %v2054_v7 = vld.sshfl [vmem:[#allocation1 + $0x38] sm:$0xff pattern:$0x73625140]  ;;  %v2052_v8 = vld.sshfl [vmem:[#allocation1 + $0x30] sm:$0xff pattern:$0x73625140] }
 0x104   : > { %2210 = vst [vmem:[#allocation1 + $0x20] ss:$4 sm:$0xff] %v5418_v16 }
 0x107   : > { %4940 = vmatmul.msk.bf16.vlgmr.msrb.gmra.mxu0 %vm292_vm2, %v4939_v56  ;;  %4941 = vmatmul.msk.bf16.vlgmr.msrb.gmra.mxu1 %vm292_vm2, %v4939_v56 }
 0x108   : > { %4942 = vmatmul.msk.bf16.vlgmr.msrb.gmra.mxu2 %vm292_vm2, %v4939_v56  ;;  %1113 = vmatpush.bf16.msrb.mxu0 %v1076_v59  ;;  %v1396_v59 = vsel %vm1394_vm8, %v1383_v40, %v1385_v52 }
 0x109   : > { %1126 = vmatpush.bf16.msrb.mxu1 %v1079_v60  ;;  %1139 = vmatpush.bf16.msrb.mxu2 %v1082_v62  ;;  %v1397_v60 = vsel %vm1394_vm8, %v1385_v52, %v1387_v53  ;;  %v1408_v5 = vsel %vm296_vm1, %v1396_v59, 0 }
 0x10a   : > { %4943 = vmatmul.msk.bf16.vlgmr.msrb.gmra.mxu3 %vm292_vm2, %v4939_v56  ;;  %v1411_v6 = vsel %vm296_vm1, %v1397_v60, 0 }
 0x10b   : > { %1152 = vmatpush.bf16.msrb.mxu3 %v1085_v63  ;;  %2056 = vrot.lane.b32.xlu0 %v2040_v43, %s5179_s24  ;;  %v2219_v37 = vld.sshfl [vmem:[#allocation1 + $0x20] sm:$0xff pattern:$0x73625140]  ;;  %v2221_v44 = vld.sshfl [vmem:[#allocation1 + $0x28] sm:$0xff pattern:$0x73625140] }
 0x10c   : > { %2070 = vrot.lane.b32.xlu1 %v2054_v7, %s5179_s24 }
 0x10f   : > { %v1393_v20 = vpop.permute.xlu0 %1392 }
 0x113   : > { %2068 = vrot.lane.b32.xlu0 %v2052_v8, %s5179_s24 }
 0x114   : > { %v327_v9 = vpop.f32.mrf.mxu0  ;;  %v5462_v10 = vpop.f32.mrf.mxu1 }
 0x117   : > { %4944 = vmatmul.msk.bf16.vlgmr.msra.gmra.mxu0 %vm292_vm2, %v4939_v56  ;;  %4945 = vmatmul.msk.bf16.vlgmr.msra.gmra.mxu1 %vm292_vm2, %v4939_v56 }
 0x118   : > { %4946 = vmatmul.msk.bf16.vlgmr.msra.gmra.mxu2 %vm292_vm2, %v4939_v56  ;;  %1165 = vmatpush.bf16.msra.mxu0 %v1088_v13  ;;  %v1395_v56 = vsel %vm1394_vm8, %v1381_v51, %v1383_v40 }
 0x119   : > { %1178 = vmatpush.bf16.msra.mxu1 %v1091_v17  ;;  %1266 = vmatpush.bf16.msra.mxu2 %v1239_v12  ;;  %v1405_v3 = vsel %vm296_vm1, %v1395_v56, 0  ;;  %v2046_v17 = vld.sshfl [vmem:[#allocation1 + $0x18] sm:$0xff pattern:$0x73625140]  ;;  %v1391_v12 = vpop.permute.xlu2 %1390 }
 0x11a   : > { %4948 = vmatmul.msk.bf16.vlgmr.msra.gmra.mxu3 %vm292_vm2, %v5471_v0  ;;  %2062 = vrot.lane.b32.xlu2 %v2046_v17, %s5179_s24  ;;  %2207 = vst [vmem:[#allocation1] ss:$4 sm:$0xff] %v5552_v18  ;;  %v1400_v27 = vsel %vm1394_vm8, %v1391_v12, %v1393_v20  ;;  %v4963_v56 = vld [vmem:[%s6677_s1 + $0x1c] sm:$0xf] }
 0x11b   : > { %1279 = vmatpush.bf16.msra.mxu3 %v1242_v19  ;;  %v353_v21 = vpop.f32.mrf.mxu2  ;;  %v1389_v19 = vpop.permute.xlu1 %1388  ;;  %v1420_v33 = vsel %vm296_vm1, %v1400_v27, 0 }
 0x11c   : > { %v329_v24 = vpop.f32.mrf.mxu0  ;;  %v342_v25 = vpop.f32.mrf.mxu1  ;;  %v1398_v23 = vsel %vm1394_vm8, %v1387_v53, %v1389_v19  ;;  %v2225_v53 = vld.sshfl [vmem:[#allocation1 + $0x38] sm:$0xff pattern:$0x73625140] }
 0x11d   : > { %v5482_v22 = vpop.f32.mrf.mxu3  ;;  %v1399_v24 = vsel %vm1394_vm8, %v1389_v19, %v1391_v12  ;;  %v1414_v31 = vsel %vm296_vm1, %v1398_v23, 0  ;;  %vm3763_vm8 = vcmask 375808  }
 0x11e   : > { %v1417_v32 = vsel %vm296_vm1, %v1399_v24, 0 }
 0x121   : > { %v2213_v28 = vld.sshfl [vmem:[#allocation1 + $0x8] sm:$0xff pattern:$0x73625140]  ;;  %v2217_v61 = vld.sshfl [vmem:[#allocation1 + $0x18] sm:$0xff pattern:$0x73625140] }
 0x122   : > { %2229 = vrot.lane.b32.xlu0 %v2213_v28, %s5180_s27  ;;  %2066 = vrot.lane.b32.xlu2 %v2050_v4, %s5179_s24  ;;  %v2211_v4 = vld.sshfl [vmem:[#allocation1] sm:$0xff pattern:$0x73625140]  ;;  %s241_s24 = scalar_lea.vmem %s6680_s4, %s4906_s20 }
 0x123   : > { %v355_v15 = vpop.f32.mrf.mxu2  ;;  %v1547_v36 = vpop.permute.xlu1 %1546 }
 0x124   : > { %v5489_v34 = vpop.f32.mrf.mxu0  ;;  %v5491_v35 = vpop.f32.mrf.mxu1 }
 0x125   : > { %v368_v30 = vpop.f32.mrf.mxu3 }
 0x126   : > { %v2215_v30 = vld.sshfl [vmem:[#allocation1 + $0x10] sm:$0xff pattern:$0x73625140] }
 0x127   : > { %4949 = vmatmul.msk.bf16.vlgmr.msrb.gmra.mxu0 %vm292_vm2, %v5471_v0  ;;  %4950 = vmatmul.msk.bf16.vlgmr.msrb.gmra.mxu1 %vm292_vm2, %v5471_v0  ;;  %2378 = vst [vmem:[#allocation1] ss:$4 sm:$0xff] %v5552_v18 }
 0x128   : > { %4951 = vmatmul.msk.bf16.vlgmr.msrb.gmra.mxu2 %vm292_vm2, %v5471_v0  ;;  %1292 = vmatpush.bf16.msrb.mxu0 %v1245_v38 }
 0x129   : > { %1305 = vmatpush.bf16.msrb.mxu1 %v1248_v39  ;;  %1318 = vmatpush.bf16.msrb.mxu2 %v1251_v41 }
 0x12a   : > { %4952 = vmatmul.msk.bf16.vlgmr.msrb.gmra.mxu3 %vm292_vm2, %v5471_v0  ;;  %2231 = vrot.lane.b32.xlu1 %v2215_v30, %s5180_s27 }
 0x12b   : > { %1331 = vmatpush.bf16.msrb.mxu3 %v1254_v42  ;;  %v5509_v45 = vpop.f32.mrf.mxu2  ;;  %2235 = vrot.lane.b32.xlu0 %v2219_v37, %s5180_s27 }
 0x12c   : > { %v381_v48 = vpop.f32.mrf.mxu0  ;;  %v394_v49 = vpop.f32.mrf.mxu1  ;;  %2227 = vrot.lane.b32.xlu2 %v2211_v4, %s5180_s27 }
 0x12d   : > { %v445_v46 = vpop.f32.mrf.mxu3  ;;  %v1553_v49 = vpop.permute.xlu1 %1552 }
 0x12e   : > { %v5511_v47 = vadd.f32 %v445_v46, %v327_v9  ;;  %v5589_v46 = vld.sshfl [vmem:[#allocation1 + $0x30] sm:$0xff pattern:$0x73625140] }
 0x12f   : > { %2381 = vst [vmem:[#allocation1 + $0x20] ss:$4 sm:$0xff] %v5418_v16 }
 0x132   : > { %2237 = vrot.lane.b32.xlu1 %v2221_v44, %s5180_s27 }
 0x133   : > { %v407_v54 = vpop.f32.mrf.mxu2  ;;  %2241 = vrot.lane.b32.xlu0 %v2225_v53, %s5180_s27 }
 0x134   : > { %v458_v57 = vpop.f32.mrf.mxu0  ;;  %v471_v58 = vpop.f32.mrf.mxu1  ;;  %2233 = vrot.lane.b32.xlu2 %v2217_v61, %s5180_s27 }
 0x135   : > { %v447_v55 = vpop.f32.mrf.mxu3  ;;  %v5520_v62 = vadd.f32 %v458_v57, %v5462_v10  ;;  %v5522_v63 = vadd.f32 %v471_v58, %v353_v21 }
 0x136   : > { %v2396_v61 = vld.sshfl [vmem:[#allocation1 + $0x38] sm:$0xff pattern:$0x73625140] }
 0x137   : > { %4953 = vmatmul.msk.bf16.vlgmr.msra.gmra.mxu0 %vm292_vm2, %v5471_v0  ;;  %4954 = vmatmul.msk.bf16.vlgmr.msra.gmra.mxu1 %vm292_vm2, %v5471_v0 }
 0x138   : > { %4956 = vmatmul.msk.bf16.vlgmr.msra.gmra.mxu2 %vm292_vm2, %v5527_v1  ;;  %1344 = vmatpush.bf16.msra.mxu0 %v1257_v2 }
 0x139   : > { %1432 = vmatpush.bf16.msra.mxu1 %v1405_v3  ;;  %1445 = vmatpush.bf16.msra.mxu2 %v1408_v5 }
 0x13a   : > { %4957 = vmatmul.msk.bf16.vlgmr.msra.gmra.mxu3 %vm292_vm2, %v5527_v1 }
 0x13b   : > { %1458 = vmatpush.bf16.msra.mxu3 %v1411_v6  ;;  %v484_v9 = vpop.f32.mrf.mxu2 }
 0x13c   : > { %v5546_v11 = vadd.f32 %v484_v9, %v5482_v22  ;;  %v460_v0 = vpop.f32.mrf.mxu0  ;;  %v473_v13 = vpop.f32.mrf.mxu1  ;;  %2239 = vrot.lane.b32.xlu2 %v5589_v46, %s5180_s27  ;;  %s245_s27 = scalar_lea.vmem %s6681_s5, %s4906_s20 }
 0x13d   : > { %v497_v10 = vpop.f32.mrf.mxu3  ;;  %v2382_v0 = vld.sshfl [vmem:[#allocation1] sm:$0xff pattern:$0x73625140]  ;;  %v2386_v13 = vld.sshfl [vmem:[#allocation1 + $0x10] sm:$0xff pattern:$0x73625140] }
 0x13e   : > { %v5549_v14 = vadd.f32 %v497_v10, %v5489_v34  ;;  %v1423_v34 = vsel %vm296_vm1, %v1393_v20, 0  ;;  %2398 = vrot.lane.b32.xlu1 %v2382_v0, %s5181_s30  ;;  %2402 = vrot.lane.b32.xlu0 %v2386_v13, %s5181_s30 }
 0x143   : > { %v486_v21 = vpop.f32.mrf.mxu2 }
 0x144   : > { %v510_v25 = vpop.f32.mrf.mxu0  ;;  %v523_v26 = vpop.f32.mrf.mxu1 }
 0x145   : > { %v499_v22 = vpop.f32.mrf.mxu3  ;;  %v5561_v29 = vadd.f32 %v510_v25, %v5491_v35  ;;  %v5564_v15 = vadd.f32 %v523_v26, %v5509_v45  ;;  %v1549_v35 = vpop.permute.xlu2 %1548 }
 0x146   : > { %v1551_v45 = vpop.permute.xlu0 %1550 }
 0x147   : > { %4958 = vmatmul.msk.bf16.vlgmr.msrb.gmra.mxu0 %vm292_vm2, %v5527_v1  ;;  %4959 = vmatmul.msk.bf16.vlgmr.msrb.gmra.mxu1 %vm292_vm2, %v5527_v1  ;;  %v1562_v52 = vsel %vm1560_vm9, %v1549_v35, %v1551_v45  ;;  %v1563_v57 = vsel %vm1560_vm9, %v1551_v45, %v1553_v49 }
 0x148   : > { %4960 = vmatmul.msk.bf16.vlgmr.msrb.gmra.mxu2 %vm292_vm2, %v5527_v1  ;;  %1471 = vmatpush.bf16.msrb.mxu0 %v1414_v31  ;;  %v1574_v2 = vsel %vm296_vm1, %v1562_v52, 0  ;;  %v1577_v3 = vsel %vm296_vm1, %v1563_v57, 0 }
 0x149   : > { %1484 = vmatpush.bf16.msrb.mxu1 %v1417_v32  ;;  %1497 = vmatpush.bf16.msrb.mxu2 %v1420_v33  ;;  %v2392_v32 = vld.sshfl [vmem:[#allocation1 + $0x28] sm:$0xff pattern:$0x73625140] }
 0x14a   : > { %4961 = vmatmul.msk.bf16.vlgmr.msrb.gmra.mxu3 %vm292_vm2, %v5527_v1  ;;  %2408 = vrot.lane.b32.xlu0 %v2392_v32, %s5181_s30 }
 0x14b   : > { %1510 = vmatpush.bf16.msrb.mxu3 %v1423_v34  ;;  %v604_v38 = vpop.f32.mrf.mxu2 }
 0x14c   : > { %v5582_v40 = vadd.f32 %v604_v38, %v5511_v47  ;;  %v512_v42 = vpop.f32.mrf.mxu0  ;;  %v525_v43 = vpop.f32.mrf.mxu1  ;;  %v1561_v47 = vsel %vm1560_vm9, %v1547_v36, %v1549_v35 }
 0x14d   : > { %v617_v39 = vpop.f32.mrf.mxu3  ;;  %v1555_v48 = vpop.permute.xlu2 %1554  ;;  %v2394_v42 = vld.sshfl [vmem:[#allocation1 + $0x30] sm:$0xff pattern:$0x73625140] }
 0x14e   : > { %v5585_v41 = vadd.f32 %v617_v39, %v5520_v62  ;;  %v1564_v58 = vsel %vm1560_vm9, %v1553_v49, %v1555_v48  ;;  %v1571_v62 = vsel %vm296_vm1, %v1561_v47, 0  ;;  %v1557_v5 = vpop.permute.xlu0 %1556  ;;  %v5659_v47 = vld [vmem:[%s6677_s1 + $0x20] sm:$0xf] }
 0x153   : > { %v606_v50 = vpop.f32.mrf.mxu2 }
 0x154   : > { %v630_v54 = vpop.f32.mrf.mxu0  ;;  %v643_v55 = vpop.f32.mrf.mxu1 }
 0x155   : > { %v619_v51 = vpop.f32.mrf.mxu3  ;;  %v5600_v59 = vadd.f32 %v630_v54, %v5522_v63  ;;  %v5603_v60 = vadd.f32 %v643_v55, %v5546_v11  ;;  %v1580_v63 = vsel %vm296_vm1, %v1564_v58, 0  ;;  %v1559_v11 = vpop.permute.xlu1 %1558 }
 0x156   : > { %v1715_v17 = vpop.permute.xlu2 %1714  ;;  %v1717_v12 = vpop.permute.xlu0 %1716  ;;  %v1566_v21 = vsel %vm1560_vm9, %v1557_v5, %v1559_v11 }
 0x157   : > { %4962 = vmatmul.msk.bf16.vlgmr.msra.gmra.mxu0 %vm292_vm2, %v5527_v1  ;;  %4964 = vmatmul.msk.bf16.vlgmr.msra.gmra.mxu1 %vm292_vm2, %v4963_v56  ;;  %v1731_v24 = vsel %vm1730_vm10, %v1715_v17, %v1717_v12  ;;  %v1586_v28 = vsel %vm296_vm1, %v1566_v21, 0 }
 0x158   : > { %4965 = vmatmul.msk.bf16.vlgmr.msra.gmra.mxu2 %vm292_vm2, %v4963_v56  ;;  %1598 = vmatpush.bf16.msra.mxu0 %v1571_v62  ;;  %v1742_v30 = vsel %vm296_vm1, %v1731_v24, 0 }
 0x159   : > { %1611 = vmatpush.bf16.msra.mxu1 %v1574_v2  ;;  %1624 = vmatpush.bf16.msra.mxu2 %v1577_v3 }
 0x15a   : > { %4966 = vmatmul.msk.bf16.vlgmr.msra.gmra.mxu3 %vm292_vm2, %v4963_v56 }
 0x15b   : > { %1637 = vmatpush.bf16.msra.mxu3 %v1580_v63  ;;  %v656_v6 = vpop.f32.mrf.mxu2 }
 0x15c   : > { %v5618_v7 = vadd.f32 %v656_v6, %v5549_v14  ;;  %v632_v9 = vpop.f32.mrf.mxu0  ;;  %v645_v10 = vpop.f32.mrf.mxu1  ;;  %v1565_v14 = vsel %vm1560_vm9, %v1555_v48, %v1557_v5  ;;  %vm3929_vm9 = vcmask 367616  }
 0x15d   : > { %v669_v1 = vpop.f32.mrf.mxu3  ;;  %v1583_v27 = vsel %vm296_vm1, %v1565_v14, 0  ;;  %v1719_v31 = vpop.permute.xlu1 %1718 }
 0x15e   : > { %v5621_v8 = vadd.f32 %v669_v1, %v5561_v29  ;;  %v1589_v29 = vsel %vm296_vm1, %v1559_v11, 0  ;;  %v1723_v39 = vpop.permute.xlu0 %1722  ;;  %v1732_v48 = vsel %vm1730_vm10, %v1717_v12, %v1719_v31 }
 0x15f   : > { %v1745_v55 = vsel %vm296_vm1, %v1732_v48, 0 }
 0x163   : > { %v658_v19 = vpop.f32.mrf.mxu2 }
 0x164   : > { %v682_v22 = vpop.f32.mrf.mxu0  ;;  %v770_v23 = vpop.f32.mrf.mxu1 }
 0x165   : > { %v671_v20 = vpop.f32.mrf.mxu3  ;;  %v5630_v25 = vadd.f32 %v682_v22, %v5564_v15  ;;  %v5633_v26 = vadd.f32 %v770_v23, %v5582_v40  ;;  %v2388_v15 = vld.sshfl [vmem:[#allocation1 + $0x18] sm:$0xff pattern:$0x73625140]  ;;  %v1721_v40 = vpop.permute.xlu2 %1720 }
 0x166   : > { %2404 = vrot.lane.b32.xlu1 %v2388_v15, %s5181_s30  ;;  %v1725_v43 = vpop.permute.xlu1 %1724  ;;  %v1733_v49 = vsel %vm1730_vm10, %v1719_v31, %v1721_v40  ;;  %v1734_v46 = vsel %vm1730_vm10, %v1721_v40, %v1723_v39  ;;  %v1886_v57 = vpop.permute.xlu0 %1885 }
 0x167   : > { %4967 = vmatmul.msk.bf16.vlgmr.msrb.gmra.mxu0 %vm292_vm2, %v4963_v56  ;;  %4968 = vmatmul.msk.bf16.vlgmr.msrb.gmra.mxu1 %vm292_vm2, %v4963_v56  ;;  %v1735_v52 = vsel %vm1730_vm10, %v1723_v39, %v1725_v43  ;;  %v1751_v58 = vsel %vm296_vm1, %v1734_v46, 0 }
 0x168   : > { %4969 = vmatmul.msk.bf16.vlgmr.msrb.gmra.mxu2 %vm292_vm2, %v4963_v56  ;;  %1650 = vmatpush.bf16.msrb.mxu0 %v1583_v27  ;;  %v5707_v27 = vld [vmem:[%s6677_s1 + $0x24] sm:$0xf] }
 0x169   : > { %1663 = vmatpush.bf16.msrb.mxu1 %v1586_v28  ;;  %1676 = vmatpush.bf16.msrb.mxu2 %v1589_v29 }
 0x16a   : > { %4970 = vmatmul.msk.bf16.vlgmr.msrb.gmra.mxu3 %vm292_vm2, %v4963_v56  ;;  %v1748_v56 = vsel %vm296_vm1, %v1733_v49, 0 }
 0x16b   : > { %1769 = vmatpush.bf16.msrb.mxu3 %v1742_v30  ;;  %v783_v33 = vpop.f32.mrf.mxu2 }
 0x16c   : > { %v5646_v35 = vadd.f32 %v783_v33, %v5585_v41  ;;  %v684_v37 = vpop.f32.mrf.mxu0  ;;  %v772_v38 = vpop.f32.mrf.mxu1  ;;  %v2384_v41 = vld.sshfl [vmem:[#allocation1 + $0x8] sm:$0xff pattern:$0x73625140] }
 0x16d   : > { %v796_v34 = vpop.f32.mrf.mxu3  ;;  %2400 = vrot.lane.b32.xlu2 %v2384_v41, %s5181_s30  ;;  %2549 = vst [vmem:[#allocation1] ss:$4 sm:$0xff] %v5552_v18 }
 0x16e   : > { %v5649_v36 = vadd.f32 %v796_v34, %v5600_v59  ;;  %2410 = vrot.lane.b32.xlu1 %v2394_v42, %s5181_s30  ;;  %v1754_v59 = vsel %vm296_vm1, %v1735_v52, 0  ;;  %v1888_v9 = vpop.permute.xlu1 %1887  ;;  %v1729_v10 = vpop.permute.xlu0 %1728 }
 0x16f   : > { %v1902_v21 = vsel %vm1901_vm11, %v1886_v57, %v1888_v9 }
 0x173   : > { %v785_v44 = vpop.f32.mrf.mxu2 }
 0x174   : > { %v809_v50 = vpop.f32.mrf.mxu0  ;;  %v822_v51 = vpop.f32.mrf.mxu1  ;;  %v2555_v3 = vld.sshfl [vmem:[#allocation1 + $0x8] sm:$0xff pattern:$0x73625140]  ;;  %v2557_v63 = vld.sshfl [vmem:[#allocation1 + $0x10] sm:$0xff pattern:$0x73625140] }
 0x175   : > { %v798_v45 = vpop.f32.mrf.mxu3  ;;  %v5666_v53 = vadd.f32 %v809_v50, %v5603_v60  ;;  %v5669_v54 = vadd.f32 %v822_v51, %v5618_v7  ;;  %v1727_v60 = vpop.permute.xlu2 %1726  ;;  %2571 = vrot.lane.b32.xlu0 %v2555_v3, %s5182_s8  ;;  %v2390_v7 = vld.sshfl [vmem:[#allocation1 + $0x20] sm:$0xff pattern:$0x73625140]  ;;  %v2559_v11 = vld.sshfl [vmem:[#allocation1 + $0x18] sm:$0xff pattern:$0x73625140] }
 0x176   : > { %2573 = vrot.lane.b32.xlu1 %v2557_v63, %s5182_s8  ;;  %2406 = vrot.lane.b32.xlu2 %v2390_v7, %s5181_s30  ;;  %2552 = vst [vmem:[#allocation1 + $0x20] ss:$4 sm:$0xff] %v5418_v16  ;;  %v1736_v17 = vsel %vm1730_vm10, %v1725_v43, %v1727_v60  ;;  %v1737_v12 = vsel %vm1730_vm10, %v1727_v60, %v1729_v10  ;;  %v2553_v19 = vld.sshfl [vmem:[#allocation1] sm:$0xff pattern:$0x73625140]  ;;  %v1892_v31 = vpop.permute.xlu1 %1891  ;;  %v1896_v43 = vpop.permute.xlu0 %1895  ;;  %vm4095_vm10 = vcmask 359424  }
 0x177   : > { %4972 = vmatmul.msk.bf16.vlgmr.msra.gmra.mxu0 %vm292_vm2, %v5659_v47  ;;  %4973 = vmatmul.msk.bf16.vlgmr.msra.gmra.mxu1 %vm292_vm2, %v5659_v47  ;;  %2720 = vst [vmem:[#allocation1] ss:$4 sm:$0xff] %v5552_v18  ;;  %v1757_v28 = vsel %vm296_vm1, %v1736_v17, 0  ;;  %v1760_v29 = vsel %vm296_vm1, %v1737_v12, 0 }
 0x178   : > { %4974 = vmatmul.msk.bf16.vlgmr.msra.gmra.mxu2 %vm292_vm2, %v5659_v47  ;;  %1782 = vmatpush.bf16.msra.mxu0 %v1745_v55 }
 0x179   : > { %1795 = vmatpush.bf16.msra.mxu1 %v1748_v56  ;;  %1808 = vmatpush.bf16.msra.mxu2 %v1751_v58 }
 0x17a   : > { %4975 = vmatmul.msk.bf16.vlgmr.msra.gmra.mxu3 %vm292_vm2, %v5659_v47 }
 0x17b   : > { %1821 = vmatpush.bf16.msra.mxu3 %v1754_v59  ;;  %v835_v62 = vpop.f32.mrf.mxu2 }
 0x17c   : > { %v5684_v4 = vadd.f32 %v835_v62, %v5621_v8  ;;  %v811_v6 = vpop.f32.mrf.mxu0  ;;  %v824_v1 = vpop.f32.mrf.mxu1 }
 0x17d   : > { %v848_v2 = vpop.f32.mrf.mxu3  ;;  %v1890_v8 = vpop.permute.xlu2 %1889  ;;  %2575 = vrot.lane.b32.xlu0 %v2559_v11, %s5182_s8  ;;  %v2561_v23 = vld.sshfl [vmem:[#allocation1 + $0x20] sm:$0xff pattern:$0x73625140]  ;;  %v2565_v15 = vld.sshfl [vmem:[#allocation1 + $0x30] sm:$0xff pattern:$0x73625140] }
 0x17e   : > { %v5687_v5 = vadd.f32 %v848_v2, %v5630_v25  ;;  %v1903_v22 = vsel %vm1901_vm11, %v1888_v9, %v1890_v8  ;;  %2577 = vrot.lane.b32.xlu1 %v2561_v23, %s5182_s8  ;;  %2569 = vrot.lane.b32.xlu2 %v2553_v19, %s5182_s8  ;;  %v2563_v32 = vld.sshfl [vmem:[#allocation1 + $0x28] sm:$0xff pattern:$0x73625140]  ;;  %v2567_v40 = vld.sshfl [vmem:[#allocation1 + $0x38] sm:$0xff pattern:$0x73625140]  ;;  %v1898_v44 = vpop.permute.xlu1 %1897  ;;  %v1904_v48 = vsel %vm1901_vm11, %v1890_v8, %v1892_v31  ;;  %v2059_v56 = vpop.permute.xlu0 %2058 }
 0x17f   : > { %v1916_v30 = vsel %vm296_vm1, %v1903_v22, 0  ;;  %2723 = vst [vmem:[#allocation1 + $0x20] ss:$4 sm:$0xff] %v5418_v16  ;;  %v2728_v41 = vld.sshfl [vmem:[#allocation1 + $0x10] sm:$0xff pattern:$0x73625140]  ;;  %v1907_v46 = vsel %vm1901_vm11, %v1896_v43, %v1898_v44 }
 0x180   : > { %v2730_v59 = vld.sshfl [vmem:[#allocation1 + $0x18] sm:$0xff pattern:$0x73625140] }
 0x183   : > { %v837_v0 = vpop.f32.mrf.mxu2 }
 0x184   : > { %v936_v20 = vpop.f32.mrf.mxu0  ;;  %v949_v14 = vpop.f32.mrf.mxu1 }
 0x185   : > { %v850_v13 = vpop.f32.mrf.mxu3  ;;  %v5699_v24 = vadd.f32 %v936_v20, %v5633_v26  ;;  %v5702_v25 = vadd.f32 %v949_v14, %v5646_v35  ;;  %v1913_v26 = vsel %vm296_vm1, %v1902_v21, 0  ;;  %2581 = vrot.lane.b32.xlu0 %v2565_v15, %s5182_s8  ;;  %v1894_v42 = vpop.permute.xlu2 %1893  ;;  %v5780_v14 = vld [vmem:[%s6677_s1 + $0x28] sm:$0xf] }
 0x186   : > { %2412 = vrot.lane.b32.xlu2 %v2396_v61, %s5181_s30  ;;  %2583 = vrot.lane.b32.xlu1 %v2567_v40, %s5182_s8  ;;  %v1905_v49 = vsel %vm1901_vm11, %v1892_v31, %v1894_v42  ;;  %v2061_v6 = vpop.permute.xlu1 %2060  ;;  %v2057_v1 = vpop.permute.xlu0 %2056  ;;  %v2726_v21 = vld.sshfl [vmem:[#allocation1 + $0x8] sm:$0xff pattern:$0x73625140] }
 0x187   : > { %4976 = vmatmul.msk.bf16.vlgmr.msrb.gmra.mxu0 %vm292_vm2, %v5659_v47  ;;  %4977 = vmatmul.msk.bf16.vlgmr.msrb.gmra.mxu1 %vm292_vm2, %v5659_v47  ;;  %v1922_v55 = vsel %vm296_vm1, %v1905_v49, 0  ;;  %v2073_v11 = vsel %vm2072_vm12, %v2057_v1, %v2059_v56  ;;  %v2074_v17 = vsel %vm2072_vm12, %v2059_v56, %v2061_v6 }
 0x188   : > { %4978 = vmatmul.msk.bf16.vlgmr.msrb.gmra.mxu2 %vm292_vm2, %v5659_v47  ;;  %1834 = vmatpush.bf16.msrb.mxu0 %v1757_v28  ;;  %v1906_v47 = vsel %vm1901_vm11, %v1894_v42, %v1896_v43  ;;  %v2084_v23 = vsel %vm296_vm1, %v2073_v11, 0 }
 0x189   : > { %1847 = vmatpush.bf16.msrb.mxu1 %v1760_v29  ;;  %1940 = vmatpush.bf16.msrb.mxu2 %v1913_v26  ;;  %v1925_v57 = vsel %vm296_vm1, %v1906_v47, 0  ;;  %v2738_v29 = vld.sshfl [vmem:[#allocation1 + $0x38] sm:$0xff pattern:$0x73625140] }
 0x18a   : > { %4980 = vmatmul.msk.bf16.vlgmr.msrb.gmra.mxu3 %vm292_vm2, %v5707_v27 }
 0x18b   : > { %1953 = vmatpush.bf16.msrb.mxu3 %v1916_v30  ;;  %v962_v33 = vpop.f32.mrf.mxu2 }
 0x18c   : > { %v5725_v35 = vadd.f32 %v962_v33, %v5649_v36  ;;  %v938_v38 = vpop.f32.mrf.mxu0  ;;  %v951_v39 = vpop.f32.mrf.mxu1 }
 0x18d   : > { %v975_v34 = vpop.f32.mrf.mxu3  ;;  %2744 = vrot.lane.b32.xlu0 %v2728_v41, %s5183_s11  ;;  %v1900_v58 = vpop.permute.xlu2 %1899 }
 0x18e   : > { %v5728_v37 = vadd.f32 %v975_v34, %v5666_v53  ;;  %2579 = vrot.lane.b32.xlu2 %v2563_v32, %s5182_s8  ;;  %v1919_v53 = vsel %vm296_vm1, %v1904_v48, 0  ;;  %2746 = vrot.lane.b32.xlu1 %v2730_v59, %s5183_s11  ;;  %v1908_v8 = vsel %vm1901_vm11, %v1898_v44, %v1900_v58  ;;  %v2065_v28 = vpop.permute.xlu1 %2064  ;;  %v2724_v34 = vld.sshfl [vmem:[#allocation1] sm:$0xff pattern:$0x73625140]  ;;  %vm4261_vm11 = vcmask 293888  }
 0x18f   : > { %v1931_v22 = vsel %vm296_vm1, %v1908_v8, 0  ;;  %2891 = vst [vmem:[#allocation1] ss:$4 sm:$0xff] %v5552_v18  ;;  %v5842_v8 = vld [vmem:[%s6677_s1 + $0x2c] sm:$0xf] }
 0x193   : > { %v964_v45 = vpop.f32.mrf.mxu2 }
 0x194   : > { %v988_v50 = vpop.f32.mrf.mxu0  ;;  %v1001_v51 = vpop.f32.mrf.mxu1 }
 0x195   : > { %v977_v36 = vpop.f32.mrf.mxu3  ;;  %v5740_v16 = vadd.f32 %v988_v50, %v5669_v54  ;;  %v5743_v52 = vadd.f32 %v1001_v51, %v5684_v4  ;;  %v1928_v54 = vsel %vm296_vm1, %v1907_v46, 0  ;;  %v2732_v4 = vld.sshfl [vmem:[#allocation1 + $0x20] sm:$0xff pattern:$0x73625140]  ;;  %v2063_v7 = vpop.permute.xlu2 %2062 }
 0x196   : > { %2748 = vrot.lane.b32.xlu0 %v2732_v4, %s5183_s11  ;;  %v2075_v12 = vsel %vm2072_vm12, %v2061_v6, %v2063_v7  ;;  %2742 = vrot.lane.b32.xlu2 %v2726_v21, %s5183_s11  ;;  %v2071_v38 = vpop.permute.xlu1 %2070  ;;  %v2076_v42 = vsel %vm2072_vm12, %v2063_v7, %v2065_v28  ;;  %v2895_v48 = vld.sshfl [vmem:[#allocation1] sm:$0xff pattern:$0x73625140]  ;;  %v2899_v49 = vld.sshfl [vmem:[#allocation1 + $0x10] sm:$0xff pattern:$0x73625140] }
 0x197   : > { %4981 = vmatmul.msk.bf16.vlgmr.msra.gmra.mxu0 %vm292_vm2, %v5707_v27  ;;  %4982 = vmatmul.msk.bf16.vlgmr.msra.gmra.mxu1 %vm292_vm2, %v5707_v27  ;;  %v2736_v51 = vld.sshfl [vmem:[#allocation1 + $0x30] sm:$0xff pattern:$0x73625140]  ;;  %v2093_v46 = vsel %vm296_vm1, %v2076_v42, 0 }
 0x198   : > { %4983 = vmatmul.msk.bf16.vlgmr.msra.gmra.mxu2 %vm292_vm2, %v5707_v27  ;;  %1966 = vmatpush.bf16.msra.mxu0 %v1919_v53  ;;  %v2901_v56 = vld.sshfl [vmem:[#allocation1 + $0x18] sm:$0xff pattern:$0x73625140] }
 0x199   : > { %1979 = vmatpush.bf16.msra.mxu1 %v1922_v55  ;;  %1992 = vmatpush.bf16.msra.mxu2 %v1925_v57 }
 0x19a   : > { %4984 = vmatmul.msk.bf16.vlgmr.msra.gmra.mxu3 %vm292_vm2, %v5707_v27 }
 0x19b   : > { %2005 = vmatpush.bf16.msra.mxu3 %v1928_v54  ;;  %v1014_v60 = vpop.f32.mrf.mxu2 }
 0x19c   : > { %v5760_v62 = vadd.f32 %v1014_v60, %v5687_v5  ;;  %v990_v3 = vpop.f32.mrf.mxu0  ;;  %v1003_v63 = vpop.f32.mrf.mxu1  ;;  %v2734_v5 = vld.sshfl [vmem:[#allocation1 + $0x28] sm:$0xff pattern:$0x73625140] }
 0x19d   : > { %v1102_v61 = vpop.f32.mrf.mxu3  ;;  %2750 = vrot.lane.b32.xlu1 %v2734_v5, %s5183_s11  ;;  %v2067_v26 = vpop.permute.xlu2 %2066 }
 0x19e   : > { %v5763_v2 = vadd.f32 %v1102_v61, %v5699_v24  ;;  %v2087_v24 = vsel %vm296_vm1, %v2074_v17, 0  ;;  %2754 = vrot.lane.b32.xlu0 %v2738_v29, %s5183_s11  ;;  %2740 = vrot.lane.b32.xlu2 %v2724_v34, %s5183_s11  ;;  %v2077_v43 = vsel %vm2072_vm12, %v2065_v28, %v2067_v26  ;;  %v2232_v63 = vpop.permute.xlu1 %2231 }
 0x1a3   : > { %v1016_v9 = vpop.f32.mrf.mxu2 }
 0x1a4   : > { %v1115_v0 = vpop.f32.mrf.mxu0  ;;  %v1128_v13 = vpop.f32.mrf.mxu1 }
 0x1a5   : > { %v1104_v10 = vpop.f32.mrf.mxu3  ;;  %v5772_v19 = vadd.f32 %v1115_v0, %v5702_v25  ;;  %v5775_v20 = vadd.f32 %v1128_v13, %v5725_v35  ;;  %v2090_v25 = vsel %vm296_vm1, %v2075_v12, 0  ;;  %v2069_v35 = vpop.permute.xlu0 %2068  ;;  %2911 = vrot.lane.b32.xlu1 %v2895_v48, %s5184_s14 }
 0x1a6   : > { %v2078_v45 = vsel %vm2072_vm12, %v2067_v26, %v2069_v35  ;;  %v2079_v36 = vsel %vm2072_vm12, %v2069_v35, %v2071_v38  ;;  %2915 = vrot.lane.b32.xlu0 %v2899_v49, %s5184_s14  ;;  %v2228_v47 = vpop.permute.xlu2 %2227  ;;  %2752 = vrot.lane.b32.xlu2 %v2736_v51, %s5183_s11  ;;  %vm4427_vm12 = vcmask 285696  }
 0x1a7   : > { %4985 = vmatmul.msk.bf16.vlgmr.msrb.gmra.mxu0 %vm292_vm2, %v5707_v27  ;;  %4986 = vmatmul.msk.bf16.vlgmr.msrb.gmra.mxu1 %vm292_vm2, %v5707_v27  ;;  %v2102_v53 = vsel %vm296_vm1, %v2079_v36, 0 }
 0x1a8   : > { %4988 = vmatmul.msk.bf16.vlgmr.msrb.gmra.mxu2 %vm292_vm2, %v5780_v14  ;;  %2018 = vmatpush.bf16.msrb.mxu0 %v1931_v22 }
 0x1a9   : > { %2111 = vmatpush.bf16.msrb.mxu1 %v2084_v23  ;;  %2124 = vmatpush.bf16.msrb.mxu2 %v2087_v24  ;;  %v2897_v24 = vld.sshfl [vmem:[#allocation1 + $0x8] sm:$0xff pattern:$0x73625140] }
 0x1aa   : > { %4989 = vmatmul.msk.bf16.vlgmr.msrb.gmra.mxu3 %vm292_vm2, %v5780_v14  ;;  %3062 = vst [vmem:[#allocation1] ss:$4 sm:$0xff] %v5552_v18 }
 0x1ab   : > { %2137 = vmatpush.bf16.msrb.mxu3 %v2090_v25  ;;  %v1141_v30 = vpop.f32.mrf.mxu2  ;;  %v2238_v25 = vpop.permute.xlu1 %2237 }
 0x1ac   : > { %v5797_v27 = vadd.f32 %v1141_v30, %v5728_v37  ;;  %v1117_v32 = vpop.f32.mrf.mxu0  ;;  %v1130_v33 = vpop.f32.mrf.mxu1 }
 0x1ad   : > { %v1154_v31 = vpop.f32.mrf.mxu3  ;;  %v2230_v55 = vpop.permute.xlu0 %2229  ;;  %2917 = vrot.lane.b32.xlu1 %v2901_v56, %s5184_s14 }
 0x1ae   : > { %v5800_v15 = vadd.f32 %v1154_v31, %v5740_v16  ;;  %v2096_v16 = vsel %vm296_vm1, %v2077_v43, 0  ;;  %v2234_v3 = vpop.permute.xlu2 %2233  ;;  %v2244_v7 = vsel %vm2243_vm13, %v2228_v47, %v2230_v55  ;;  %2913 = vrot.lane.b32.xlu2 %v2897_v24, %s5184_s14 }
 0x1af   : > { %v2246_v11 = vsel %vm2243_vm13, %v2232_v63, %v2234_v3 }
 0x1b1   : > { %v3068_v18 = vld.sshfl [vmem:[#allocation1 + $0x8] sm:$0xff pattern:$0x73625140]  ;;  %v3066_v34 = vld.sshfl [vmem:[#allocation1] sm:$0xff pattern:$0x73625140] }
 0x1b3   : > { %v1143_v39 = vpop.f32.mrf.mxu2  ;;  %v2399_v38 = vpop.permute.xlu1 %2398 }
 0x1b4   : > { %v1167_v37 = vpop.f32.mrf.mxu0  ;;  %v1180_v44 = vpop.f32.mrf.mxu1 }
 0x1b5   : > { %v1156_v40 = vpop.f32.mrf.mxu3  ;;  %v5809_v41 = vadd.f32 %v1167_v37, %v5743_v52  ;;  %v5812_v50 = vadd.f32 %v1180_v44, %v5760_v62  ;;  %v2099_v52 = vsel %vm296_vm1, %v2078_v45, 0  ;;  %v2887_v62 = vld [vmem:[%s5239_s23 + $0x8] sm:$0xff]  ;;  %v2236_v4 = vpop.permute.xlu0 %2235 }
 0x1b6   : > { %2894 = vst [vmem:[#allocation1 + $0x20] ss:$4 sm:$0xff] %v2887_v62  ;;  %v2247_v5 = vsel %vm2243_vm13, %v2234_v3, %v2236_v4  ;;  %v2240_v23 = vpop.permute.xlu2 %2239  ;;  %v2248_v40 = vsel %vm2243_vm13, %v2236_v4, %v2238_v25 }
 0x1b7   : > { %4990 = vmatmul.msk.bf16.vlgmr.msra.gmra.mxu0 %vm292_vm2, %v5780_v14  ;;  %4991 = vmatmul.msk.bf16.vlgmr.msra.gmra.mxu1 %vm292_vm2, %v5780_v14  ;;  %v2264_v22 = vsel %vm296_vm1, %v2247_v5, 0  ;;  %v2249_v42 = vsel %vm2243_vm13, %v2238_v25, %v2240_v23  ;;  %v2267_v49 = vsel %vm296_vm1, %v2248_v40, 0 }
 0x1b8   : > { %4992 = vmatmul.msk.bf16.vlgmr.msra.gmra.mxu2 %vm292_vm2, %v5780_v14  ;;  %2150 = vmatpush.bf16.msra.mxu0 %v2093_v46 }
 0x1b9   : > { %2163 = vmatpush.bf16.msra.mxu1 %v2096_v16  ;;  %2176 = vmatpush.bf16.msra.mxu2 %v2099_v52  ;;  %v3072_v16 = vld.sshfl [vmem:[#allocation1 + $0x18] sm:$0xff pattern:$0x73625140]  ;;  %v3070_v52 = vld.sshfl [vmem:[#allocation1 + $0x10] sm:$0xff pattern:$0x73625140] }
 0x1ba   : > { %4993 = vmatmul.msk.bf16.vlgmr.msra.gmra.mxu3 %vm292_vm2, %v5780_v14 }
 0x1bb   : > { %2189 = vmatpush.bf16.msra.mxu3 %v2102_v53  ;;  %v1268_v57 = vpop.f32.mrf.mxu2 }
 0x1bc   : > { %v5830_v58 = vadd.f32 %v1268_v57, %v5763_v2  ;;  %v1169_v60 = vpop.f32.mrf.mxu0  ;;  %v1182_v61 = vpop.f32.mrf.mxu1  ;;  %v2245_v2 = vsel %vm2243_vm13, %v2230_v55, %v2232_v63 }
 0x1bd   : > { %v1281_v54 = vpop.f32.mrf.mxu3  ;;  %v2905_v0 = vld.sshfl [vmem:[#allocation1 + $0x28] sm:$0xff pattern:$0x73625140]  ;;  %v2907_v12 = vld.sshfl [vmem:[#allocation1 + $0x30] sm:$0xff pattern:$0x73625140]  ;;  %v2242_v33 = vpop.permute.xlu0 %2241 }
 0x1be   : > { %v5833_v59 = vadd.f32 %v1281_v54, %v5772_v19  ;;  %2921 = vrot.lane.b32.xlu0 %v2905_v0, %s5184_s14  ;;  %v2255_v19 = vsel %vm296_vm1, %v2244_v7, 0  ;;  %v2258_v21 = vsel %vm296_vm1, %v2245_v2, 0  ;;  %2923 = vrot.lane.b32.xlu1 %v2907_v12, %s5184_s14  ;;  %v2903_v32 = vld.sshfl [vmem:[#allocation1 + $0x20] sm:$0xff pattern:$0x73625140]  ;;  %v2250_v44 = vsel %vm2243_vm13, %v2240_v23, %v2242_v33 }
 0x1bf   : > { %2919 = vrot.lane.b32.xlu2 %v2903_v32, %s5184_s14  ;;  %v2273_v51 = vsel %vm296_vm1, %v2250_v44, 0  ;;  %v5908_v61 = vld [vmem:[%s5239_s23 + $0x2] sm:$0xff]  ;;  %v5959_v44 = vld [vmem:[%s6677_s1 + $0x34] sm:$0xf]  ;;  %vm4593_vm13 = vcmask 277504  }
 0x1c0   : > { %3233 = vst [vmem:[#allocation1] ss:$4 sm:$0xff] %v5908_v61 }
 0x1c3   : > { %v1270_v6 = vpop.f32.mrf.mxu2 }
 0x1c4   : > { %v1294_v9 = vpop.f32.mrf.mxu0  ;;  %v1307_v10 = vpop.f32.mrf.mxu1 }
 0x1c5   : > { %v1283_v1 = vpop.f32.mrf.mxu3  ;;  %v5847_v13 = vadd.f32 %v1294_v9, %v5775_v20  ;;  %v5850_v17 = vadd.f32 %v1307_v10, %v5797_v27  ;;  %v2261_v20 = vsel %vm296_vm1, %v2246_v11, 0  ;;  %v2403_v46 = vpop.permute.xlu0 %2402  ;;  %v5003_v9 = vld [vmem:[%s6677_s1 + $0x30] sm:$0xf] }
 0x1c6   : > { %3084 = vrot.lane.b32.xlu1 %v3068_v18, %s5185_s17  ;;  %3082 = vrot.lane.b32.xlu0 %v3066_v34, %s5185_s17 }
 0x1c7   : > { %4994 = vmatmul.msk.bf16.vlgmr.msrb.gmra.mxu0 %vm292_vm2, %v5780_v14  ;;  %4996 = vmatmul.msk.bf16.vlgmr.msrb.gmra.mxu1 %vm292_vm2, %v5842_v8  ;;  %v2909_v14 = vld.sshfl [vmem:[#allocation1 + $0x38] sm:$0xff pattern:$0x73625140]  ;;  %v2401_v35 = vpop.permute.xlu2 %2400 }
 0x1c8   : > { %4997 = vmatmul.msk.bf16.vlgmr.msrb.gmra.mxu2 %vm292_vm2, %v5842_v8  ;;  %2282 = vmatpush.bf16.msrb.mxu0 %v2255_v19  ;;  %3065 = vst [vmem:[#allocation1 + $0x20] ss:$4 sm:$0xff] %v2887_v62  ;;  %v2415_v45 = vsel %vm2414_vm14, %v2399_v38, %v2401_v35  ;;  %v2416_v1 = vsel %vm2414_vm14, %v2401_v35, %v2403_v46  ;;  %v3229_v38 = vld [vmem:[%s5239_s23 + $0xa] sm:$0x3f] }
 0x1c9   : > { %2295 = vmatpush.bf16.msrb.mxu1 %v2258_v21  ;;  %2308 = vmatpush.bf16.msrb.mxu2 %v2261_v20  ;;  %v2426_v47 = vsel %vm296_vm1, %v2415_v45, 0 }
 0x1ca   : > { %4998 = vmatmul.msk.bf16.vlgmr.msrb.gmra.mxu3 %vm292_vm2, %v5842_v8  ;;  %2925 = vrot.lane.b32.xlu2 %v2909_v14, %s5184_s14 }
 0x1cb   : > { %2321 = vmatpush.bf16.msrb.mxu3 %v2264_v22  ;;  %v1320_v28 = vpop.f32.mrf.mxu2  ;;  %v3241_v22 = vld.sshfl [vmem:[#allocation1 + $0x10] sm:$0xff pattern:$0x73625140] }
 0x1cc   : > { %v5869_v26 = vadd.f32 %v1320_v28, %v5800_v15  ;;  %v1296_v31 = vpop.f32.mrf.mxu0  ;;  %v1309_v27 = vpop.f32.mrf.mxu1 }
 0x1cd   : > { %v1333_v29 = vpop.f32.mrf.mxu3  ;;  %v2409_v63 = vpop.permute.xlu0 %2408 }
 0x1ce   : > { %v5872_v30 = vadd.f32 %v1333_v29, %v5809_v41  ;;  %v2270_v41 = vsel %vm296_vm1, %v2249_v42, 0  ;;  %3088 = vrot.lane.b32.xlu0 %v3072_v16, %s5185_s17 }
 0x1cf   : > { %v3078_v3 = vld.sshfl [vmem:[#allocation1 + $0x30] sm:$0xff pattern:$0x73625140]  ;;  %v3080_v23 = vld.sshfl [vmem:[#allocation1 + $0x38] sm:$0xff pattern:$0x73625140] }
 0x1d0   : > { %v2407_v53 = vpop.permute.xlu2 %2406  ;;  %v3076_v31 = vld.sshfl [vmem:[#allocation1 + $0x28] sm:$0xff pattern:$0x73625140] }
 0x1d1   : > { %v2419_v11 = vsel %vm2414_vm14, %v2407_v53, %v2409_v63 }
 0x1d2   : > { %3086 = vrot.lane.b32.xlu2 %v3070_v52, %s5185_s17 }
 0x1d3   : > { %v1322_v15 = vpop.f32.mrf.mxu2 }
 0x1d4   : > { %v1346_v43 = vpop.f32.mrf.mxu0  ;;  %v1434_v37 = vpop.f32.mrf.mxu1 }
 0x1d5   : > { %v1335_v39 = vpop.f32.mrf.mxu3  ;;  %v5882_v36 = vadd.f32 %v1346_v43, %v5812_v50  ;;  %v5885_v48 = vadd.f32 %v1434_v37, %v5830_v58  ;;  %v3074_v50 = vld.sshfl [vmem:[#allocation1 + $0x20] sm:$0xff pattern:$0x73625140] }
 0x1d6   : > { %3090 = vrot.lane.b32.xlu1 %v3074_v50, %s5185_s17  ;;  %3094 = vrot.lane.b32.xlu0 %v3078_v3, %s5185_s17  ;;  %3236 = vst [vmem:[#allocation1 + $0x20] ss:$4 sm:$0xff] %v3229_v38 }
 0x1d7   : > { %4999 = vmatmul.msk.bf16.vlgmr.msra.gmra.mxu0 %vm292_vm2, %v5842_v8  ;;  %5000 = vmatmul.msk.bf16.vlgmr.msra.gmra.mxu1 %vm292_vm2, %v5842_v8 }
 0x1d8   : > { %5001 = vmatmul.msk.bf16.vlgmr.msra.gmra.mxu2 %vm292_vm2, %v5842_v8  ;;  %2334 = vmatpush.bf16.msra.mxu0 %v2267_v49  ;;  %v2405_v62 = vpop.permute.xlu1 %2404  ;;  %v2570_v19 = vpop.permute.xlu2 %2569 }
 0x1d9   : > { %2347 = vmatpush.bf16.msra.mxu1 %v2270_v41  ;;  %2360 = vmatpush.bf16.msra.mxu2 %v2273_v51  ;;  %v2418_v10 = vsel %vm2414_vm14, %v2405_v62, %v2407_v53  ;;  %v3243_v51 = vld.sshfl [vmem:[#allocation1 + $0x18] sm:$0xff pattern:$0x73625140] }
 0x1da   : > { %5002 = vmatmul.msk.bf16.vlgmr.msra.gmra.mxu3 %vm292_vm2, %v5842_v8  ;;  %v3237_v8 = vld.sshfl [vmem:[#allocation1] sm:$0xff pattern:$0x73625140]  ;;  %v2435_v21 = vsel %vm296_vm1, %v2418_v10, 0  ;;  %3092 = vrot.lane.b32.xlu2 %v3076_v31, %s5185_s17 }
 0x1db   : > { %2453 = vmatpush.bf16.msra.mxu3 %v2426_v47  ;;  %v1447_v55 = vpop.f32.mrf.mxu2 }
 0x1dc   : > { %v5902_v57 = vadd.f32 %v1447_v55, %v5833_v59  ;;  %v1348_v58 = vpop.f32.mrf.mxu0  ;;  %v1436_v60 = vpop.f32.mrf.mxu1  ;;  %v2417_v59 = vsel %vm2414_vm14, %v2403_v46, %v2405_v62 }
 0x1dd   : > { %v1460_v56 = vpop.f32.mrf.mxu3  ;;  %v2432_v12 = vsel %vm296_vm1, %v2417_v59, 0  ;;  %v3245_v16 = vld.sshfl [vmem:[#allocation1 + $0x20] sm:$0xff pattern:$0x73625140] }
 0x1de   : > { %v5905_v54 = vadd.f32 %v1460_v56, %v5847_v13  ;;  %3251 = vrot.lane.b32.xlu1 %v3237_v8, %s5186_s22  ;;  %v2429_v13 = vsel %vm296_vm1, %v2416_v1, 0  ;;  %3255 = vrot.lane.b32.xlu0 %v3241_v22, %s5186_s22  ;;  %v3239_v58 = vld.sshfl [vmem:[#allocation1 + $0x8] sm:$0xff pattern:$0x73625140] }
 0x1df   : > { %3399 = vst [vmem:[#allocation1] ss:$4 sm:$0xff] %v5908_v61 }
 0x1e0   : > { %v2411_v20 = vpop.permute.xlu1 %2410  ;;  %v2413_v32 = vpop.permute.xlu2 %2412 }
 0x1e1   : > { %v2420_v35 = vsel %vm2414_vm14, %v2409_v63, %v2411_v20 }
 0x1e2   : > { %v2441_v45 = vsel %vm296_vm1, %v2420_v35, 0  ;;  %3253 = vrot.lane.b32.xlu2 %v3239_v58, %s5186_s22 }
 0x1e3   : > { %v1449_v4 = vpop.f32.mrf.mxu2 }
 0x1e4   : > { %v1473_v7 = vpop.f32.mrf.mxu0  ;;  %v1486_v2 = vpop.f32.mrf.mxu1 }
 0x1e5   : > { %v1462_v6 = vpop.f32.mrf.mxu3  ;;  %v5922_v5 = vadd.f32 %v1473_v7, %v5850_v17  ;;  %v5925_v0 = vadd.f32 %v1486_v2, %v5869_v26  ;;  %v2438_v17 = vsel %vm296_vm1, %v2419_v11, 0 }
 0x1e6   : > { %3096 = vrot.lane.b32.xlu1 %v3080_v23, %s5185_s17  ;;  %3259 = vrot.lane.b32.xlu0 %v3245_v16, %s5186_s22  ;;  %v3405_v2 = vld.sshfl [vmem:[#allocation1 + $0x8] sm:$0xff pattern:$0x73625140]  ;;  %v3409_v16 = vld.sshfl [vmem:[#allocation1 + $0x18] sm:$0xff pattern:$0x73625140]  ;;  %s6646_s17 = scalar_lea.vmem %s6679_s3, %s5126_s12 }
 0x1e7   : > { %5004 = vmatmul.msk.bf16.vlgmr.msrb.gmra.mxu0 %vm292_vm2, %v5003_v9  ;;  %5005 = vmatmul.msk.bf16.vlgmr.msrb.gmra.mxu1 %vm292_vm2, %v5003_v9  ;;  %v2572_v27 = vpop.permute.xlu0 %2571 }
 0x1e8   : > { %5006 = vmatmul.msk.bf16.vlgmr.msrb.gmra.mxu2 %vm292_vm2, %v5003_v9  ;;  %2466 = vmatpush.bf16.msrb.mxu0 %v2429_v13  ;;  %v2574_v33 = vpop.permute.xlu1 %2573  ;;  %v2586_v40 = vsel %vm2585_vm15, %v2570_v19, %v2572_v27  ;;  %v2580_v47 = vpop.permute.xlu2 %2579 }
 0x1e9   : > { %2479 = vmatpush.bf16.msrb.mxu1 %v2432_v12  ;;  %2492 = vmatpush.bf16.msrb.mxu2 %v2435_v21  ;;  %v2587_v42 = vsel %vm2585_vm15, %v2572_v27, %v2574_v33  ;;  %v2597_v49 = vsel %vm296_vm1, %v2586_v40, 0  ;;  %v3249_v21 = vld.sshfl [vmem:[#allocation1 + $0x30] sm:$0xff pattern:$0x73625140] }
 0x1ea   : > { %5007 = vmatmul.msk.bf16.vlgmr.msrb.gmra.mxu3 %vm292_vm2, %v5003_v9  ;;  %3257 = vrot.lane.b32.xlu2 %v3243_v51, %s5186_s22 }
 0x1eb   : > { %2505 = vmatpush.bf16.msrb.mxu3 %v2438_v17  ;;  %v1499_v24 = vpop.f32.mrf.mxu2  ;;  %v3403_v17 = vld.sshfl [vmem:[#allocation1] sm:$0xff pattern:$0x73625140] }
 0x1ec   : > { %v5938_v14 = vadd.f32 %v1499_v24, %v5872_v30  ;;  %v1475_v29 = vpop.f32.mrf.mxu0  ;;  %v1488_v26 = vpop.f32.mrf.mxu1  ;;  %v2421_v30 = vsel %vm2414_vm14, %v2411_v20, %v2413_v32 }
 0x1ed   : > { %v1512_v25 = vpop.f32.mrf.mxu3  ;;  %v3395_v29 = vld [vmem:[%s5239_s23 + $0xa] sm:$0x3f] }
 0x1ee   : > { %v5941_v28 = vadd.f32 %v1512_v25, %v5882_v36  ;;  %v2444_v36 = vsel %vm296_vm1, %v2421_v30, 0  ;;  %3419 = vrot.lane.b32.xlu0 %v3405_v2, %s5187_s26 }
 0x1ef   : > { %v2576_v41 = vpop.permute.xlu0 %2575 }
 0x1f0   : > { %v2578_v60 = vpop.permute.xlu1 %2577  ;;  %v2588_v63 = vsel %vm2585_vm15, %v2574_v33, %v2576_v41  ;;  %v2743_v13 = vpop.permute.xlu2 %2742 }
 0x1f1   : > { %v2589_v4 = vsel %vm2585_vm15, %v2576_v41, %v2578_v60  ;;  %v2590_v59 = vsel %vm2585_vm15, %v2578_v60, %v2580_v47  ;;  %v2603_v11 = vsel %vm296_vm1, %v2588_v63, 0 }
 0x1f2   : > { %3263 = vrot.lane.b32.xlu2 %v3249_v21, %s5186_s22 }
 0x1f3   : > { %v1501_v18 = vpop.f32.mrf.mxu2 }
 0x1f4   : > { %v1600_v15 = vpop.f32.mrf.mxu0  ;;  %v1613_v39 = vpop.f32.mrf.mxu1 }
 0x1f5   : > { %v1514_v34 = vpop.f32.mrf.mxu3  ;;  %v5951_v43 = vadd.f32 %v1600_v15, %v5885_v48  ;;  %v5954_v37 = vadd.f32 %v1613_v39, %v5902_v57  ;;  %v2600_v48 = vsel %vm296_vm1, %v2587_v42, 0  ;;  %v3247_v57 = vld.sshfl [vmem:[#allocation1 + $0x28] sm:$0xff pattern:$0x73625140]  ;;  %v6027_v42 = vld [vmem:[%s6677_s1 + $0x38] sm:$0xf] }
 0x1f6   : > { %3261 = vrot.lane.b32.xlu1 %v3247_v57, %s5186_s22  ;;  %3417 = vrot.lane.b32.xlu0 %v3403_v17, %s5187_s26  ;;  %3402 = vst [vmem:[#allocation1 + $0x20] ss:$4 sm:$0xff] %v3395_v29 }
 0x1f7   : > { %5008 = vmatmul.msk.bf16.vlgmr.msra.gmra.mxu0 %vm292_vm2, %v5003_v9  ;;  %5009 = vmatmul.msk.bf16.vlgmr.msra.gmra.mxu1 %vm292_vm2, %v5003_v9  ;;  %v2582_v62 = vpop.permute.xlu0 %2581 }
 0x1f8   : > { %5010 = vmatmul.msk.bf16.vlgmr.msra.gmra.mxu2 %vm292_vm2, %v5003_v9  ;;  %2518 = vmatpush.bf16.msra.mxu0 %v2441_v45  ;;  %v2591_v7 = vsel %vm2585_vm15, %v2580_v47, %v2582_v62  ;;  %v3407_v9 = vld.sshfl [vmem:[#allocation1 + $0x10] sm:$0xff pattern:$0x73625140]  ;;  %v2584_v19 = vpop.permute.xlu1 %2583  ;;  %v2741_v31 = vpop.permute.xlu2 %2740 }
 0x1f9   : > { %2531 = vmatpush.bf16.msra.mxu1 %v2444_v36  ;;  %2624 = vmatpush.bf16.msra.mxu2 %v2597_v49  ;;  %v2612_v12 = vsel %vm296_vm1, %v2591_v7, 0  ;;  %v2757_v18 = vsel %vm2756_vm0, %v2741_v31, %v2743_v13  ;;  %3565 = vst [vmem:[#allocation1] ss:$4 sm:$0xff] %v5908_v61 }
 0x1fa   : > { %5012 = vmatmul.msk.bf16.vlgmr.msra.gmra.mxu3 %vm292_vm2, %v5959_v44  ;;  %v2768_v45 = vsel %vm296_vm1, %v2757_v18, 0  ;;  %3423 = vrot.lane.b32.xlu2 %v3409_v16, %s5187_s26 }
 0x1fb   : > { %2637 = vmatpush.bf16.msra.mxu3 %v2600_v48  ;;  %v1626_v46 = vpop.f32.mrf.mxu2 }
 0x1fc   : > { %v5971_v52 = vadd.f32 %v1626_v46, %v5905_v54  ;;  %v1602_v55 = vpop.f32.mrf.mxu0  ;;  %v1615_v56 = vpop.f32.mrf.mxu1 }
 0x1fd   : > { %v1639_v50 = vpop.f32.mrf.mxu3  ;;  %v3411_v15 = vld.sshfl [vmem:[#allocation1 + $0x20] sm:$0xff pattern:$0x73625140]  ;;  %v3415_v48 = vld.sshfl [vmem:[#allocation1 + $0x30] sm:$0xff pattern:$0x73625140] }
 0x1fe   : > { %v5974_v53 = vadd.f32 %v1639_v50, %v5922_v5  ;;  %v2606_v5 = vsel %vm296_vm1, %v2589_v4, 0  ;;  %3421 = vrot.lane.b32.xlu1 %v3407_v9, %s5187_s26  ;;  %3429 = vrot.lane.b32.xlu0 %v3415_v48, %s5187_s26 }
 0x1ff   : > { %v2745_v26 = vpop.permute.xlu0 %2744 }
 0x200   : > { %v2747_v27 = vpop.permute.xlu1 %2746  ;;  %v2758_v30 = vsel %vm2756_vm0, %v2743_v13, %v2745_v26  ;;  %v2753_v55 = vpop.permute.xlu2 %2752  ;;  %v3569_v4 = vld.sshfl [vmem:[#allocation1] sm:$0xff pattern:$0x73625140] }
 0x201   : > { %v2759_v38 = vsel %vm2756_vm0, %v2745_v26, %v2747_v27 }
 0x202   : > { %v2774_v36 = vsel %vm296_vm1, %v2759_v38, 0 }
 0x203   : > { %v1628_v3 = vpop.f32.mrf.mxu2 }
 0x204   : > { %v1652_v6 = vpop.f32.mrf.mxu0  ;;  %v1665_v1 = vpop.f32.mrf.mxu1 }
 0x205   : > { %v1641_v54 = vpop.f32.mrf.mxu3  ;;  %v5985_v10 = vadd.f32 %v1652_v6, %v5925_v0  ;;  %v5988_v8 = vadd.f32 %v1665_v1, %v5938_v14  ;;  %v2609_v0 = vsel %vm296_vm1, %v2590_v59, 0  ;;  %v3573_v6 = vld.sshfl [vmem:[#allocation1 + $0x10] sm:$0xff pattern:$0x73625140] }
 0x206   : > { %3425 = vrot.lane.b32.xlu1 %v3411_v15, %s5187_s26  ;;  %3587 = vrot.lane.b32.xlu0 %v3573_v6, %s5188_s29 }
 0x207   : > { %5013 = vmatmul.msk.bf16.vlgmr.msrb.gmra.mxu0 %vm292_vm2, %v5959_v44  ;;  %5014 = vmatmul.msk.bf16.vlgmr.msrb.gmra.mxu1 %vm292_vm2, %v5959_v44 }
 0x208   : > { %5015 = vmatmul.msk.bf16.vlgmr.msrb.gmra.mxu2 %vm292_vm2, %v5959_v44  ;;  %2650 = vmatpush.bf16.msrb.mxu0 %v2603_v11  ;;  %v2749_v49 = vpop.permute.xlu0 %2748 }
 0x209   : > { %2663 = vmatpush.bf16.msrb.mxu1 %v2606_v5  ;;  %2676 = vmatpush.bf16.msrb.mxu2 %v2609_v0  ;;  %v2760_v60 = vsel %vm2756_vm0, %v2747_v27, %v2749_v49  ;;  %v3575_v5 = vld.sshfl [vmem:[#allocation1 + $0x18] sm:$0xff pattern:$0x73625140] }
 0x20a   : > { %5016 = vmatmul.msk.bf16.vlgmr.msrb.gmra.mxu3 %vm292_vm2, %v5959_v44  ;;  %v2777_v7 = vsel %vm296_vm1, %v2760_v60, 0 }
 0x20b   : > { %2689 = vmatpush.bf16.msrb.mxu3 %v2612_v12  ;;  %v1678_v20 = vpop.f32.mrf.mxu2 }
 0x20c   : > { %v6006_v23 = vadd.f32 %v1678_v20, %v5941_v28  ;;  %v1654_v25 = vpop.f32.mrf.mxu0  ;;  %v1667_v14 = vpop.f32.mrf.mxu1  ;;  %v2592_v28 = vsel %vm2585_vm15, %v2582_v62, %v2584_v19  ;;  %v3413_v20 = vld.sshfl [vmem:[#allocation1 + $0x28] sm:$0xff pattern:$0x73625140] }
 0x20d   : > { %v1771_v22 = vpop.f32.mrf.mxu3  ;;  %3427 = vrot.lane.b32.xlu2 %v3413_v20, %s5187_s26 }
 0x20e   : > { %v6009_v24 = vadd.f32 %v1771_v22, %v5951_v43  ;;  %v2615_v43 = vsel %vm296_vm1, %v2592_v28, 0  ;;  %3583 = vrot.lane.b32.xlu1 %v3569_v4, %s5188_s29  ;;  %v3561_v22 = vld [vmem:[%s5239_s23 + $0xa] sm:$0x3f] }
 0x20f   : > { %3568 = vst [vmem:[#allocation1 + $0x20] ss:$4 sm:$0xff] %v3561_v22 }
 0x210   : > { %v2755_v56 = vpop.permute.xlu0 %2754 }
 0x211   : > { %v2763_v63 = vsel %vm2756_vm0, %v2753_v55, %v2755_v56 }
 0x213   : > { %v1680_v32 = vpop.f32.mrf.mxu2 }
 0x214   : > { %v1784_v34 = vpop.f32.mrf.mxu0  ;;  %v1797_v35 = vpop.f32.mrf.mxu1 }
 0x215   : > { %v1773_v33 = vpop.f32.mrf.mxu3  ;;  %v6019_v39 = vadd.f32 %v1784_v34, %v5954_v37  ;;  %v6022_v40 = vadd.f32 %v1797_v35, %v5971_v52  ;;  %v2771_v37 = vsel %vm296_vm1, %v2758_v30, 0  ;;  %v2751_v52 = vpop.permute.xlu1 %2750 }
 0x216   : > { %v2762_v54 = vsel %vm2756_vm0, %v2751_v52, %v2753_v55  ;;  %3589 = vrot.lane.b32.xlu1 %v3575_v5, %s5188_s29  ;;  %v3579_v34 = vld.sshfl [vmem:[#allocation1 + $0x28] sm:$0xff pattern:$0x73625140]  ;;  %v3581_v35 = vld.sshfl [vmem:[#allocation1 + $0x30] sm:$0xff pattern:$0x73625140] }
 0x217   : > { %5017 = vmatmul.msk.bf16.vlgmr.msra.gmra.mxu0 %vm292_vm2, %v5959_v44  ;;  %5018 = vmatmul.msk.bf16.vlgmr.msra.gmra.mxu1 %vm292_vm2, %v5959_v44  ;;  %v2783_v9 = vsel %vm296_vm1, %v2762_v54, 0 }
 0x218   : > { %5020 = vmatmul.msk.bf16.vlgmr.msra.gmra.mxu2 %vm292_vm2, %v6027_v42  ;;  %2702 = vmatpush.bf16.msra.mxu0 %v2615_v43  ;;  %v2916_v25 = vpop.permute.xlu0 %2915 }
 0x219   : > { %2795 = vmatpush.bf16.msra.mxu1 %v2768_v45  ;;  %2808 = vmatpush.bf16.msra.mxu2 %v2771_v37  ;;  %v3571_v45 = vld.sshfl [vmem:[#allocation1 + $0x8] sm:$0xff pattern:$0x73625140] }
 0x21a   : > { %5021 = vmatmul.msk.bf16.vlgmr.msra.gmra.mxu3 %vm292_vm2, %v6027_v42  ;;  %3593 = vrot.lane.b32.xlu0 %v3579_v34, %s5188_s29  ;;  %3731 = vst [vmem:[#allocation1] ss:$4 sm:$0xff] %v5908_v61 }
 0x21b   : > { %2821 = vmatpush.bf16.msra.mxu3 %v2774_v36  ;;  %v1810_v41 = vpop.f32.mrf.mxu2  ;;  %3585 = vrot.lane.b32.xlu2 %v3571_v45, %s5188_s29 }
 0x21c   : > { %v6044_v44 = vadd.f32 %v1810_v41, %v5974_v53  ;;  %v1786_v46 = vpop.f32.mrf.mxu0  ;;  %v1799_v50 = vpop.f32.mrf.mxu1  ;;  %v2761_v53 = vsel %vm2756_vm0, %v2749_v49, %v2751_v52  ;;  %v3577_v52 = vld.sshfl [vmem:[#allocation1 + $0x20] sm:$0xff pattern:$0x73625140] }
 0x21d   : > { %v1823_v51 = vpop.f32.mrf.mxu3  ;;  %v2780_v2 = vsel %vm296_vm1, %v2761_v53, 0  ;;  %v2912_v11 = vpop.permute.xlu1 %2911 }
 0x21e   : > { %v6047_v47 = vadd.f32 %v1823_v51, %v5985_v10  ;;  %v2786_v10 = vsel %vm296_vm1, %v2763_v63, 0  ;;  %3595 = vrot.lane.b32.xlu1 %v3581_v35, %s5188_s29 }
 0x221   : > { %v3739_v50 = vld.sshfl [vmem:[#allocation1 + $0x10] sm:$0xff pattern:$0x73625140]  ;;  %v3737_v16 = vld.sshfl [vmem:[#allocation1 + $0x8] sm:$0xff pattern:$0x73625140] }
 0x222   : > { %3751 = vrot.lane.b32.xlu0 %v3737_v16, %s5189_s7  ;;  %v3741_v22 = vld.sshfl [vmem:[#allocation1 + $0x18] sm:$0xff pattern:$0x73625140] }
 0x223   : > { %v1812_v57 = vpop.f32.mrf.mxu2  ;;  %3591 = vrot.lane.b32.xlu2 %v3577_v52, %s5188_s29 }
 0x224   : > { %v1836_v62 = vpop.f32.mrf.mxu0  ;;  %v1849_v3 = vpop.f32.mrf.mxu1 }
 0x225   : > { %v1825_v58 = vpop.f32.mrf.mxu3  ;;  %v6056_v1 = vadd.f32 %v1836_v62, %v5988_v8  ;;  %v6059_v59 = vadd.f32 %v1849_v3, %v6006_v23  ;;  %v2914_v8 = vpop.permute.xlu2 %2913 }
 0x226   : > { %v2918_v23 = vpop.permute.xlu1 %2917  ;;  %v2928_v31 = vsel %vm2927_vm3, %v2912_v11, %v2914_v8  ;;  %v2929_v27 = vsel %vm2927_vm3, %v2914_v8, %v2916_v25  ;;  %3753 = vrot.lane.b32.xlu1 %v3739_v50, %s5189_s7 }
 0x227   : > { %5022 = vmatmul.msk.bf16.vlgmr.msrb.gmra.mxu0 %vm292_vm2, %v6027_v42  ;;  %5023 = vmatmul.msk.bf16.vlgmr.msrb.gmra.mxu1 %vm292_vm2, %v6027_v42  ;;  %v2930_v28 = vsel %vm2927_vm3, %v2916_v25, %v2918_v23  ;;  %v2939_v15 = vsel %vm296_vm1, %v2928_v31, 0 }
 0x228   : > { %5024 = vmatmul.msk.bf16.vlgmr.msrb.gmra.mxu2 %vm292_vm2, %v6027_v42  ;;  %2834 = vmatpush.bf16.msrb.mxu0 %v2777_v7 }
 0x229   : > { %2847 = vmatpush.bf16.msrb.mxu1 %v2780_v2  ;;  %2860 = vmatpush.bf16.msrb.mxu2 %v2783_v9  ;;  %v3727_v9 = vld [vmem:[%s5239_s23 + $0xa] sm:$0x3f] }
 0x22a   : > { %5025 = vmatmul.msk.bf16.vlgmr.msrb.gmra.mxu3 %vm292_vm2, %v6027_v42  ;;  %3734 = vst [vmem:[#allocation1 + $0x20] ss:$4 sm:$0xff] %v3727_v9 }
 0x22b   : > { %2873 = vmatpush.bf16.msrb.mxu3 %v2786_v10  ;;  %v1942_v13 = vpop.f32.mrf.mxu2 }
 0x22c   : > { %v6076_v12 = vadd.f32 %v1942_v13, %v6009_v24  ;;  %v1838_v21 = vpop.f32.mrf.mxu0  ;;  %v1851_v17 = vpop.f32.mrf.mxu1  ;;  %v6087_v24 = vld [vmem:[%s6677_s1 + $0x3c] sm:$0xf] }
 0x22d   : > { %v1955_v0 = vpop.f32.mrf.mxu3  ;;  %v2920_v14 = vpop.permute.xlu2 %2919 }
 0x22e   : > { %v6079_v19 = vadd.f32 %v1955_v0, %v6019_v39  ;;  %v2931_v18 = vsel %vm2927_vm3, %v2918_v23, %v2920_v14  ;;  %v2942_v39 = vsel %vm296_vm1, %v2929_v27, 0  ;;  %v6160_v27 = vld [vmem:[%s6677_s1 + $0x40] sm:$0xf] }
 0x22f   : > { %v2948_v43 = vsel %vm296_vm1, %v2931_v18, 0 }
 0x230   : > { %v2924_v37 = vpop.permute.xlu1 %2923 }
 0x231   : > { %v3745_v17 = vld.sshfl [vmem:[#allocation1 + $0x28] sm:$0xff pattern:$0x73625140]  ;;  %v3743_v20 = vld.sshfl [vmem:[#allocation1 + $0x20] sm:$0xff pattern:$0x73625140] }
 0x232   : > { %3759 = vrot.lane.b32.xlu1 %v3745_v17, %s5189_s7  ;;  %3757 = vrot.lane.b32.xlu0 %v3743_v20, %s5189_s7  ;;  %v3747_v50 = vld.sshfl [vmem:[#allocation1 + $0x30] sm:$0xff pattern:$0x73625140] }
 0x233   : > { %v1944_v29 = vpop.f32.mrf.mxu2 }
 0x234   : > { %v1968_v32 = vpop.f32.mrf.mxu0  ;;  %v1981_v33 = vpop.f32.mrf.mxu1 }
 0x235   : > { %v1957_v26 = vpop.f32.mrf.mxu3  ;;  %v6094_v30 = vadd.f32 %v1968_v32, %v6022_v40  ;;  %v6097_v38 = vadd.f32 %v1981_v33, %v6044_v44  ;;  %v2945_v40 = vsel %vm296_vm1, %v2930_v28, 0  ;;  %v2926_v46 = vpop.permute.xlu2 %2925 }
 0x236   : > { %v2934_v62 = vsel %vm2927_vm3, %v2924_v37, %v2926_v46  ;;  %v3735_v26 = vld.sshfl [vmem:[#allocation1] sm:$0xff pattern:$0x73625140] }
 0x237   : > { %5026 = vmatmul.msk.bf16.vlgmr.msra.gmra.mxu0 %vm292_vm2, %v6027_v42  ;;  %5028 = vmatmul.msk.bf16.vlgmr.msra.gmra.mxu1 %vm292_vm2, %v6087_v24  ;;  %v2922_v42 = vpop.permute.xlu0 %2921  ;;  %v2957_v7 = vsel %vm296_vm1, %v2934_v62, 0  ;;  %3897 = vst [vmem:[#allocation1] ss:$4 sm:$0xff] %v5908_v61 }
 0x238   : > { %5029 = vmatmul.msk.bf16.vlgmr.msra.gmra.mxu2 %vm292_vm2, %v6087_v24  ;;  %2966 = vmatpush.bf16.msra.mxu0 %v2939_v15  ;;  %v3085_v55 = vpop.permute.xlu1 %3084  ;;  %v2933_v58 = vsel %vm2927_vm3, %v2922_v42, %v2924_v37 }
 0x239   : > { %2979 = vmatpush.bf16.msra.mxu1 %v2942_v39  ;;  %2992 = vmatpush.bf16.msra.mxu2 %v2945_v40  ;;  %v2954_v6 = vsel %vm296_vm1, %v2933_v58, 0 }
 0x23a   : > { %5030 = vmatmul.msk.bf16.vlgmr.msra.gmra.mxu3 %vm292_vm2, %v6087_v24  ;;  %3749 = vrot.lane.b32.xlu2 %v3735_v26, %s5189_s7 }
 0x23b   : > { %3005 = vmatpush.bf16.msra.mxu3 %v2948_v43  ;;  %v1994_v36 = vpop.f32.mrf.mxu2 }
 0x23c   : > { %v6116_v48 = vadd.f32 %v1994_v36, %v6047_v47  ;;  %v1970_v51 = vpop.f32.mrf.mxu0  ;;  %v1983_v44 = vpop.f32.mrf.mxu1  ;;  %v2932_v47 = vsel %vm2927_vm3, %v2920_v14, %v2922_v42 }
 0x23d   : > { %v2007_v49 = vpop.f32.mrf.mxu3  ;;  %v2951_v4 = vsel %vm296_vm1, %v2932_v47, 0  ;;  %v3087_v2 = vpop.permute.xlu2 %3086  ;;  %v3893_v47 = vld [vmem:[%s5239_s23 + $0xa] sm:$0x3f] }
 0x23e   : > { %v6119_v41 = vadd.f32 %v2007_v49, %v6056_v1  ;;  %v3905_v45 = vld.sshfl [vmem:[#allocation1 + $0x10] sm:$0xff pattern:$0x73625140]  ;;  %v3901_v37 = vld.sshfl [vmem:[#allocation1] sm:$0xff pattern:$0x73625140] }
 0x23f   : > { %v3083_v63 = vpop.permute.xlu0 %3082  ;;  %3915 = vrot.lane.b32.xlu0 %v3901_v37, %s5190_s10  ;;  %v3903_v51 = vld.sshfl [vmem:[#allocation1 + $0x8] sm:$0xff pattern:$0x73625140]  ;;  %v3907_v44 = vld.sshfl [vmem:[#allocation1 + $0x18] sm:$0xff pattern:$0x73625140] }
 0x240   : > { %v3099_v1 = vsel %vm3098_vm4, %v3083_v63, %v3085_v55  ;;  %3917 = vrot.lane.b32.xlu1 %v3903_v51, %s5190_s10  ;;  %4063 = vst [vmem:[#allocation1] ss:$4 sm:$0xff] %v5908_v61 }
 0x241   : > { %3900 = vst [vmem:[#allocation1 + $0x20] ss:$4 sm:$0xff] %v3893_v47 }
 0x242   : > { %3755 = vrot.lane.b32.xlu2 %v3741_v22, %s5189_s7 }
 0x243   : > { %v1996_v56 = vpop.f32.mrf.mxu2 }
 0x244   : > { %v2020_v60 = vpop.f32.mrf.mxu0  ;;  %v2113_v53 = vpop.f32.mrf.mxu1 }
 0x245   : > { %v2009_v57 = vpop.f32.mrf.mxu3  ;;  %v6128_v3 = vadd.f32 %v2020_v60, %v6059_v59  ;;  %v6131_v54 = vadd.f32 %v2113_v53, %v6076_v12  ;;  %v3110_v59 = vsel %vm296_vm1, %v3099_v1, 0  ;;  %v3093_v23 = vpop.permute.xlu2 %3092 }
 0x247   : > { %5031 = vmatmul.msk.bf16.vlgmr.msrb.gmra.mxu0 %vm292_vm2, %v6087_v24  ;;  %5032 = vmatmul.msk.bf16.vlgmr.msrb.gmra.mxu1 %vm292_vm2, %v6087_v24  ;;  %v3089_v21 = vpop.permute.xlu0 %3088  ;;  %v4069_v22 = vld.sshfl [vmem:[#allocation1 + $0x8] sm:$0xff pattern:$0x73625140] }
 0x248   : > { %5033 = vmatmul.msk.bf16.vlgmr.msrb.gmra.mxu2 %vm292_vm2, %v6087_v24  ;;  %3018 = vmatpush.bf16.msrb.mxu0 %v2951_v4  ;;  %v3091_v12 = vpop.permute.xlu1 %3090  ;;  %v3101_v29 = vsel %vm3098_vm4, %v3087_v2, %v3089_v21  ;;  %v6208_v4 = vld [vmem:[%s6677_s1 + $0x44] sm:$0xf]  ;;  %v3911_v37 = vld.sshfl [vmem:[#allocation1 + $0x28] sm:$0xff pattern:$0x73625140] }
 0x249   : > { %3031 = vmatpush.bf16.msrb.mxu1 %v2954_v6  ;;  %3044 = vmatpush.bf16.msrb.mxu2 %v2957_v7  ;;  %v3102_v32 = vsel %vm3098_vm4, %v3089_v21, %v3091_v12  ;;  %v3103_v33 = vsel %vm3098_vm4, %v3091_v12, %v3093_v23  ;;  %v3116_v35 = vsel %vm296_vm1, %v3101_v29, 0 }
 0x24a   : > { %5034 = vmatmul.msk.bf16.vlgmr.msrb.gmra.mxu3 %vm292_vm2, %v6087_v24  ;;  %v3122_v15 = vsel %vm296_vm1, %v3103_v33, 0  ;;  %3921 = vrot.lane.b32.xlu0 %v3907_v44, %s5190_s10 }
 0x24b   : > { %3137 = vmatpush.bf16.msrb.mxu3 %v3110_v59  ;;  %v2126_v10 = vpop.f32.mrf.mxu2  ;;  %3761 = vrot.lane.b32.xlu2 %v3747_v50, %s5189_s7 }
 0x24c   : > { %v6148_v11 = vadd.f32 %v2126_v10, %v6079_v19  ;;  %v2022_v13 = vpop.f32.mrf.mxu0  ;;  %v2115_v0 = vpop.f32.mrf.mxu1  ;;  %v3100_v19 = vsel %vm3098_vm4, %v3085_v55, %v3087_v2  ;;  %v3909_v10 = vld.sshfl [vmem:[#allocation1 + $0x20] sm:$0xff pattern:$0x73625140] }
 0x24d   : > { %v2139_v8 = vpop.f32.mrf.mxu3  ;;  %v3113_v34 = vsel %vm296_vm1, %v3100_v19, 0  ;;  %v3254_v46 = vpop.permute.xlu2 %3253  ;;  %3923 = vrot.lane.b32.xlu1 %v3909_v10, %s5190_s10 }
 0x24e   : > { %v6151_v5 = vadd.f32 %v2139_v8, %v6094_v30  ;;  %v3119_v30 = vsel %vm296_vm1, %v3102_v32, 0  ;;  %v3913_v8 = vld.sshfl [vmem:[#allocation1 + $0x30] sm:$0xff pattern:$0x73625140] }
 0x250   : > { %v3252_v39 = vpop.permute.xlu1 %3251 }
 0x251   : > { %v3266_v53 = vsel %vm3265_vm5, %v3252_v39, %v3254_v46 }
 0x252   : > { %3927 = vrot.lane.b32.xlu0 %v3913_v8, %s5190_s10 }
 0x253   : > { %v2128_v25 = vpop.f32.mrf.mxu2  ;;  %3919 = vrot.lane.b32.xlu2 %v3905_v45, %s5190_s10 }
 0x254   : > { %v2152_v24 = vpop.f32.mrf.mxu0  ;;  %v2165_v31 = vpop.f32.mrf.mxu1 }
 0x255   : > { %v2141_v14 = vpop.f32.mrf.mxu3  ;;  %v6167_v28 = vadd.f32 %v2152_v24, %v6097_v38  ;;  %v6170_v18 = vadd.f32 %v2165_v31, %v6116_v48  ;;  %v3095_v38 = vpop.permute.xlu0 %3094  ;;  %4083 = vrot.lane.b32.xlu1 %v4069_v22, %s5191_s13 }
 0x256   : > { %v3104_v56 = vsel %vm3098_vm4, %v3093_v23, %v3095_v38  ;;  %v3258_v59 = vpop.permute.xlu2 %3257 }
 0x257   : > { %5036 = vmatmul.msk.bf16.vlgmr.msra.gmra.mxu0 %vm292_vm2, %v6160_v27  ;;  %5037 = vmatmul.msk.bf16.vlgmr.msra.gmra.mxu1 %vm292_vm2, %v6160_v27  ;;  %v3125_v6 = vsel %vm296_vm1, %v3104_v56, 0 }
 0x258   : > { %5038 = vmatmul.msk.bf16.vlgmr.msra.gmra.mxu2 %vm292_vm2, %v6160_v27  ;;  %3150 = vmatpush.bf16.msra.mxu0 %v3113_v34 }
 0x259   : > { %3163 = vmatpush.bf16.msra.mxu1 %v3116_v35  ;;  %3176 = vmatpush.bf16.msra.mxu2 %v3119_v30  ;;  %v4067_v30 = vld.sshfl [vmem:[#allocation1] sm:$0xff pattern:$0x73625140] }
 0x25a   : > { %5039 = vmatmul.msk.bf16.vlgmr.msra.gmra.mxu3 %vm292_vm2, %v6160_v27 }
 0x25b   : > { %3189 = vmatpush.bf16.msra.mxu3 %v3122_v15  ;;  %v2178_v40 = vpop.f32.mrf.mxu2  ;;  %3925 = vrot.lane.b32.xlu2 %v3911_v37, %s5190_s10 }
 0x25c   : > { %v6185_v42 = vadd.f32 %v2178_v40, %v6119_v41  ;;  %v2154_v49 = vpop.f32.mrf.mxu0  ;;  %v2167_v48 = vpop.f32.mrf.mxu1 }
 0x25d   : > { %v2191_v43 = vpop.f32.mrf.mxu3  ;;  %v3097_v41 = vpop.permute.xlu1 %3096  ;;  %4081 = vrot.lane.b32.xlu1 %v4067_v30, %s5191_s13 }
 0x25e   : > { %v6188_v36 = vadd.f32 %v2191_v43, %v6128_v3  ;;  %v3256_v16 = vpop.permute.xlu0 %3255  ;;  %v3105_v57 = vsel %vm3098_vm4, %v3095_v38, %v3097_v41  ;;  %v3264_v17 = vpop.permute.xlu2 %3263  ;;  %v4059_v41 = vld [vmem:[%s5239_s23 + $0xa] sm:$0x3f] }
 0x25f   : > { %v3267_v62 = vsel %vm3265_vm5, %v3254_v46, %v3256_v16  ;;  %v3128_v1 = vsel %vm296_vm1, %v3105_v57, 0  ;;  %v3268_v14 = vsel %vm3265_vm5, %v3256_v16, %v3258_v59  ;;  %4066 = vst [vmem:[#allocation1 + $0x20] ss:$4 sm:$0xff] %v4059_v41  ;;  %v6268_v57 = vld [vmem:[%s6677_s1 + $0x48] sm:$0xf]  ;;  %v3294_v47 = vsel %vm296_vm1, %v3264_v17, 0 }
 0x260   : > { %v3279_v7 = vsel %vm296_vm1, %v3267_v62, 0  ;;  %v3282_v32 = vsel %vm296_vm1, %v3268_v14, 0 }
 0x263   : > { %v2180_v52 = vpop.f32.mrf.mxu2 }
 0x264   : > { %v2284_v58 = vpop.f32.mrf.mxu0  ;;  %v2297_v60 = vpop.f32.mrf.mxu1 }
 0x265   : > { %v2193_v55 = vpop.f32.mrf.mxu3  ;;  %v2366_v3 = vadd.f32 %v2284_v58, %v6131_v54  ;;  %v6203_v63 = vadd.f32 %v2297_v60, %v6148_v11  ;;  %v3276_v54 = vsel %vm296_vm1, %v3266_v53, 0 }
 0x266   : > { %v3260_v21 = vpop.permute.xlu0 %3259  ;;  %v3424_v48 = vpop.permute.xlu2 %3423 }
 0x267   : > { %5040 = vmatmul.msk.bf16.vlgmr.msrb.gmra.mxu0 %vm292_vm2, %v6160_v27  ;;  %5041 = vmatmul.msk.bf16.vlgmr.msrb.gmra.mxu1 %vm292_vm2, %v6160_v27 }
 0x268   : > { %5042 = vmatmul.msk.bf16.vlgmr.msrb.gmra.mxu2 %vm292_vm2, %v6160_v27  ;;  %3202 = vmatpush.bf16.msrb.mxu0 %v3125_v6  ;;  %v3262_v20 = vpop.permute.xlu1 %3261  ;;  %v4079_v6 = vld.sshfl [vmem:[#allocation1 + $0x30] sm:$0xff pattern:$0x73625140] }
 0x269   : > { %3215 = vmatpush.bf16.msrb.mxu1 %v3128_v1  ;;  %3303 = vmatpush.bf16.msrb.mxu2 %v3276_v54  ;;  %v3270_v26 = vsel %vm3265_vm5, %v3260_v21, %v3262_v20  ;;  %v3271_v24 = vsel %vm3265_vm5, %v3262_v20, %v3264_v17 }
 0x26a   : > { %5044 = vmatmul.msk.bf16.vlgmr.msrb.gmra.mxu3 %vm292_vm2, %v6208_v4  ;;  %v3291_v34 = vsel %vm296_vm1, %v3271_v24, 0  ;;  %4093 = vrot.lane.b32.xlu1 %v4079_v6, %s5191_s13 }
 0x26b   : > { %3316 = vmatpush.bf16.msrb.mxu3 %v3279_v7  ;;  %v2310_v2 = vpop.f32.mrf.mxu2 }
 0x26c   : > { %v2368_v11 = vadd.f32 %v2310_v2, %v6151_v5  ;;  %v2286_v0 = vpop.f32.mrf.mxu0  ;;  %v2299_v12 = vpop.f32.mrf.mxu1  ;;  %v3269_v5 = vsel %vm3265_vm5, %v3258_v59, %v3260_v21  ;;  %v4071_v59 = vld.sshfl [vmem:[#allocation1 + $0x10] sm:$0xff pattern:$0x73625140]  ;;  %v4225_v21 = vld [vmem:[%s5239_s23 + $0xa] sm:$0x3f] }
 0x26d   : > { %v2323_v9 = vpop.f32.mrf.mxu3  ;;  %v3285_v33 = vsel %vm296_vm1, %v3269_v5, 0  ;;  %4085 = vrot.lane.b32.xlu2 %v4071_v59, %s5191_s13  ;;  %v4075_v12 = vld.sshfl [vmem:[#allocation1 + $0x20] sm:$0xff pattern:$0x73625140] }
 0x26e   : > { %v6224_v13 = vadd.f32 %v2323_v9, %v6167_v28  ;;  %v3288_v28 = vsel %vm296_vm1, %v3270_v26, 0  ;;  %v3420_v35 = vpop.permute.xlu0 %3419  ;;  %v3428_v2 = vpop.permute.xlu2 %3427 }
 0x270   : > { %v3422_v49 = vpop.permute.xlu1 %3421 }
 0x271   : > { %v3433_v16 = vsel %vm3431_vm6, %v3420_v35, %v3422_v49  ;;  %v3434_v52 = vsel %vm3431_vm6, %v3422_v49, %v3424_v48 }
 0x272   : > { %v3445_v60 = vsel %vm296_vm1, %v3433_v16, 0  ;;  %v3448_v53 = vsel %vm296_vm1, %v3434_v52, 0 }
 0x273   : > { %v2312_v23 = vpop.f32.mrf.mxu2 }
 0x274   : > { %v2336_v19 = vpop.f32.mrf.mxu0  ;;  %v2349_v29 = vpop.f32.mrf.mxu1 }
 0x275   : > { %v2325_v25 = vpop.f32.mrf.mxu3  ;;  %v2370_v31 = vadd.f32 %v2336_v19, %v6170_v18  ;;  %v6236_v27 = vadd.f32 %v2349_v29, %v6185_v42  ;;  %v4073_v18 = vld.sshfl [vmem:[#allocation1 + $0x18] sm:$0xff pattern:$0x73625140]  ;;  %4089 = vrot.lane.b32.xlu2 %v4075_v12, %s5191_s13 }
 0x276   : > { %4087 = vrot.lane.b32.xlu0 %v4073_v18, %s5191_s13  ;;  %v3418_v42 = vpop.permute.xlu0 %3417  ;;  %4229 = vst [vmem:[#allocation1] ss:$4 sm:$0xff] %v5908_v61  ;;  %v3586_v24 = vpop.permute.xlu2 %3585 }
 0x277   : > { %5045 = vmatmul.msk.bf16.vlgmr.msra.gmra.mxu0 %vm292_vm2, %v6208_v4  ;;  %5046 = vmatmul.msk.bf16.vlgmr.msra.gmra.mxu1 %vm292_vm2, %v6208_v4  ;;  %v3432_v46 = vsel %vm3431_vm6, %v3418_v42, %v3420_v35 }
 0x278   : > { %5047 = vmatmul.msk.bf16.vlgmr.msra.gmra.mxu2 %vm292_vm2, %v6208_v4  ;;  %3329 = vmatpush.bf16.msra.mxu0 %v3282_v32  ;;  %v3442_v58 = vsel %vm296_vm1, %v3432_v46, 0  ;;  %v3426_v9 = vpop.permute.xlu1 %3425 }
 0x279   : > { %3342 = vmatpush.bf16.msra.mxu1 %v3285_v33  ;;  %3355 = vmatpush.bf16.msra.mxu2 %v3288_v28  ;;  %v3436_v0 = vsel %vm3431_vm6, %v3426_v9, %v3428_v2 }
 0x27a   : > { %5048 = vmatmul.msk.bf16.vlgmr.msra.gmra.mxu3 %vm292_vm2, %v6208_v4  ;;  %v3454_v19 = vsel %vm296_vm1, %v3436_v0, 0 }
 0x27b   : > { %3368 = vmatpush.bf16.msra.mxu3 %v3291_v34  ;;  %v2362_v15 = vpop.f32.mrf.mxu2 }
 0x27c   : > { %v2372_v38 = vadd.f32 %v2362_v15, %v6188_v36  ;;  %v2338_v43 = vpop.f32.mrf.mxu0  ;;  %v2351_v45 = vpop.f32.mrf.mxu1 }
 0x27d   : > { %v2455_v39 = vpop.f32.mrf.mxu3  ;;  %v4235_v23 = vld.sshfl [vmem:[#allocation1 + $0x8] sm:$0xff pattern:$0x73625140]  ;;  %v4237_v61 = vld.sshfl [vmem:[#allocation1 + $0x10] sm:$0xff pattern:$0x73625140] }
 0x27e   : > { %v6252_v40 = vadd.f32 %v2455_v39, %v2366_v3  ;;  %v3430_v10 = vpop.permute.xlu0 %3429  ;;  %4251 = vrot.lane.b32.xlu1 %v4237_v61, %s5192_s16  ;;  %v3592_v39 = vpop.permute.xlu2 %3591 }
 0x27f   : > { %v3437_v22 = vsel %vm3431_vm6, %v3428_v2, %v3430_v10  ;;  %v3460_v26 = vsel %vm296_vm1, %v3430_v10, 0 }
 0x280   : > { %v3457_v29 = vsel %vm296_vm1, %v3437_v22, 0 }
 0x283   : > { %v2364_v51 = vpop.f32.mrf.mxu2 }
 0x284   : > { %v2468_v50 = vpop.f32.mrf.mxu0  ;;  %v2481_v36 = vpop.f32.mrf.mxu1 }
 0x285   : > { %v2457_v44 = vpop.f32.mrf.mxu3  ;;  %v6261_v55 = vadd.f32 %v2468_v50, %v6203_v63  ;;  %v6263_v56 = vadd.f32 %v2481_v36, %v2368_v11  ;;  %v4077_v63 = vld.sshfl [vmem:[#allocation1 + $0x28] sm:$0xff pattern:$0x73625140]  ;;  %v4239_v50 = vld.sshfl [vmem:[#allocation1 + $0x18] sm:$0xff pattern:$0x73625140] }
 0x286   : > { %4091 = vrot.lane.b32.xlu0 %v4077_v63, %s5191_s13  ;;  %4232 = vst [vmem:[#allocation1 + $0x20] ss:$4 sm:$0xff] %v4225_v21  ;;  %v3588_v15 = vpop.permute.xlu0 %3587 }
 0x287   : > { %5049 = vmatmul.msk.bf16.vlgmr.msrb.gmra.mxu0 %vm292_vm2, %v6208_v4  ;;  %5050 = vmatmul.msk.bf16.vlgmr.msrb.gmra.mxu1 %vm292_vm2, %v6208_v4  ;;  %v3599_v37 = vsel %vm3597_vm7, %v3586_v24, %v3588_v15 }
 0x288   : > { %5052 = vmatmul.msk.bf16.vlgmr.msrb.gmra.mxu2 %vm292_vm2, %v6268_v57  ;;  %3381 = vmatpush.bf16.msrb.mxu0 %v3294_v47  ;;  %v3611_v16 = vsel %vm296_vm1, %v3599_v37, 0  ;;  %v4233_v47 = vld.sshfl [vmem:[#allocation1] sm:$0xff pattern:$0x73625140] }
 0x289   : > { %3469 = vmatpush.bf16.msrb.mxu1 %v3442_v58  ;;  %3482 = vmatpush.bf16.msrb.mxu2 %v3445_v60 }
 0x28a   : > { %5053 = vmatmul.msk.bf16.vlgmr.msrb.gmra.mxu3 %vm292_vm2, %v6268_v57  ;;  %4247 = vrot.lane.b32.xlu2 %v4233_v47, %s5192_s16 }
 0x28b   : > { %3495 = vmatpush.bf16.msrb.mxu3 %v3448_v53  ;;  %v2494_v62 = vpop.f32.mrf.mxu2 }
 0x28c   : > { %v6283_v4 = vadd.f32 %v2494_v62, %v6224_v13  ;;  %v2470_v54 = vpop.f32.mrf.mxu0  ;;  %v2483_v7 = vpop.f32.mrf.mxu1  ;;  %v3435_v13 = vsel %vm3431_vm6, %v3424_v48, %v3426_v9  ;;  %v5059_v48 = vld [vmem:[%s6677_s1 + $0x4c] sm:$0xf] }
 0x28d   : > { %v2507_v3 = vpop.f32.mrf.mxu3  ;;  %v3451_v5 = vsel %vm296_vm1, %v3435_v13, 0  ;;  %v4241_v18 = vld.sshfl [vmem:[#allocation1 + $0x20] sm:$0xff pattern:$0x73625140] }
 0x28e   : > { %v6285_v1 = vadd.f32 %v2507_v3, %v2370_v31  ;;  %4249 = vrot.lane.b32.xlu0 %v4235_v23, %s5192_s16  ;;  %v3584_v31 = vpop.permute.xlu1 %3583  ;;  %v4243_v30 = vld.sshfl [vmem:[#allocation1 + $0x28] sm:$0xff pattern:$0x73625140]  ;;  %v3594_v58 = vpop.permute.xlu0 %3593 }
 0x28f   : > { %4257 = vrot.lane.b32.xlu1 %v4243_v30, %s5192_s16  ;;  %v3602_v9 = vsel %vm3597_vm7, %v3592_v39, %v3594_v58 }
 0x290   : > { %v3620_v21 = vsel %vm296_vm1, %v3602_v9, 0 }
 0x292   : > { %4253 = vrot.lane.b32.xlu2 %v4239_v50, %s5192_s16 }
 0x293   : > { %v2496_v8 = vpop.f32.mrf.mxu2 }
 0x294   : > { %v2520_v17 = vpop.f32.mrf.mxu0  ;;  %v2533_v20 = vpop.f32.mrf.mxu1 }
 0x295   : > { %v2509_v11 = vpop.f32.mrf.mxu3  ;;  %v6296_v25 = vadd.f32 %v2520_v17, %v6236_v27  ;;  %v6298_v14 = vadd.f32 %v2533_v20, %v2372_v38  ;;  %v3750_v7 = vpop.permute.xlu2 %3749 }
 0x296   : > { %4255 = vrot.lane.b32.xlu0 %v4241_v18, %s5192_s16  ;;  %v3590_v38 = vpop.permute.xlu1 %3589  ;;  %v4245_v11 = vld.sshfl [vmem:[#allocation1 + $0x30] sm:$0xff pattern:$0x73625140]  ;;  %v3752_v12 = vpop.permute.xlu0 %3751 }
 0x297   : > { %5054 = vmatmul.msk.bf16.vlgmr.msra.gmra.mxu0 %vm292_vm2, %v6268_v57  ;;  %5055 = vmatmul.msk.bf16.vlgmr.msra.gmra.mxu1 %vm292_vm2, %v6268_v57  ;;  %v3600_v51 = vsel %vm3597_vm7, %v3588_v15, %v3590_v38  ;;  %v3601_v44 = vsel %vm3597_vm7, %v3590_v38, %v3592_v39  ;;  %v3764_v20 = vsel %vm3763_vm8, %v3750_v7, %v3752_v12 }
 0x298   : > { %5056 = vmatmul.msk.bf16.vlgmr.msra.gmra.mxu2 %vm292_vm2, %v6268_v57  ;;  %3508 = vmatpush.bf16.msra.mxu0 %v3451_v5  ;;  %v3614_v52 = vsel %vm296_vm1, %v3600_v51, 0  ;;  %v3774_v23 = vsel %vm296_vm1, %v3764_v20, 0 }
 0x299   : > { %3521 = vmatpush.bf16.msra.mxu1 %v3454_v19  ;;  %3534 = vmatpush.bf16.msra.mxu2 %v3457_v29 }
 0x29a   : > { %5057 = vmatmul.msk.bf16.vlgmr.msra.gmra.mxu3 %vm292_vm2, %v6268_v57  ;;  %4259 = vrot.lane.b32.xlu2 %v4245_v11, %s5192_s16 }
 0x29b   : > { %3547 = vmatpush.bf16.msra.mxu3 %v3460_v26  ;;  %v2626_v27 = vpop.f32.mrf.mxu2 }
 0x29c   : > { %v6316_v33 = vadd.f32 %v2626_v27, %v6252_v40  ;;  %v2522_v34 = vpop.f32.mrf.mxu0  ;;  %v2535_v35 = vpop.f32.mrf.mxu1  ;;  %v3598_v40 = vsel %vm3597_vm7, %v3584_v31, %v3586_v24 }
 0x29d   : > { %v2639_v32 = vpop.f32.mrf.mxu3  ;;  %v3608_v36 = vsel %vm296_vm1, %v3598_v40, 0  ;;  %v3756_v27 = vpop.permute.xlu2 %3755 }
 0x29e   : > { %v6319_v28 = vadd.f32 %v2639_v32, %v6261_v55  ;;  %v3617_v55 = vsel %vm296_vm1, %v3601_v44, 0  ;;  %v3596_v6 = vpop.permute.xlu1 %3595 }
 0x29f   : > { %v3626_v22 = vsel %vm296_vm1, %v3596_v6, 0 }
 0x2a3   : > { %v2628_v43 = vpop.f32.mrf.mxu2 }
 0x2a4   : > { %v2652_v42 = vpop.f32.mrf.mxu0  ;;  %v2665_v49 = vpop.f32.mrf.mxu1  ;;  %v5067_v43 = vld [vmem:[%s6677_s1 + $0x50] sm:$0xf] }
 0x2a5   : > { %v2641_v45 = vpop.f32.mrf.mxu3  ;;  %v6331_v46 = vadd.f32 %v2652_v42, %v6263_v56  ;;  %v6334_v41 = vadd.f32 %v2665_v49, %v6283_v4  ;;  %v6344_v56 = vld [vmem:[%s5239_s23 + $0x2] sm:$0xff]  ;;  %v3758_v37 = vpop.permute.xlu0 %3757 }
 0x2a6   : > { %4395 = vst [vmem:[#allocation1] ss:$4 sm:$0xff] %v6344_v56 }
 0x2a7   : > { %5058 = vmatmul.msk.bf16.vlgmr.msrb.gmra.mxu0 %vm292_vm2, %v6268_v57  ;;  %5060 = vmatmul.msk.bf16.vlgmr.msrb.gmra.mxu1 %vm292_vm2, %v5059_v48 }
 0x2a8   : > { %5061 = vmatmul.msk.bf16.vlgmr.msrb.gmra.mxu2 %vm292_vm2, %v5059_v48  ;;  %3635 = vmatpush.bf16.msrb.mxu0 %v3608_v36 }
 0x2a9   : > { %3648 = vmatpush.bf16.msrb.mxu1 %v3611_v16  ;;  %3661 = vmatpush.bf16.msrb.mxu2 %v3614_v52 }
 0x2aa   : > { %5062 = vmatmul.msk.bf16.vlgmr.msrb.gmra.mxu3 %vm292_vm2, %v5059_v48 }
 0x2ab   : > { %3674 = vmatpush.bf16.msrb.mxu3 %v3617_v55  ;;  %v2678_v57 = vpop.f32.mrf.mxu2 }
 0x2ac   : > { %v6351_v53 = vadd.f32 %v2678_v57, %v6285_v1  ;;  %v2654_v3 = vpop.f32.mrf.mxu0  ;;  %v2667_v63 = vpop.f32.mrf.mxu1  ;;  %v3603_v1 = vsel %vm3597_vm7, %v3594_v58, %v3596_v6 }
 0x2ad   : > { %v2691_v60 = vpop.f32.mrf.mxu3  ;;  %v4399_v4 = vld.sshfl [vmem:[#allocation1] sm:$0xff pattern:$0x73625140]  ;;  %v4401_v54 = vld.sshfl [vmem:[#allocation1 + $0x8] sm:$0xff pattern:$0x73625140] }
 0x2ae   : > { %v6354_v62 = vadd.f32 %v2691_v60, %v6296_v25  ;;  %4413 = vrot.lane.b32.xlu0 %v4399_v4, %s5193_s21  ;;  %4415 = vrot.lane.b32.xlu1 %v4401_v54, %s5193_s21  ;;  %v3623_v17 = vsel %vm296_vm1, %v3603_v1, 0  ;;  %v4391_v25 = vld [vmem:[%s5239_s23 + $0xa] sm:$0x3f]  ;;  %v4405_v61 = vld.sshfl [vmem:[#allocation1 + $0x18] sm:$0xff pattern:$0x73625140] }
 0x2af   : > { %4398 = vst [vmem:[#allocation1 + $0x20] ss:$4 sm:$0xff] %v4391_v25 }
 0x2b1   : > { %v3916_v60 = vpop.permute.xlu0 %3915 }
 0x2b3   : > { %v2680_v59 = vpop.f32.mrf.mxu2 }
 0x2b4   : > { %v2704_v10 = vpop.f32.mrf.mxu0  ;;  %v2797_v8 = vpop.f32.mrf.mxu1 }
 0x2b5   : > { %v2693_v2 = vpop.f32.mrf.mxu3  ;;  %v6362_v13 = vadd.f32 %v2704_v10, %v6298_v14  ;;  %v6365_v0 = vadd.f32 %v2797_v8, %v6316_v33  ;;  %v3754_v14 = vpop.permute.xlu1 %3753  ;;  %v6430_v10 = vld [vmem:[%s6677_s1 + $0x54] sm:$0xf] }
 0x2b6   : > { %4419 = vrot.lane.b32.xlu0 %v4405_v61, %s5193_s21  ;;  %v4407_v32 = vld.sshfl [vmem:[#allocation1 + $0x20] sm:$0xff pattern:$0x73625140]  ;;  %v4411_v33 = vld.sshfl [vmem:[#allocation1 + $0x30] sm:$0xff pattern:$0x73625140]  ;;  %v3765_v30 = vsel %vm3763_vm8, %v3752_v12, %v3754_v14  ;;  %v3766_v15 = vsel %vm3763_vm8, %v3754_v14, %v3756_v27 }
 0x2b7   : > { %5063 = vmatmul.msk.bf16.vlgmr.msra.gmra.mxu0 %vm292_vm2, %v5059_v48  ;;  %5064 = vmatmul.msk.bf16.vlgmr.msra.gmra.mxu1 %vm292_vm2, %v5059_v48  ;;  %v3777_v42 = vsel %vm296_vm1, %v3765_v30, 0  ;;  %v3780_v49 = vsel %vm296_vm1, %v3766_v15, 0  ;;  %v4409_v57 = vld.sshfl [vmem:[#allocation1 + $0x28] sm:$0xff pattern:$0x73625140] }
 0x2b8   : > { %5065 = vmatmul.msk.bf16.vlgmr.msra.gmra.mxu2 %vm292_vm2, %v5059_v48  ;;  %3687 = vmatpush.bf16.msra.mxu0 %v3620_v21  ;;  %v4557_v21 = vld [vmem:[%s5239_s23 + $0xa] sm:$0x3f] }
 0x2b9   : > { %3700 = vmatpush.bf16.msra.mxu1 %v3623_v17  ;;  %3713 = vmatpush.bf16.msra.mxu2 %v3626_v22  ;;  %4564 = vst [vmem:[#allocation1 + $0x20] ss:$4 sm:$0xff] %v4557_v21 }
 0x2ba   : > { %5066 = vmatmul.msk.bf16.vlgmr.msra.gmra.mxu3 %vm292_vm2, %v5059_v48  ;;  %4421 = vrot.lane.b32.xlu1 %v4407_v32, %s5193_s21  ;;  %v3767_v48 = vsel %vm3763_vm8, %v3756_v27, %v3758_v37 }
 0x2bb   : > { %3801 = vmatpush.bf16.msra.mxu3 %v3774_v23  ;;  %v2810_v5 = vpop.f32.mrf.mxu2  ;;  %v3783_v44 = vsel %vm296_vm1, %v3767_v48, 0 }
 0x2bc   : > { %v6380_v29 = vadd.f32 %v2810_v5, %v6319_v28  ;;  %v2706_v24 = vpop.f32.mrf.mxu0  ;;  %v2799_v31 = vpop.f32.mrf.mxu1  ;;  %v4403_v28 = vld.sshfl [vmem:[#allocation1 + $0x10] sm:$0xff pattern:$0x73625140] }
 0x2bd   : > { %v2823_v19 = vpop.f32.mrf.mxu3  ;;  %v3760_v34 = vpop.permute.xlu1 %3759  ;;  %4417 = vrot.lane.b32.xlu2 %v4403_v28, %s5193_s21  ;;  %4561 = vst [vmem:[#allocation1] ss:$4 sm:$0xff] %v6344_v56 }
 0x2be   : > { %v6383_v26 = vadd.f32 %v2823_v19, %v6331_v46  ;;  %4425 = vrot.lane.b32.xlu0 %v4411_v33, %s5193_s21  ;;  %v3768_v51 = vsel %vm3763_vm8, %v3758_v37, %v3760_v34  ;;  %v3922_v12 = vpop.permute.xlu0 %3921 }
 0x2bf   : > { %v3786_v46 = vsel %vm296_vm1, %v3768_v51, 0 }
 0x2c0   : > { %v4575_v19 = vld.sshfl [vmem:[#allocation1 + $0x28] sm:$0xff pattern:$0x73625140] }
 0x2c3   : > { %v2812_v35 = vpop.f32.mrf.mxu2 }
 0x2c4   : > { %v2836_v39 = vpop.f32.mrf.mxu0  ;;  %v2849_v38 = vpop.f32.mrf.mxu1  ;;  %v4565_v16 = vld.sshfl [vmem:[#allocation1] sm:$0xff pattern:$0x73625140]  ;;  %v4569_v52 = vld.sshfl [vmem:[#allocation1 + $0x10] sm:$0xff pattern:$0x73625140] }
 0x2c5   : > { %v2825_v18 = vpop.f32.mrf.mxu3  ;;  %v6395_v45 = vadd.f32 %v2836_v39, %v6334_v41  ;;  %v6398_v40 = vadd.f32 %v2849_v38, %v6351_v53  ;;  %v3762_v41 = vpop.permute.xlu2 %3761  ;;  %4579 = vrot.lane.b32.xlu1 %v4565_v16, %s5194_s25  ;;  %4423 = vrot.lane.b32.xlu2 %v4409_v57, %s5193_s21  ;;  %v4571_v63 = vld.sshfl [vmem:[#allocation1 + $0x18] sm:$0xff pattern:$0x73625140]  ;;  %v4567_v61 = vld.sshfl [vmem:[#allocation1 + $0x8] sm:$0xff pattern:$0x73625140] }
 0x2c6   : > { %4583 = vrot.lane.b32.xlu0 %v4569_v52, %s5194_s25  ;;  %v3918_v3 = vpop.permute.xlu1 %3917  ;;  %v3769_v4 = vsel %vm3763_vm8, %v3760_v34, %v3762_v41  ;;  %v3792_v11 = vsel %vm296_vm1, %v3762_v41, 0  ;;  %v3928_v31 = vpop.permute.xlu0 %3927 }
 0x2c7   : > { %5068 = vmatmul.msk.bf16.vlgmr.msrb.gmra.mxu0 %vm292_vm2, %v5067_v43  ;;  %5069 = vmatmul.msk.bf16.vlgmr.msrb.gmra.mxu1 %vm292_vm2, %v5067_v43  ;;  %v3930_v59 = vsel %vm3929_vm9, %v3916_v60, %v3918_v3  ;;  %v3789_v8 = vsel %vm296_vm1, %v3769_v4, 0 }
 0x2c8   : > { %5070 = vmatmul.msk.bf16.vlgmr.msrb.gmra.mxu2 %vm292_vm2, %v5067_v43  ;;  %3814 = vmatpush.bf16.msrb.mxu0 %v3777_v42 }
 0x2c9   : > { %3827 = vmatpush.bf16.msrb.mxu1 %v3780_v49  ;;  %3840 = vmatpush.bf16.msrb.mxu2 %v3783_v44 }
 0x2ca   : > { %5071 = vmatmul.msk.bf16.vlgmr.msrb.gmra.mxu3 %vm292_vm2, %v5067_v43 }
 0x2cb   : > { %3853 = vmatpush.bf16.msrb.mxu3 %v3786_v46  ;;  %v2862_v50 = vpop.f32.mrf.mxu2  ;;  %v4573_v46 = vld.sshfl [vmem:[#allocation1 + $0x20] sm:$0xff pattern:$0x73625140] }
 0x2cc   : > { %v6411_v55 = vadd.f32 %v2862_v50, %v6354_v62  ;;  %v2838_v56 = vpop.f32.mrf.mxu0  ;;  %v2851_v58 = vpop.f32.mrf.mxu1 }
 0x2cd   : > { %v2875_v36 = vpop.f32.mrf.mxu3  ;;  %v3920_v53 = vpop.permute.xlu2 %3919  ;;  %4585 = vrot.lane.b32.xlu1 %v4571_v63, %s5194_s25  ;;  %4581 = vrot.lane.b32.xlu2 %v4567_v61, %s5194_s25  ;;  %v3958_v63 = vsel %vm296_vm1, %v3928_v31, 0 }
 0x2ce   : > { %v6414_v47 = vadd.f32 %v2875_v36, %v6362_v13  ;;  %v3931_v2 = vsel %vm3929_vm9, %v3918_v3, %v3920_v53  ;;  %v3940_v13 = vsel %vm296_vm1, %v3930_v59, 0  ;;  %v3924_v5 = vpop.permute.xlu1 %3923  ;;  %4589 = vrot.lane.b32.xlu0 %v4575_v19, %s5194_s25  ;;  %v6482_v3 = vld [vmem:[%s6677_s1 + $0x58] sm:$0xf] }
 0x2cf   : > { %v3933_v33 = vsel %vm3929_vm9, %v3922_v12, %v3924_v5 }
 0x2d0   : > { %v3949_v38 = vsel %vm296_vm1, %v3933_v33, 0 }
 0x2d3   : > { %v2864_v62 = vpop.f32.mrf.mxu2 }
 0x2d4   : > { %v2968_v54 = vpop.f32.mrf.mxu0  ;;  %v2981_v7 = vpop.f32.mrf.mxu1 }
 0x2d5   : > { %v2877_v6 = vpop.f32.mrf.mxu3  ;;  %v3050_v9 = vadd.f32 %v2968_v54, %v6365_v0  ;;  %v6425_v1 = vadd.f32 %v2981_v7, %v6380_v29  ;;  %v3943_v0 = vsel %vm296_vm1, %v3931_v2, 0  ;;  %v4577_v29 = vld.sshfl [vmem:[#allocation1 + $0x30] sm:$0xff pattern:$0x73625140]  ;;  %v3926_v24 = vpop.permute.xlu2 %3925  ;;  %4587 = vrot.lane.b32.xlu2 %v4573_v46, %s5194_s25 }
 0x2d6   : > { %4591 = vrot.lane.b32.xlu1 %v4577_v29, %s5194_s25  ;;  %v3934_v18 = vsel %vm3929_vm9, %v3924_v5, %v3926_v24  ;;  %v3935_v30 = vsel %vm3929_vm9, %v3926_v24, %v3928_v31 }
 0x2d7   : > { %5072 = vmatmul.msk.bf16.vlgmr.msra.gmra.mxu0 %vm292_vm2, %v5067_v43  ;;  %5073 = vmatmul.msk.bf16.vlgmr.msra.gmra.mxu1 %vm292_vm2, %v5067_v43  ;;  %v3955_v37 = vsel %vm296_vm1, %v3935_v30, 0 }
 0x2d8   : > { %5074 = vmatmul.msk.bf16.vlgmr.msra.gmra.mxu2 %vm292_vm2, %v5067_v43  ;;  %3866 = vmatpush.bf16.msra.mxu0 %v3789_v8  ;;  %v4084_v43 = vpop.permute.xlu1 %4083 }
 0x2d9   : > { %3879 = vmatpush.bf16.msra.mxu1 %v3792_v11  ;;  %3967 = vmatpush.bf16.msra.mxu2 %v3940_v13 }
 0x2da   : > { %5076 = vmatmul.msk.bf16.vlgmr.msra.gmra.mxu3 %vm292_vm2, %v6430_v10 }
 0x2db   : > { %3980 = vmatpush.bf16.msra.mxu3 %v3943_v0  ;;  %v2994_v17 = vpop.f32.mrf.mxu2 }
 0x2dc   : > { %v3052_v22 = vadd.f32 %v2994_v17, %v6383_v26  ;;  %v2970_v25 = vpop.f32.mrf.mxu0  ;;  %v2983_v14 = vpop.f32.mrf.mxu1  ;;  %v3932_v26 = vsel %vm3929_vm9, %v3920_v53, %v3922_v12 }
 0x2dd   : > { %v3007_v20 = vpop.f32.mrf.mxu3  ;;  %v3946_v39 = vsel %vm296_vm1, %v3932_v26, 0  ;;  %v4086_v50 = vpop.permute.xlu2 %4085 }
 0x2de   : > { %v6444_v23 = vadd.f32 %v3007_v20, %v6395_v45  ;;  %v3952_v45 = vsel %vm296_vm1, %v3934_v18, 0  ;;  %v4097_v57 = vsel %vm4095_vm10, %v4084_v43, %v4086_v50 }
 0x2df   : > { %v4109_v6 = vsel %vm296_vm1, %v4097_v57, 0 }
 0x2e0   : > { %v4082_v41 = vpop.permute.xlu1 %4081 }
 0x2e3   : > { %v2996_v27 = vpop.f32.mrf.mxu2 }
 0x2e4   : > { %v3020_v34 = vpop.f32.mrf.mxu0  ;;  %v3033_v35 = vpop.f32.mrf.mxu1 }
 0x2e5   : > { %v3009_v32 = vpop.f32.mrf.mxu3  ;;  %v3054_v15 = vadd.f32 %v3020_v34, %v6398_v40  ;;  %v6455_v28 = vadd.f32 %v3033_v35, %v6411_v55  ;;  %v4096_v55 = vsel %vm4095_vm10, %v4082_v41, %v4084_v43  ;;  %v4090_v8 = vpop.permute.xlu2 %4089 }
 0x2e6   : > { %v4106_v62 = vsel %vm296_vm1, %v4096_v55, 0 }
 0x2e7   : > { %5077 = vmatmul.msk.bf16.vlgmr.msrb.gmra.mxu0 %vm292_vm2, %v6430_v10  ;;  %5078 = vmatmul.msk.bf16.vlgmr.msrb.gmra.mxu1 %vm292_vm2, %v6430_v10 }
 0x2e8   : > { %5079 = vmatmul.msk.bf16.vlgmr.msrb.gmra.mxu2 %vm292_vm2, %v6430_v10  ;;  %3993 = vmatpush.bf16.msrb.mxu0 %v3946_v39  ;;  %v4088_v36 = vpop.permute.xlu0 %4087  ;;  %v4094_v11 = vpop.permute.xlu1 %4093 }
 0x2e9   : > { %4006 = vmatpush.bf16.msrb.mxu1 %v3949_v38  ;;  %4019 = vmatpush.bf16.msrb.mxu2 %v3952_v45  ;;  %v4099_v12 = vsel %vm4095_vm10, %v4088_v36, %v4090_v8  ;;  %v4124_v19 = vsel %vm296_vm1, %v4094_v11, 0 }
 0x2ea   : > { %5080 = vmatmul.msk.bf16.vlgmr.msrb.gmra.mxu3 %vm292_vm2, %v6430_v10  ;;  %v4115_v14 = vsel %vm296_vm1, %v4099_v12, 0 }
 0x2eb   : > { %4032 = vmatpush.bf16.msrb.mxu3 %v3955_v37  ;;  %v3046_v40 = vpop.f32.mrf.mxu2  ;;  %v5091_v37 = vld [vmem:[%s6677_s1 + $0x5c] sm:$0xf] }
 0x2ec   : > { %v3056_v49 = vadd.f32 %v3046_v40, %v6414_v47  ;;  %v3022_v51 = vpop.f32.mrf.mxu0  ;;  %v3035_v44 = vpop.f32.mrf.mxu1  ;;  %v4098_v47 = vsel %vm4095_vm10, %v4086_v50, %v4088_v36 }
 0x2ed   : > { %v3139_v42 = vpop.f32.mrf.mxu3  ;;  %v4112_v4 = vsel %vm296_vm1, %v4098_v47, 0  ;;  %v4248_v24 = vpop.permute.xlu2 %4247 }
 0x2ee   : > { %v6470_v48 = vadd.f32 %v3139_v42, %v3050_v9 }
 0x2f0   : > { %v4252_v35 = vpop.permute.xlu1 %4251 }
 0x2f3   : > { %v3048_v16 = vpop.f32.mrf.mxu2 }
 0x2f4   : > { %v3152_v56 = vpop.f32.mrf.mxu0  ;;  %v3165_v58 = vpop.f32.mrf.mxu1 }
 0x2f5   : > { %v3141_v52 = vpop.f32.mrf.mxu3  ;;  %v3222_v60 = vadd.f32 %v3152_v56, %v6425_v1  ;;  %v6477_v53 = vadd.f32 %v3165_v58, %v3052_v22  ;;  %v4254_v30 = vpop.permute.xlu2 %4253 }
 0x2f6   : > { %v4264_v40 = vsel %vm4261_vm11, %v4252_v35, %v4254_v30 }
 0x2f7   : > { %5081 = vmatmul.msk.bf16.vlgmr.msra.gmra.mxu0 %vm292_vm2, %v6430_v10  ;;  %5082 = vmatmul.msk.bf16.vlgmr.msra.gmra.mxu1 %vm292_vm2, %v6430_v10  ;;  %v4278_v46 = vsel %vm296_vm1, %v4264_v40, 0 }
 0x2f8   : > { %5084 = vmatmul.msk.bf16.vlgmr.msra.gmra.mxu2 %vm292_vm2, %v6482_v3  ;;  %4045 = vmatpush.bf16.msra.mxu0 %v3958_v63  ;;  %v4092_v10 = vpop.permute.xlu0 %4091 }
 0x2f9   : > { %4133 = vmatpush.bf16.msra.mxu1 %v4106_v62  ;;  %4146 = vmatpush.bf16.msra.mxu2 %v4109_v6  ;;  %v4100_v21 = vsel %vm4095_vm10, %v4090_v8, %v4092_v10  ;;  %v4101_v22 = vsel %vm4095_vm10, %v4092_v10, %v4094_v11 }
 0x2fa   : > { %5085 = vmatmul.msk.bf16.vlgmr.msra.gmra.mxu3 %vm292_vm2, %v6482_v3  ;;  %v4118_v61 = vsel %vm296_vm1, %v4100_v21, 0  ;;  %v4121_v5 = vsel %vm296_vm1, %v4101_v22, 0 }
 0x2fb   : > { %4159 = vmatpush.bf16.msra.mxu3 %v4112_v4  ;;  %v3178_v54 = vpop.f32.mrf.mxu2 }
 0x2fc   : > { %v3224_v59 = vadd.f32 %v3178_v54, %v6444_v23  ;;  %v3154_v9 = vpop.f32.mrf.mxu0  ;;  %v3167_v1 = vpop.f32.mrf.mxu1 }
 0x2fd   : > { %v3191_v7 = vpop.f32.mrf.mxu3  ;;  %v4260_v57 = vpop.permute.xlu2 %4259 }
 0x2fe   : > { %v6497_v2 = vadd.f32 %v3191_v7, %v3054_v15  ;;  %v4290_v1 = vsel %vm296_vm1, %v4260_v57, 0 }
 0x300   : > { %v4250_v29 = vpop.permute.xlu0 %4249 }
 0x301   : > { %v4262_v39 = vsel %vm4261_vm11, %v4248_v24, %v4250_v29  ;;  %v4263_v38 = vsel %vm4261_vm11, %v4250_v29, %v4252_v35  ;;  %v4258_v50 = vpop.permute.xlu1 %4257  ;;  %v5099_v24 = vld [vmem:[%s6677_s1 + $0x60] sm:$0xf] }
 0x302   : > { %v4272_v51 = vsel %vm296_vm1, %v4262_v39, 0  ;;  %v4275_v44 = vsel %vm296_vm1, %v4263_v38, 0  ;;  %v4267_v62 = vsel %vm4261_vm11, %v4258_v50, %v4260_v57 }
 0x303   : > { %v3180_v13 = vpop.f32.mrf.mxu2  ;;  %v4287_v9 = vsel %vm296_vm1, %v4267_v62, 0 }
 0x304   : > { %v3204_v17 = vpop.f32.mrf.mxu0  ;;  %v3217_v20 = vpop.f32.mrf.mxu1 }
 0x305   : > { %v3193_v0 = vpop.f32.mrf.mxu3  ;;  %v3226_v25 = vadd.f32 %v3204_v17, %v6455_v28  ;;  %v6503_v23 = vadd.f32 %v3217_v20, %v3056_v49 }
 0x307   : > { %5086 = vmatmul.msk.bf16.vlgmr.msrb.gmra.mxu0 %vm292_vm2, %v6482_v3  ;;  %5087 = vmatmul.msk.bf16.vlgmr.msrb.gmra.mxu1 %vm292_vm2, %v6482_v3 }
 0x308   : > { %5088 = vmatmul.msk.bf16.vlgmr.msrb.gmra.mxu2 %vm292_vm2, %v6482_v3  ;;  %4172 = vmatpush.bf16.msrb.mxu0 %v4115_v14  ;;  %v4256_v18 = vpop.permute.xlu0 %4255 }
 0x309   : > { %4185 = vmatpush.bf16.msrb.mxu1 %v4118_v61  ;;  %4198 = vmatpush.bf16.msrb.mxu2 %v4121_v5  ;;  %v4265_v42 = vsel %vm4261_vm11, %v4254_v30, %v4256_v18  ;;  %v4266_v63 = vsel %vm4261_vm11, %v4256_v18, %v4258_v50 }
 0x30a   : > { %5089 = vmatmul.msk.bf16.vlgmr.msrb.gmra.mxu3 %vm292_vm2, %v6482_v3  ;;  %v4281_v41 = vsel %vm296_vm1, %v4265_v42, 0 }
 0x30b   : > { %4211 = vmatpush.bf16.msrb.mxu3 %v4124_v19  ;;  %v3305_v31 = vpop.f32.mrf.mxu2 }
 0x30c   : > { %v3387_v32 = vadd.f32 %v3305_v31, %v6470_v48  ;;  %v3206_v33 = vpop.f32.mrf.mxu0  ;;  %v3219_v34 = vpop.f32.mrf.mxu1 }
 0x30d   : > { %v3318_v27 = vpop.f32.mrf.mxu3 }
 0x30e   : > { %v6518_v26 = vadd.f32 %v3318_v27, %v3222_v60 }
 0x313   : > { %v3307_v15 = vpop.f32.mrf.mxu2 }
 0x314   : > { %v3331_v43 = vpop.f32.mrf.mxu0  ;;  %v3344_v45 = vpop.f32.mrf.mxu1 }
 0x315   : > { %v3320_v28 = vpop.f32.mrf.mxu3  ;;  %v3389_v49 = vadd.f32 %v3331_v43, %v6477_v53  ;;  %v6528_v48 = vadd.f32 %v3344_v45, %v3224_v59 }
 0x317   : > { %5090 = vmatmul.msk.bf16.vlgmr.msra.gmra.mxu0 %vm292_vm2, %v6482_v3  ;;  %5092 = vmatmul.msk.bf16.vlgmr.msra.gmra.mxu1 %vm292_vm2, %v5091_v37  ;;  %v4418_v10 = vpop.permute.xlu2 %4417 }
 0x318   : > { %5093 = vmatmul.msk.bf16.vlgmr.msra.gmra.mxu2 %vm292_vm2, %v5091_v37  ;;  %4299 = vmatpush.bf16.msra.mxu0 %v4272_v51 }
 0x319   : > { %4312 = vmatpush.bf16.msra.mxu1 %v4275_v44  ;;  %4325 = vmatpush.bf16.msra.mxu2 %v4278_v46 }
 0x31a   : > { %5094 = vmatmul.msk.bf16.vlgmr.msra.gmra.mxu3 %vm292_vm2, %v5091_v37 }
 0x31b   : > { %4338 = vmatpush.bf16.msra.mxu3 %v4281_v41  ;;  %v3357_v36 = vpop.f32.mrf.mxu2 }
 0x31c   : > { %v3391_v52 = vadd.f32 %v3357_v36, %v6497_v2  ;;  %v3333_v56 = vpop.f32.mrf.mxu0  ;;  %v3346_v58 = vpop.f32.mrf.mxu1  ;;  %v4284_v2 = vsel %vm296_vm1, %v4266_v63, 0 }
 0x31d   : > { %v3370_v16 = vpop.f32.mrf.mxu3 }
 0x31e   : > { %v6540_v55 = vadd.f32 %v3370_v16, %v3226_v25 }
 0x31f   : > { %v4424_v22 = vpop.permute.xlu2 %4423 }
 0x320   : > { %v4414_v47 = vpop.permute.xlu0 %4413  ;;  %v4416_v60 = vpop.permute.xlu1 %4415 }
 0x321   : > { %v4428_v54 = vsel %vm4427_vm12, %v4414_v47, %v4416_v60  ;;  %v4429_v61 = vsel %vm4427_vm12, %v4416_v60, %v4418_v10 }
 0x322   : > { %v4438_v8 = vsel %vm296_vm1, %v4428_v54, 0  ;;  %v4441_v33 = vsel %vm296_vm1, %v4429_v61, 0 }
 0x323   : > { %v3359_v53 = vpop.f32.mrf.mxu2 }
 0x324   : > { %v3383_v6 = vpop.f32.mrf.mxu0  ;;  %v3471_v4 = vpop.f32.mrf.mxu1 }
 0x325   : > { %v3372_v3 = vpop.f32.mrf.mxu3  ;;  %v3393_v7 = vadd.f32 %v3383_v6, %v6503_v23  ;;  %v6546_v59 = vadd.f32 %v3471_v4, %v3387_v32 }
 0x327   : > { %5095 = vmatmul.msk.bf16.vlgmr.msrb.gmra.mxu0 %vm292_vm2, %v5091_v37  ;;  %5096 = vmatmul.msk.bf16.vlgmr.msrb.gmra.mxu1 %vm292_vm2, %v5091_v37  ;;  %v4582_v42 = vpop.permute.xlu2 %4581 }
 0x328   : > { %5097 = vmatmul.msk.bf16.vlgmr.msrb.gmra.mxu2 %vm292_vm2, %v5091_v37  ;;  %4351 = vmatpush.bf16.msrb.mxu0 %v4284_v2  ;;  %v4420_v20 = vpop.permute.xlu0 %4419 }
 0x329   : > { %4364 = vmatpush.bf16.msrb.mxu1 %v4287_v9  ;;  %4377 = vmatpush.bf16.msrb.mxu2 %v4290_v1  ;;  %v4430_v5 = vsel %vm4427_vm12, %v4418_v10, %v4420_v20 }
 0x32a   : > { %5098 = vmatmul.msk.bf16.vlgmr.msrb.gmra.mxu3 %vm292_vm2, %v5091_v37  ;;  %v4444_v34 = vsel %vm296_vm1, %v4430_v5, 0 }
 0x32b   : > { %4465 = vmatpush.bf16.msrb.mxu3 %v4438_v8  ;;  %v3484_v11 = vpop.f32.mrf.mxu2 }
 0x32c   : > { %v3554_v0 = vadd.f32 %v3484_v11, %v6518_v26  ;;  %v3385_v21 = vpop.f32.mrf.mxu0  ;;  %v3473_v17 = vpop.f32.mrf.mxu1 }
 0x32d   : > { %v3497_v13 = vpop.f32.mrf.mxu3  ;;  %v4422_v25 = vpop.permute.xlu1 %4421 }
 0x32e   : > { %v6557_v12 = vadd.f32 %v3497_v13, %v3389_v49  ;;  %v4431_v31 = vsel %vm4427_vm12, %v4420_v20, %v4422_v25  ;;  %v4432_v27 = vsel %vm4427_vm12, %v4422_v25, %v4424_v22 }
 0x32f   : > { %v4447_v35 = vsel %vm296_vm1, %v4431_v31, 0  ;;  %v4450_v18 = vsel %vm296_vm1, %v4432_v27, 0  ;;  %v4588_v4 = vpop.permute.xlu2 %4587 }
 0x330   : > { %v4426_v30 = vpop.permute.xlu0 %4425 }
 0x331   : > { %v4433_v51 = vsel %vm4427_vm12, %v4424_v22, %v4426_v30  ;;  %v4456_v56 = vsel %vm296_vm1, %v4426_v30, 0 }
 0x333   : > { %v3486_v23 = vpop.f32.mrf.mxu2 }
 0x334   : > { %v3510_v19 = vpop.f32.mrf.mxu0  ;;  %v3523_v29 = vpop.f32.mrf.mxu1 }
 0x335   : > { %v3499_v14 = vpop.f32.mrf.mxu3  ;;  %v3556_v32 = vadd.f32 %v3510_v19, %v6528_v48  ;;  %v6567_v26 = vadd.f32 %v3523_v29, %v3391_v52  ;;  %v5107_v52 = vld [vmem:[%s6677_s1 + $0x64] sm:$0xf] }
 0x337   : > { %5100 = vmatmul.msk.bf16.vlgmr.msra.gmra.mxu0 %vm292_vm2, %v5099_v24  ;;  %5101 = vmatmul.msk.bf16.vlgmr.msra.gmra.mxu1 %vm292_vm2, %v5099_v24  ;;  %v4580_v37 = vpop.permute.xlu1 %4579 }
 0x338   : > { %5102 = vmatmul.msk.bf16.vlgmr.msra.gmra.mxu2 %vm292_vm2, %v5099_v24  ;;  %4478 = vmatpush.bf16.msra.mxu0 %v4441_v33  ;;  %v4584_v40 = vpop.permute.xlu0 %4583  ;;  %v4594_v41 = vsel %vm4593_vm13, %v4580_v37, %v4582_v42  ;;  %v5115_v33 = vld [vmem:[%s6677_s1 + $0x68] sm:$0xf] }
 0x339   : > { %4491 = vmatpush.bf16.msra.mxu1 %v4444_v34  ;;  %4504 = vmatpush.bf16.msra.mxu2 %v4447_v35  ;;  %v4595_v50 = vsel %vm4593_vm13, %v4582_v42, %v4584_v40  ;;  %v4604_v58 = vsel %vm296_vm1, %v4594_v41, 0 }
 0x33a   : > { %5103 = vmatmul.msk.bf16.vlgmr.msra.gmra.mxu3 %vm292_vm2, %v5099_v24  ;;  %v4607_v57 = vsel %vm296_vm1, %v4595_v50, 0 }
 0x33b   : > { %4517 = vmatpush.bf16.msra.mxu3 %v4450_v18  ;;  %v3536_v15 = vpop.f32.mrf.mxu2 }
 0x33c   : > { %v3558_v39 = vadd.f32 %v3536_v15, %v6540_v55  ;;  %v3512_v43 = vpop.f32.mrf.mxu0  ;;  %v3525_v45 = vpop.f32.mrf.mxu1  ;;  %v4453_v55 = vsel %vm296_vm1, %v4433_v51, 0 }
 0x33d   : > { %v3549_v28 = vpop.f32.mrf.mxu3 }
 0x33e   : > { %v6578_v38 = vadd.f32 %v3549_v28, %v3393_v7 }
 0x33f   : > { %v4586_v47 = vpop.permute.xlu1 %4585 }
 0x340   : > { %v4590_v54 = vpop.permute.xlu0 %4589  ;;  %v4596_v9 = vsel %vm4593_vm13, %v4584_v40, %v4586_v47  ;;  %v4597_v1 = vsel %vm4593_vm13, %v4586_v47, %v4588_v4 }
 0x341   : > { %v4598_v11 = vsel %vm4593_vm13, %v4588_v4, %v4590_v54  ;;  %v4610_v21 = vsel %vm296_vm1, %v4596_v9, 0  ;;  %v4613_v17 = vsel %vm296_vm1, %v4597_v1, 0 }
 0x342   : > { %v4616_v20 = vsel %vm296_vm1, %v4598_v11, 0 }
 0x343   : > { %v3538_v49 = vpop.f32.mrf.mxu2 }
 0x344   : > { %v3637_v44 = vpop.f32.mrf.mxu0  ;;  %v3650_v46 = vpop.f32.mrf.mxu1 }
 0x345   : > { %v3551_v48 = vpop.f32.mrf.mxu3  ;;  %v3719_v36 = vadd.f32 %v3637_v44, %v6546_v59  ;;  %v3720_v16 = vadd.f32 %v3650_v46, %v3554_v0 }
 0x347   : > { %5104 = vmatmul.msk.bf16.vlgmr.msrb.gmra.mxu0 %vm292_vm2, %v5099_v24  ;;  %5105 = vmatmul.msk.bf16.vlgmr.msrb.gmra.mxu1 %vm292_vm2, %v5099_v24 }
 0x348   : > { %5106 = vmatmul.msk.bf16.vlgmr.msrb.gmra.mxu2 %vm292_vm2, %v5099_v24  ;;  %4530 = vmatpush.bf16.msrb.mxu0 %v4453_v55  ;;  %v4592_v7 = vpop.permute.xlu1 %4591 }
 0x349   : > { %4543 = vmatpush.bf16.msrb.mxu1 %v4456_v56  ;;  %4631 = vmatpush.bf16.msrb.mxu2 %v4604_v58  ;;  %v4599_v13 = vsel %vm4593_vm13, %v4590_v54, %v4592_v7  ;;  %v4622_v34 = vsel %vm296_vm1, %v4592_v7, 0 }
 0x34a   : > { %5108 = vmatmul.msk.bf16.vlgmr.msrb.gmra.mxu3 %vm292_vm2, %v5107_v52  ;;  %v4619_v22 = vsel %vm296_vm1, %v4599_v13, 0  ;;  %vm4728_vm1 = vcmask 261120  }
 0x34b   : > { %4644 = vmatpush.bf16.msrb.mxu3 %v4607_v57  ;;  %v3663_v60 = vpop.f32.mrf.mxu2 }
 0x34c   : > { %v3721_v3 = vadd.f32 %v3663_v60, %v6557_v12  ;;  %v3639_v62 = vpop.f32.mrf.mxu0  ;;  %v3652_v6 = vpop.f32.mrf.mxu1 }
 0x34d   : > { %v3676_v53 = vpop.f32.mrf.mxu3 }
 0x34e   : > { %v3722_v63 = vadd.f32 %v3676_v53, %v3556_v32 }
 0x353   : > { %v3665_v59 = vpop.f32.mrf.mxu2 }
 0x354   : > { %v3689_v10 = vpop.f32.mrf.mxu0  ;;  %v3702_v8 = vpop.f32.mrf.mxu1 }
 0x355   : > { %v3678_v2 = vpop.f32.mrf.mxu3  ;;  %v3723_v0 = vadd.f32 %v3689_v10, %v6567_v26  ;;  %v3724_v12 = vadd.f32 %v3702_v8, %v3558_v39 }
 0x357   : > { %5109 = vmatmul.msk.bf16.vlgmr.msra.gmra.mxu0 %vm292_vm2, %v5107_v52  ;;  %5110 = vmatmul.msk.bf16.vlgmr.msra.gmra.mxu1 %vm292_vm2, %v5107_v52 }
 0x358   : > { %5111 = vmatmul.msk.bf16.vlgmr.msra.gmra.mxu2 %vm292_vm2, %v5107_v52  ;;  %4657 = vmatpush.bf16.msra.mxu0 %v4610_v21 }
 0x359   : > { %4670 = vmatpush.bf16.msra.mxu1 %v4613_v17  ;;  %4683 = vmatpush.bf16.msra.mxu2 %v4616_v20 }
 0x35a   : > { %5112 = vmatmul.msk.bf16.vlgmr.msra.gmra.mxu3 %vm292_vm2, %v5107_v52 }
 0x35b   : > { %4696 = vmatpush.bf16.msra.mxu3 %v4619_v22  ;;  %v3715_v25 = vpop.f32.mrf.mxu2 }
 0x35c   : > { %v3725_v14 = vadd.f32 %v3715_v25, %v6578_v38  ;;  %v3691_v5 = vpop.f32.mrf.mxu0  ;;  %v3704_v19 = vpop.f32.mrf.mxu1 }
 0x35d   : > { %v3803_v23 = vpop.f32.mrf.mxu3 }
 0x35e   : > { %v3885_v61 = vadd.f32 %v3803_v23, %v3719_v36 }
 0x363   : > { %v3717_v29 = vpop.f32.mrf.mxu2 }
 0x364   : > { %v3816_v31 = vpop.f32.mrf.mxu0  ;;  %v3829_v27 = vpop.f32.mrf.mxu1 }
 0x365   : > { %v3805_v24 = vpop.f32.mrf.mxu3  ;;  %v3886_v32 = vadd.f32 %v3816_v31, %v3720_v16  ;;  %v3887_v26 = vadd.f32 %v3829_v27, %v3721_v3 }
 0x367   : > { %5113 = vmatmul.msk.bf16.vlgmr.msrb.gmra.mxu0 %vm292_vm2, %v5107_v52  ;;  %5114 = vmatmul.msk.bf16.vlgmr.msrb.gmra.mxu1 %vm292_vm2, %v5107_v52 }
 0x368   : > { %5116 = vmatmul.msk.bf16.vlgmr.msrb.gmra.mxu2 %vm292_vm2, %v5115_v33  ;;  %4709 = vmatpush.bf16.msrb.mxu0 %v4622_v34 }
 0x36a   : > { %5117 = vmatmul.msk.bf16.vlgmr.msrb.gmra.mxu3 %vm292_vm2, %v5115_v33 }
 0x36b   : > { %v3842_v35 = vpop.f32.mrf.mxu2 }
 0x36c   : > { %v3888_v30 = vadd.f32 %v3842_v35, %v3722_v63  ;;  %v3818_v28 = vpop.f32.mrf.mxu0  ;;  %v3831_v39 = vpop.f32.mrf.mxu1 }
 0x36d   : > { %v3855_v18 = vpop.f32.mrf.mxu3 }
 0x36e   : > { %v3889_v15 = vadd.f32 %v3855_v18, %v3723_v0 }
 0x373   : > { %v3844_v38 = vpop.f32.mrf.mxu2 }
 0x374   : > { %v3868_v45 = vpop.f32.mrf.mxu0  ;;  %v3881_v37 = vpop.f32.mrf.mxu1 }
 0x375   : > { %v3857_v43 = vpop.f32.mrf.mxu3  ;;  %v3890_v40 = vadd.f32 %v3868_v45, %v3724_v12  ;;  %v3891_v42 = vadd.f32 %v3881_v37, %v3725_v14 }
 0x377   : > { %5118 = vmatmul.msk.bf16.vlgmr.msra.gmra.mxu0 %vm292_vm2, %v5115_v33  ;;  %5119 = vmatmul.msk.bf16.vlgmr.msra.gmra.mxu1 %vm292_vm2, %v5115_v33 }
 0x378   : > { %5120 = vmatmul.msk.bf16.vlgmr.msra.gmra.mxu2 %vm292_vm2, %v5115_v33 }
 0x37a   : > { %5121 = vmatmul.msk.bf16.vlgmr.msra.gmra.mxu3 %vm292_vm2, %v5115_v33 }
 0x37b   : > { %v3969_v49 = vpop.f32.mrf.mxu2 }
 0x37c   : > { %v4051_v51 = vadd.f32 %v3969_v49, %v3885_v61  ;;  %v3870_v46 = vpop.f32.mrf.mxu0  ;;  %v3883_v41 = vpop.f32.mrf.mxu1 }
 0x37d   : > { %v3982_v48 = vpop.f32.mrf.mxu3 }
 0x37e   : > { %v4052_v44 = vadd.f32 %v3982_v48, %v3886_v32 }
 0x383   : > { %v3971_v50 = vpop.f32.mrf.mxu2 }
 0x384   : > { %v3995_v16 = vpop.f32.mrf.mxu0  ;;  %v4008_v52 = vpop.f32.mrf.mxu1  ;;  %v6639_v50 = vld [vmem:[%s6678_s2] sm:$0x7f] }
 0x385   : > { %v3984_v36 = vpop.f32.mrf.mxu3  ;;  %v4053_v55 = vadd.f32 %v3995_v16, %v3887_v26  ;;  %v4054_v56 = vadd.f32 %v4008_v52, %v3888_v30 }
 0x387   : > { %5122 = vmatmul.msk.bf16.vlgmr.msrb.gmra.mxu0 %vm292_vm2, %v5115_v33  ;;  %vm4762_vm2 = vcmask 7168  }
 0x38b   : > { %v4021_v58 = vpop.f32.mrf.mxu2 }
 0x38c   : > { %v4055_v47 = vadd.f32 %v4021_v58, %v3889_v15  ;;  %v3997_v53 = vpop.f32.mrf.mxu0  ;;  %v4010_v3 = vpop.f32.mrf.mxu1  ;;  %v4733_v58 = vperm.slane %v6639_v50, 1 }
 0x38d   : > { %v4034_v57 = vpop.f32.mrf.mxu3 }
 0x38e   : > { %v4056_v60 = vadd.f32 %v4034_v57, %v3890_v40 }
 0x393   : > { %v4023_v63 = vpop.f32.mrf.mxu2 }
 0x394   : > { %v4047_v6 = vpop.f32.mrf.mxu0  ;;  %v4135_v4 = vpop.f32.mrf.mxu1 }
 0x395   : > { %v4036_v62 = vpop.f32.mrf.mxu3  ;;  %v4057_v54 = vadd.f32 %v4047_v6, %v3891_v42  ;;  %v4217_v7 = vadd.f32 %v4135_v4, %v4051_v51 }
 0x39b   : > { %v4148_v59 = vpop.f32.mrf.mxu2 }
 0x39c   : > { %v4218_v9 = vadd.f32 %v4148_v59, %v4052_v44  ;;  %v4049_v10 = vpop.f32.mrf.mxu0  ;;  %v4137_v8 = vpop.f32.mrf.mxu1 }
 0x39d   : > { %v4161_v2 = vpop.f32.mrf.mxu3 }
 0x39e   : > { %v6623_v1 = vadd.f32 %v4161_v2, %v4053_v55 }
 0x3a3   : > { %v4150_v11 = vpop.f32.mrf.mxu2 }
 0x3a4   : > { %v4174_v0 = vpop.f32.mrf.mxu0  ;;  %v4187_v12 = vpop.f32.mrf.mxu1 }
 0x3a5   : > { %v4163_v13 = vpop.f32.mrf.mxu3  ;;  %v4220_v21 = vadd.f32 %v4174_v0, %v4054_v56  ;;  %v6625_v17 = vadd.f32 %v4187_v12, %v4055_v47  ;;  %v4732_v56 = vperm.slane %v6639_v50, 0  ;;  %v4734_v0 = vperm.slane %v6639_v50, 2 }
 0x3a6   : > { %v4735_v12 = vperm.slane %v6639_v50, 3 }
 0x3ab   : > { %v4200_v20 = vpop.f32.mrf.mxu2 }
 0x3ac   : > { %v6627_v25 = vadd.f32 %v4200_v20, %v4056_v60  ;;  %v4176_v14 = vpop.f32.mrf.mxu0  ;;  %v4189_v61 = vpop.f32.mrf.mxu1 }
 0x3ad   : > { %v4213_v22 = vpop.f32.mrf.mxu3 }
 0x3ae   : > { %v6629_v23 = vadd.f32 %v4213_v22, %v4057_v54 }
 0x3b3   : > { %v4202_v5 = vpop.f32.mrf.mxu2 }
 0x3b4   : > { %v4301_v29 = vpop.f32.mrf.mxu0  ;;  %v4314_v24 = vpop.f32.mrf.mxu1 }
 0x3b5   : > { %v4215_v19 = vpop.f32.mrf.mxu3  ;;  %v4383_v36 = vadd.f32 %v4301_v29, %v4217_v7  ;;  %v4384_v16 = vadd.f32 %v4314_v24, %v4218_v9 }
 0x3bb   : > { %v4327_v31 = vpop.f32.mrf.mxu2 }
 0x3bc   : > { %v4303_v32 = vpop.f32.mrf.mxu0  ;;  %v4316_v26 = vpop.f32.mrf.mxu1  ;;  %v4385_v59 = vadd.f32 %v4327_v31, %v6623_v1 }
 0x3bd   : > { %v4340_v27 = vpop.f32.mrf.mxu3  ;;  %v4736_v32 = vperm.slane %v6639_v50, 4  ;;  %v4737_v26 = vperm.slane %v6639_v50, 5 }
 0x3be   : > { %v4386_v2 = vadd.f32 %v4340_v27, %v4220_v21 }
 0x3c3   : > { %v4329_v33 = vpop.f32.mrf.mxu2 }
 0x3c4   : > { %v4353_v35 = vpop.f32.mrf.mxu0  ;;  %v4366_v18 = vpop.f32.mrf.mxu1 }
 0x3c5   : > { %v4342_v34 = vpop.f32.mrf.mxu3  ;;  %v4387_v1 = vadd.f32 %v4353_v35, %v6625_v17  ;;  %v4388_v21 = vadd.f32 %v4366_v18, %v6627_v25 }
 0x3cb   : > { %v6631_v30 = vpop.f32.mrf.mxu2 }
 0x3cc   : > { %v4355_v28 = vpop.f32.mrf.mxu0  ;;  %v4368_v39 = vpop.f32.mrf.mxu1 }
 0x3cd   : > { %v4467_v15 = vpop.f32.mrf.mxu3 }
 0x3ce   : > { %v4549_v52 = vadd.f32 %v4467_v15, %v4383_v36 }
 0x3d3   : > { %v4381_v38 = vpop.f32.mrf.mxu2 }
 0x3d4   : > { %v4480_v45 = vpop.f32.mrf.mxu0  ;;  %v4493_v37 = vpop.f32.mrf.mxu1 }
 0x3d5   : > { %v4469_v43 = vpop.f32.mrf.mxu3  ;;  %v4550_v55 = vadd.f32 %v4480_v45, %v4384_v16  ;;  %v4551_v10 = vadd.f32 %v4493_v37, %v4385_v59  ;;  %v4738_v16 = vperm.slane %v6639_v50, 6 }
 0x3db   : > { %v4506_v40 = vpop.f32.mrf.mxu2 }
 0x3dc   : > { %v4482_v49 = vpop.f32.mrf.mxu0  ;;  %v4495_v48 = vpop.f32.mrf.mxu1  ;;  %v4552_v8 = vadd.f32 %v4506_v40, %v4386_v2 }
 0x3dd   : > { %v4519_v42 = vpop.f32.mrf.mxu3 }
 0x3de   : > { %v4553_v31 = vadd.f32 %v4519_v42, %v4387_v1  ;;  %v4389_v42 = vadd.f32 %v6631_v30, %v6629_v23 }
 0x3e3   : > { %v4508_v51 = vpop.f32.mrf.mxu2 }
 0x3e4   : > { %v4532_v46 = vpop.f32.mrf.mxu0  ;;  %v6633_v41 = vpop.f32.mrf.mxu1 }
 0x3e5   : > { %v4521_v44 = vpop.f32.mrf.mxu3  ;;  %v4554_v27 = vadd.f32 %v4532_v46, %v4388_v21 }
 0x3e6   : > { %v4555_v44 = vadd.f32 %v6633_v41, %v4389_v42 }
 0x3eb   : > { %v4633_v57 = vpop.f32.mrf.mxu2 }
 0x3ec   : > { %v4715_v60 = vadd.f32 %v4633_v57, %v4549_v52  ;;  %v4534_v3 = vpop.f32.mrf.mxu0  ;;  %v4547_v63 = vpop.f32.mrf.mxu1 }
 0x3ed   : > { %v4646_v47 = vpop.f32.mrf.mxu3 }
 0x3ee   : > { %v4716_v53 = vadd.f32 %v4646_v47, %v4550_v55  ;;  %4722 = vst [vmem:[%s6646_s17] sm:$0xff] %v4715_v60  ;;  %v4746_v62 = vmul.f32 %v4732_v56, %v4715_v60 }
 0x3f0   : > { %v4747_v6 = vmul.f32 %v4733_v58, %v4716_v53  ;;  %4723 = vst [vmem:[%s6646_s17 + $0x8] sm:$0xff] %v4716_v53  ;;  %v4764_v4 = vmul.f32 %v4746_v62, %v4715_v60 }
 0x3f2   : > { %v4753_v54 = vadd.f32 %v4747_v6, %v4746_v62  ;;  %v4765_v7 = vmul.f32 %v4747_v6, %v4716_v53 }
 0x3f3   : > { %v4635_v11 = vpop.f32.mrf.mxu2 }
 0x3f4   : > { %v4771_v9 = vadd.f32 %v4765_v7, %v4764_v4  ;;  %v4659_v20 = vpop.f32.mrf.mxu0  ;;  %v4672_v22 = vpop.f32.mrf.mxu1 }
 0x3f5   : > { %v4648_v13 = vpop.f32.mrf.mxu3  ;;  %v4717_v14 = vadd.f32 %v4659_v20, %v4551_v10  ;;  %v4718_v61 = vadd.f32 %v4672_v22, %v4552_v8 }
 0x3f7   : > { %4724 = vst [vmem:[%s6646_s17 + $0x10] sm:$0xff] %v4717_v14  ;;  %v4748_v5 = vmul.f32 %v4734_v0, %v4717_v14  ;;  %v4749_v19 = vmul.f32 %v4735_v12, %v4718_v61 }
 0x3f8   : > { %4725 = vst [vmem:[%s6646_s17 + $0x18] sm:$0xff] %v4718_v61 }
 0x3f9   : > { %v4754_v29 = vadd.f32 %v4753_v54, %v4748_v5  ;;  %v4766_v24 = vmul.f32 %v4748_v5, %v4717_v14  ;;  %v4767_v15 = vmul.f32 %v4749_v19, %v4718_v61 }
 0x3fb   : > { %v4772_v33 = vadd.f32 %v4771_v9, %v4766_v24  ;;  %v4755_v34 = vadd.f32 %v4754_v29, %v4749_v19  ;;  %v4685_v28 = vpop.f32.mrf.mxu2 }
 0x3fc   : > { %v4719_v38 = vadd.f32 %v4685_v28, %v4553_v31  ;;  %v4661_v35 = vpop.f32.mrf.mxu0  ;;  %v4674_v25 = vpop.f32.mrf.mxu1 }
 0x3fd   : > { %v4698_v39 = vpop.f32.mrf.mxu3  ;;  %v4773_v18 = vadd.f32 %v4772_v33, %v4767_v15 }
 0x3fe   : > { %v4720_v17 = vadd.f32 %v4698_v39, %v4554_v27  ;;  %4726 = vst [vmem:[%s6646_s17 + $0x20] sm:$0xff] %v4719_v38  ;;  %v4750_v43 = vmul.f32 %v4736_v32, %v4719_v38 }
 0x400   : > { %v4751_v45 = vmul.f32 %v4737_v26, %v4720_v17  ;;  %4727 = vst [vmem:[%s6646_s17 + $0x28] sm:$0xff] %v4720_v17  ;;  %v4756_v37 = vadd.f32 %v4755_v34, %v4750_v43  ;;  %v4768_v40 = vmul.f32 %v4750_v43, %v4719_v38 }
 0x402   : > { %v4774_v49 = vadd.f32 %v4773_v18, %v4768_v40  ;;  %v4769_v48 = vmul.f32 %v4751_v45, %v4720_v17  ;;  %v4757_v51 = vadd.f32 %v4756_v37, %v4751_v45 }
 0x403   : > { %v4687_v46 = vpop.f32.mrf.mxu2 }
 0x404   : > { %v4711_v52 = vpop.f32.mrf.mxu0  ;;  %v4775_v55 = vadd.f32 %v4774_v49, %v4769_v48 }
 0x405   : > { %v4700_v36 = vpop.f32.mrf.mxu3  ;;  %v4721_v56 = vadd.f32 %v4711_v52, %v4555_v44 }
 0x407   : > { %4729 = vst.msk [vmem:[%s6646_s17 + $0x30] sm:$0xff] %vm4728_vm1, %v4721_v56  ;;  %v4752_v58 = vmul.f32 %v4738_v16, %v4721_v56 }
 0x409   : > { %v4770_v57 = vmul.f32 %v4752_v58, %v4721_v56  ;;  %v4758_v47 = vsel %vm4728_vm1, %v4752_v58, 0.0 }
 0x40a   : > { %v4759_v60 = vadd.f32 %v4758_v47, %v4757_v51 }
 0x40b   : > { %v4776_v23 = vsel %vm4728_vm1, %v4770_v57, 0.0 }
 0x40c   : > { %v4713_v30 = vpop.f32.mrf.mxu0  ;;  %4760 = vadd.xlane.f32.xlu2 %v4759_v60  ;;  %v4777_v53 = vadd.f32 %v4776_v23, %v4775_v55 }
 0x40e   : > { %4778 = vadd.xlane.f32.xlu0 %v4777_v53 }
 0x47f   : > { %v4761_v41 = vpop.xlane.xlu2 %4760 }
 0x480   : > { %4763 = vst.msk [vmem:[%s241_s24] sm:$0xff] %vm4762_vm2, %v4761_v41 }
 0x481   : > { %v4779_v50 = vpop.xlane.xlu0 %4778 }
 0x482   : > { %4780 = vst.msk [vmem:[%s245_s27] sm:$0xff] %vm4762_vm2, %v4779_v50 }
 0x483 PF: > { %s16_s18 = sadd.s32 1, %s5167_s18  }
 0x484   : > { %p13_p4 = scmp.ge.s32.totalorder %s16_s18, 4  }
 0x486   :  { %15 = sbr.rel (!%p13_p4) target bundleno = 1 (0x1), region = 139 }

</bundles_post_ra>
